<compile_context>
chip_gen: v6e
topology: v6e:2x2x1
jax: 0.10.0
libtpu: 0.0.40
codegen_flags: <defaults>
</compile_context>

<pallas_src>
import math
import functools

import jax
import jax.numpy as jnp
from jax import lax
from jax.experimental import pallas as pl
from jax.experimental.pallas import tpu as pltpu


def _round_up(x, m):
    return ((x + m - 1) // m) * m


def _vmem_capacity_bytes():
    try:
        info = pltpu.get_tpu_info()
        cap = getattr(info, "vmem_capacity_bytes", 0)
        if cap:
            return int(cap)
    except Exception:
        pass
    return 64 * 1024 * 1024        # conservative default (v7x per-TC VMEM)


# ----------------------------------------------------------------------------------------
# Kernel
# ----------------------------------------------------------------------------------------
def att_l_kernel(x_ref, bias_ref,
                 wq_ref, bq_ref, wk_ref, bk_ref, wv_ref, bv_ref,
                 merge_ref, w1_ref, b1_ref, w2_ref, b2_ref,
                 out_ref, k_scr, v_scr,
                 *, n_heads, dp, tq, n_ffn_chunks):
    f32 = jnp.float32
    bf16 = jnp.bfloat16
    qi = pl.program_id(1)
    Hp = x_ref.shape[2]

    # ---- K/V projections once per batch; persist in bf16 VMEM scratch --------------------
    @pl.when(qi == 0)
    def _():
        x_full_b = x_ref[0].astype(bf16)                                 # (Sp, Hp)
        k = jnp.dot(x_full_b, wk_ref[...], preferred_element_type=f32) + bk_ref[...]
        v = jnp.dot(x_full_b, wv_ref[...], preferred_element_type=f32) + bv_ref[...]
        k_scr[...] = k.astype(bf16)                                      # (Sp, n_heads*dp)
        v_scr[...] = v.astype(bf16)

    # ---- query tile sliced from the resident full-sequence block -------------------------
    q_start = pl.multiple_of(qi * tq, tq)
    x_q = x_ref[0, pl.ds(q_start, tq), :]                                # (TQ, Hp) f32
    # 1/sqrt(dh) is folded into wq/bq in the wrapper.
    q = jnp.dot(x_q.astype(bf16), wq_ref[...], preferred_element_type=f32) + bq_ref[...]
    q_b = q.astype(bf16)                                                 # (TQ, n_heads*dp)

    bias = bias_ref[0]                                                   # (1, Sp) additive mask

    # ---- per-head attention; heads are 128-aligned static lane slices --------------------
    attn = jnp.zeros((tq, Hp), f32)
    for h in range(n_heads):
        lo = h * dp
        q_h = q_b[:, lo:lo + dp]                                         # (TQ, dp) bf16
        k_h = k_scr[:, lo:lo + dp]                                       # (Sp, dp) bf16
        v_h = v_scr[:, lo:lo + dp]                                       # (Sp, dp) bf16
        s = jnp.einsum('qd,kd->qk', q_h, k_h, preferred_element_type=f32) + bias
        s = s - jnp.max(s, axis=-1, keepdims=True)
        e = jnp.exp(s)
        p = e * pl.reciprocal(jnp.sum(e, axis=-1, keepdims=True), approx=True)
        ctx = jnp.dot(p.astype(bf16), v_h, preferred_element_type=f32)   # (TQ, dp)
        # one-hot merge (head h dims -> columns h*dh..h*dh+dh), accumulated in f32
        attn = attn + jnp.dot(ctx.astype(bf16), merge_ref[h], preferred_element_type=f32)

    x1 = x_q + attn                                                      # first residual (f32)
    x1_b = x1.astype(bf16)

    # ---- FFN: stream the 4H dimension in chunks, accumulate into out_ref -----------------
    out_ref[0] = x1 + b2_ref[...]
    inv_sqrt2 = 1.0 / math.sqrt(2.0)

    def ffn_chunk(c, carry):
        h1 = jnp.dot(x1_b, w1_ref[c], preferred_element_type=f32) + b1_ref[c]
        g = h1 * 0.5 * (1.0 + lax.erf(h1 * inv_sqrt2))                   # exact erf-GELU (f32)
        out_ref[0] += jnp.dot(g.astype(bf16), w2_ref[c], preferred_element_type=f32)
        return carry

    lax.fori_loop(0, n_ffn_chunks, ffn_chunk, 0)


# ----------------------------------------------------------------------------------------
# Wrapper
# ----------------------------------------------------------------------------------------
def prepare_layer_params(p, *, n_heads):
    """One-time padding / head-packing / bf16 casting of this layer's weights."""
    H = p["wq"].shape[0]
    assert H % n_heads == 0
    dh = H // n_heads
    F = 4 * H
    Hp = _round_up(H, 128)
    dp = _round_up(dh, 128)
    Fp = _round_up(F, 128)
    FC = 512 if Fp % 512 == 0 else (256 if Fp % 256 == 0 else 128)
    n_chunks = Fp // FC
    f32, bf16 = jnp.float32, jnp.bfloat16
    scale = 1.0 / math.sqrt(dh)

    def pack_w(w, s):
        w3 = (w * s).reshape(H, n_heads, dh)
        out = jnp.zeros((Hp, n_heads, dp), f32).at[:H, :, :dh].set(w3)
        return out.reshape(Hp, n_heads * dp).astype(bf16)

    def pack_b(b, s):
        bh = b.reshape(n_heads, dh) * s
        out = jnp.zeros((1, n_heads, dp), f32).at[0, :, :dh].set(bh)
        return out.reshape(1, n_heads * dp)                               # f32 (post-MXU add)

    # one-hot head-merge matrix: (head h, dim d) -> column h*dh + d of the merged layout
    merge = jnp.zeros((n_heads, dp, Hp), f32).at[:, :dh, :H].set(
        jnp.eye(H, dtype=f32).reshape(n_heads, dh, H)).astype(bf16)

    w1p = jnp.zeros((Hp, Fp), f32).at[:H, :F].set(p["w1"])
    w1c = w1p.reshape(Hp, n_chunks, FC).transpose(1, 0, 2).astype(bf16)   # (nc, Hp, FC)
    b1c = jnp.zeros((Fp,), f32).at[:F].set(p["b1"][0]).reshape(n_chunks, 1, FC)
    w2c = jnp.zeros((Fp, Hp), f32).at[:F, :H].set(p["w2"]).reshape(n_chunks, FC, Hp).astype(bf16)
    b2p = jnp.zeros((1, Hp), f32).at[:, :H].set(p["b2"])

    return dict(H=H, n_heads=n_heads, dh=dh, Hp=Hp, dp=dp, Fp=Fp, FC=FC, n_chunks=n_chunks,
                wq=pack_w(p["wq"], scale), bq=pack_b(p["bq"], scale),
                wk=pack_w(p["wk"], 1.0), bk=pack_b(p["bk"], 1.0),
                wv=pack_w(p["wv"], 1.0), bv=pack_b(p["bv"], 1.0),
                merge=merge, w1=w1c, b1=b1c, w2=w2c, b2=b2p)


def _estimate_vmem(tq, sp, Hp, NHdp, Fp, FC, n_heads, dp, single_buffer_weights=True):
    wbuf = 1 if single_buffer_weights else 2
    weights = ((3 * Hp * NHdp + n_heads * dp * Hp + 2 * Hp * Fp) * 2
               + (3 * NHdp + Fp + 2 * Hp) * 4) * wbuf
    x_blocks = 2 * sp * Hp * 4                     # full-seq input block, double buffered
    out_blocks = 2 * tq * Hp * 4
    kv_scratch = 2 * sp * NHdp * 2                 # bf16 K/V scratch
    temps = (2 * tq * NHdp * 4 + 3 * tq * sp * 4 + 4 * tq * Hp * 4 + 2 * tq * FC * 4)
    return weights + x_blocks + out_blocks + kv_scratch + temps + sp * 4


def _pallas_forward(x_p, bias_p, prep, *, B, Sp, TQ, NQ, vmem_limit, cost,
                    single_buffer_weights):
    n_heads, dp, Hp = prep["n_heads"], prep["dp"], prep["Hp"]
    FC, n_chunks = prep["FC"], prep["n_chunks"]
    NHdp = n_heads * dp

    def const_spec(shape):
        kwargs = {}
        if single_buffer_weights:
            kwargs["pipeline_mode"] = pl.Buffered(1)     # constant blocks: no double buffer
        return pl.BlockSpec(shape, lambda b, qi: (0,) * len(shape), **kwargs)

    in_specs = [
        pl.BlockSpec((1, Sp, Hp), lambda b, qi: (b, 0, 0)),      # x (full padded sequence)
        pl.BlockSpec((1, 1, Sp), lambda b, qi: (b, 0, 0)),       # additive key-mask bias
        const_spec((Hp, NHdp)), const_spec((1, NHdp)),           # Wq, bq (scale folded in)
        const_spec((Hp, NHdp)), const_spec((1, NHdp)),           # Wk, bk
        const_spec((Hp, NHdp)), const_spec((1, NHdp)),           # Wv, bv
        const_spec((n_heads, dp, Hp)),                           # one-hot head merge
        const_spec((n_chunks, Hp, FC)), const_spec((n_chunks, 1, FC)),   # W1, b1 (chunked)
        const_spec((n_chunks, FC, Hp)), const_spec((1, Hp)),             # W2 (chunked), b2
    ]
    out_spec = pl.BlockSpec((1, TQ, Hp), lambda b, qi: (b, qi, 0))

    kernel = functools.partial(att_l_kernel, n_heads=n_heads, dp=dp, tq=TQ,
                               n_ffn_chunks=n_chunks)
    return pl.pallas_call(
        kernel,
        out_shape=jax.ShapeDtypeStruct((B, Sp, Hp), jnp.float32),
        grid=(B, NQ),
        in_specs=in_specs,
        out_specs=out_spec,
        scratch_shapes=[pltpu.VMEM((Sp, NHdp), jnp.bfloat16),    # K (bf16), per-batch
                        pltpu.VMEM((Sp, NHdp), jnp.bfloat16)],   # V (bf16), per-batch
        compiler_params=pltpu.CompilerParams(
            dimension_semantics=("parallel", "arbitrary"),
            vmem_limit_bytes=vmem_limit),
        cost_estimate=cost,
    )(x_p, bias_p,
      prep["wq"], prep["bq"], prep["wk"], prep["bk"], prep["wv"], prep["bv"],
      prep["merge"], prep["w1"], prep["b1"], prep["w2"], prep["b2"])


def att_l_forward(x, x_mask, prep):
    """x: (B, S, H) f32; x_mask: (B, 1, S) f32 key mask (1 = attend, 0 = masked)."""
    B, S, H = x.shape
    assert H == prep["H"]
    n_heads, Hp, dp = prep["n_heads"], prep["Hp"], prep["dp"]
    Fp, FC, n_chunks = prep["Fp"], prep["FC"], prep["n_chunks"]
    NHdp = n_heads * dp
    f32 = jnp.float32

    # ---- geometry: size query tile from the (generation-aware) VMEM budget ---------------
    cap = _vmem_capacity_bytes()
    budget = max(int(0.85 * cap), 32 << 20)

    Sp0 = _round_up(S, 8)
    if Sp0 <= 256:
        TQ, Sp = Sp0, Sp0
    else:
        TQ = 256
        for cand in (256, 128, 64):
            TQ = cand
            if _estimate_vmem(cand, _round_up(S, cand), Hp, NHdp, Fp, FC,
                              n_heads, dp) <= budget:
                break
        Sp = _round_up(S, TQ)
    NQ = Sp // TQ

    need = _estimate_vmem(TQ, Sp, Hp, NHdp, Fp, FC, n_heads, dp)
    vmem_limit = int(min(max(need + (8 << 20), 32 << 20), budget))

    # ---- padded activations + precomputed additive mask bias -----------------------------
    x_p = jnp.zeros((B, Sp, Hp), f32).at[:, :S, :H].set(x)
    mask_p = jnp.zeros((B, 1, Sp), f32).at[:, :, :S].set(x_mask.astype(f32))
    bias_p = -10000.0 * (1.0 - mask_p)                 # padded keys stay masked

    # ---- cost hint (weights counted once, not per grid step) -----------------------------
    flops = B * (4 * Sp * Hp * NHdp
                 + NQ * (2 * TQ * Hp * NHdp
                         + 4 * n_heads * TQ * Sp * dp
                         + 2 * n_heads * TQ * dp * Hp
                         + 4 * TQ * Hp * Fp))
    transcendentals = B * NQ * (n_heads * TQ * Sp + TQ * Fp)
    weight_bytes = ((3 * Hp * NHdp + n_heads * dp * Hp + 2 * Hp * Fp) * 2
                    + (3 * NHdp + Fp + 2 * Hp) * 4)
    bytes_accessed = B * Sp * Hp * 4 + B * Sp * 4 + B * NQ * TQ * Hp * 4 + weight_bytes
    cost = pl.CostEstimate(flops=int(flops), transcendentals=int(transcendentals),
                           bytes_accessed=int(bytes_accessed))

    common = dict(B=B, Sp=Sp, TQ=TQ, NQ=NQ, vmem_limit=vmem_limit, cost=cost)
    try:
        out_p = _pallas_forward(x_p, bias_p, prep, single_buffer_weights=True, **common)
        out_p = jax.block_until_ready(out_p)
    except Exception:
        # pl.Buffered(1) unsupported on this JAX/Mosaic build -> default double buffering
        out_p = _pallas_forward(x_p, bias_p, prep, single_buffer_weights=False, **common)

    return out_p[:, :S, :H]


# ----------------------------------------------------------------------------------------
# Synthetic params + pure-JAX reference (validation)
# ----------------------------------------------------------------------------------------
def init_params(key, n_layers, hidden):
    """Deterministic synthetic parameters; weights stored already transposed (in, out)."""
    params = []
    for _ in range(n_layers):
        ks = jax.random.split(key, 11)
        key = ks[0]
        mk = lambda k, shape: (0.02 * jax.random.normal(k, shape)).astype(jnp.float32)
        params.append(dict(
            wq=mk(ks[1], (hidden, hidden)), bq=mk(ks[2], (1, hidden)),
            wk=mk(ks[3], (hidden, hidden)), bk=mk(ks[4], (1, hidden)),
            wv=mk(ks[5], (hidden, hidden)), bv=mk(ks[6], (1, hidden)),
            w1=mk(ks[7], (hidden, 4 * hidden)), b1=mk(ks[8], (1, 4 * hidden)),
            w2=mk(ks[9], (4 * hidden, hidden)), b2=mk(ks[10], (1, hidden)),
        ))
    return params


def att_l_reference(x, x_mask, p, *, n_heads):
    """Pure-JAX f32 replica of the PyTorch forward for validation."""
    B, S, H = x.shape
    dh = H // n_heads
    q = x @ p["wq"] + p["bq"][0]
    k = x @ p["wk"] + p["bk"][0]
    v = x @ p["wv"] + p["bv"][0]
    split = lambda t: t.reshape(B, S, n_heads, dh).transpose(0, 2, 1, 3)
    q, k, v = split(q), split(k), split(v)
    scores = jnp.einsum("bhqd,bhkd->bhqk", q, k) / math.sqrt(dh)
    mask4 = x_mask[:, :, None, :]                       # (B, 1, 1, S) key mask
    scores = scores - 10000.0 * (1.0 - mask4)
    probs = jax.nn.softmax(scores, axis=-1)
    h = jnp.einsum("bhqk,bhkd->bhqd", probs, v).transpose(0, 2, 1, 3).reshape(B, S, H)
    x1 = x + h
    ff1 = x1 @ p["w1"] + p["b1"][0]
    g = ff1 * 0.5 * (1.0 + lax.erf(ff1 / math.sqrt(2.0)))
    return x1 + (g @ p["w2"] + p["b2"][0])


if __name__ == "__main__":
    B, S, H = 2, 8, 32
    n_heads, n_layers, layer_num = 4, 2, 1

    key = jax.random.PRNGKey(0)
    kx, km, kp = jax.random.split(key, 3)

    x = jax.random.normal(kx, (B, S, H), dtype=jnp.float32)
    # key mask: 1 = attend, 0 = masked; last two keys of batch 1 are masked
    x_mask = jnp.ones((B, 1, S), dtype=jnp.float32)
    x_mask = x_mask.at[1, 0, -2:].set(0.0)

    params = init_params(kp, n_layers, H)
    p = params[layer_num]
    prep = prepare_layer_params(p, n_heads=n_heads)      # one-time weight prep (hoisted)

    out = att_l_forward(x, x_mask, prep)
    out = jax.block_until_ready(out)

    ref = att_l_reference(x, x_mask, p, n_heads=n_heads)
    assert out.shape == (B, S, H)
    max_err = float(jnp.max(jnp.abs(out - ref)))
    # bf16 MXU operands + approx reciprocal => compare against the f32 reference loosely
    assert jnp.allclose(out, ref, rtol=2e-2, atol=2e-2), f"mismatch vs reference: {max_err}"
    print("KERNEL_OK")
</pallas_src>

<mosaic_0001>
module attributes {stable_mosaic.version = 11 : i64} {
  func.func @att_l_kernel(%arg0: i32, %arg1: i32, %arg2: memref<1x8x128xf32, #tpu.memory_space<vmem>>, %arg3: memref<1x1x8xf32, #tpu.memory_space<vmem>>, %arg4: memref<128x512xbf16, #tpu.memory_space<vmem>>, %arg5: memref<1x512xf32, #tpu.memory_space<vmem>>, %arg6: memref<128x512xbf16, #tpu.memory_space<vmem>>, %arg7: memref<1x512xf32, #tpu.memory_space<vmem>>, %arg8: memref<128x512xbf16, #tpu.memory_space<vmem>>, %arg9: memref<1x512xf32, #tpu.memory_space<vmem>>, %arg10: memref<4x128x128xbf16, #tpu.memory_space<vmem>>, %arg11: memref<1x128x128xbf16, #tpu.memory_space<vmem>>, %arg12: memref<1x1x128xf32, #tpu.memory_space<vmem>>, %arg13: memref<1x128x128xbf16, #tpu.memory_space<vmem>>, %arg14: memref<1x128xf32, #tpu.memory_space<vmem>>, %arg15: memref<1x8x128xf32, #tpu.memory_space<vmem>>, %arg16: memref<8x512xbf16, #tpu.memory_space<vmem>>, %arg17: memref<8x512xbf16, #tpu.memory_space<vmem>>) attributes {dimension_semantics = [#tpu.dimension_semantics<parallel>, #tpu.dimension_semantics<arbitrary>], iteration_bounds = array<i64: 2, 1>, scalar_prefetch = 0 : i64, scratch_operands = 2 : i64, tpu.core_type = #tpu.core_type<tc>, window_params = [{transform_indices = @transform_0, window_bounds = array<i64: 1, 8, 128>}, {transform_indices = @transform_1, window_bounds = array<i64: 1, 1, 8>}, {pipeline_mode = #tpu.pipeline_mode<synchronous>, transform_indices = @transform_2, window_bounds = array<i64: 128, 512>}, {pipeline_mode = #tpu.pipeline_mode<synchronous>, transform_indices = @transform_3, window_bounds = array<i64: 1, 512>}, {pipeline_mode = #tpu.pipeline_mode<synchronous>, transform_indices = @transform_4, window_bounds = array<i64: 128, 512>}, {pipeline_mode = #tpu.pipeline_mode<synchronous>, transform_indices = @transform_5, window_bounds = array<i64: 1, 512>}, {pipeline_mode = #tpu.pipeline_mode<synchronous>, transform_indices = @transform_6, window_bounds = array<i64: 128, 512>}, {pipeline_mode = #tpu.pipeline_mode<synchronous>, transform_indices = @transform_7, window_bounds = array<i64: 1, 512>}, {pipeline_mode = #tpu.pipeline_mode<synchronous>, transform_indices = @transform_8, window_bounds = array<i64: 4, 128, 128>}, {pipeline_mode = #tpu.pipeline_mode<synchronous>, transform_indices = @transform_9, window_bounds = array<i64: 1, 128, 128>}, {pipeline_mode = #tpu.pipeline_mode<synchronous>, transform_indices = @transform_10, window_bounds = array<i64: 1, 1, 128>}, {pipeline_mode = #tpu.pipeline_mode<synchronous>, transform_indices = @transform_11, window_bounds = array<i64: 1, 128, 128>}, {pipeline_mode = #tpu.pipeline_mode<synchronous>, transform_indices = @transform_12, window_bounds = array<i64: 1, 128>}, {transform_indices = @transform_13, window_bounds = array<i64: 1, 8, 128>}]} {
    %c0_i32 = arith.constant 0 : i32
    %0 = arith.cmpi eq, %arg1, %c0_i32 : i32
    %1 = arith.extui %0 : i1 to i32
    %c0_i32_0 = arith.constant 0 : i32
    %2 = arith.cmpi ne, %1, %c0_i32_0 : i32
    scf.if %2 {
      %c0_75 = arith.constant 0 : index
      %c0_76 = arith.constant 0 : index
      %c0_77 = arith.constant 0 : index
      %146 = vector.load %arg2[%c0_75, %c0_76, %c0_77] : memref<1x8x128xf32, #tpu.memory_space<vmem>>, vector<1x8x128xf32>
      %147 = vector.shape_cast %146 : vector<1x8x128xf32> to vector<8x128xf32>
      %148 = arith.truncf %147 : vector<8x128xf32> to vector<8x128xbf16>
      %c0_78 = arith.constant 0 : index
      %c0_79 = arith.constant 0 : index
      %149 = vector.load %arg6[%c0_78, %c0_79] : memref<128x512xbf16, #tpu.memory_space<vmem>>, vector<128x512xbf16>
      %cst_80 = arith.constant dense<0.000000e+00> : vector<8x512xf32>
      %150 = tpu.matmul %148, %149, %cst_80 {dimension_numbers = #tpu.dot_dimension_numbers<[1], [0], [0], [1], [0, 0, 1, 1], [], []>} : vector<8x128xbf16>, vector<128x512xbf16>, vector<8x512xf32> -> vector<8x512xf32>
      %c0_81 = arith.constant 0 : index
      %c0_82 = arith.constant 0 : index
      %151 = vector.load %arg7[%c0_81, %c0_82] : memref<1x512xf32, #tpu.memory_space<vmem>>, vector<1x512xf32>
      %152 = vector.broadcast %151 : vector<1x512xf32> to vector<8x512xf32>
      %153 = arith.addf %150, %152 : vector<8x512xf32>
      %c0_83 = arith.constant 0 : index
      %c0_84 = arith.constant 0 : index
      %154 = vector.load %arg8[%c0_83, %c0_84] : memref<128x512xbf16, #tpu.memory_space<vmem>>, vector<128x512xbf16>
      %cst_85 = arith.constant dense<0.000000e+00> : vector<8x512xf32>
      %155 = tpu.matmul %148, %154, %cst_85 {dimension_numbers = #tpu.dot_dimension_numbers<[1], [0], [0], [1], [0, 0, 1, 1], [], []>} : vector<8x128xbf16>, vector<128x512xbf16>, vector<8x512xf32> -> vector<8x512xf32>
      %c0_86 = arith.constant 0 : index
      %c0_87 = arith.constant 0 : index
      %156 = vector.load %arg9[%c0_86, %c0_87] : memref<1x512xf32, #tpu.memory_space<vmem>>, vector<1x512xf32>
      %157 = vector.broadcast %156 : vector<1x512xf32> to vector<8x512xf32>
      %158 = arith.addf %155, %157 : vector<8x512xf32>
      %159 = arith.truncf %153 : vector<8x512xf32> to vector<8x512xbf16>
      %c0_88 = arith.constant 0 : index
      %c0_89 = arith.constant 0 : index
      %160 = vector.load %arg16[%c0_88, %c0_89] : memref<8x512xbf16, #tpu.memory_space<vmem>>, vector<8x512xbf16>
      tpu.vector_store %arg16[%c0_88, %c0_89], %159 {strides = array<i32>} : memref<8x512xbf16, #tpu.memory_space<vmem>>, vector<8x512xbf16>,
      %161 = arith.truncf %158 : vector<8x512xf32> to vector<8x512xbf16>
      %c0_90 = arith.constant 0 : index
      %c0_91 = arith.constant 0 : index
      %162 = vector.load %arg17[%c0_90, %c0_91] : memref<8x512xbf16, #tpu.memory_space<vmem>>, vector<8x512xbf16>
      tpu.vector_store %arg17[%c0_90, %c0_91], %161 {strides = array<i32>} : memref<8x512xbf16, #tpu.memory_space<vmem>>, vector<8x512xbf16>,
    } else {
    }
    %c8_i32 = arith.constant 8 : i32
    %3 = arith.muli %arg1, %c8_i32 : i32
    %4 = tpu.assume_multiple %3, 8 : i32
    %c0 = arith.constant 0 : index
    %5 = arith.index_cast %4 : i32 to index
    %c0_1 = arith.constant 0 : index
    %6 = vector.load %arg2[%c0, %5, %c0_1] : memref<1x8x128xf32, #tpu.memory_space<vmem>>, vector<1x8x128xf32>
    %7 = vector.shape_cast %6 : vector<1x8x128xf32> to vector<8x128xf32>
    %8 = arith.truncf %7 : vector<8x128xf32> to vector<8x128xbf16>
    %c0_2 = arith.constant 0 : index
    %c0_3 = arith.constant 0 : index
    %9 = vector.load %arg4[%c0_2, %c0_3] : memref<128x512xbf16, #tpu.memory_space<vmem>>, vector<128x512xbf16>
    %cst = arith.constant dense<0.000000e+00> : vector<8x512xf32>
    %10 = tpu.matmul %8, %9, %cst {dimension_numbers = #tpu.dot_dimension_numbers<[1], [0], [0], [1], [0, 0, 1, 1], [], []>} : vector<8x128xbf16>, vector<128x512xbf16>, vector<8x512xf32> -> vector<8x512xf32>
    %c0_4 = arith.constant 0 : index
    %c0_5 = arith.constant 0 : index
    %11 = vector.load %arg5[%c0_4, %c0_5] : memref<1x512xf32, #tpu.memory_space<vmem>>, vector<1x512xf32>
    %12 = vector.broadcast %11 : vector<1x512xf32> to vector<8x512xf32>
    %13 = arith.addf %10, %12 : vector<8x512xf32>
    %14 = arith.truncf %13 : vector<8x512xf32> to vector<8x512xbf16>
    %c0_6 = arith.constant 0 : index
    %c0_7 = arith.constant 0 : index
    %c0_8 = arith.constant 0 : index
    %15 = vector.load %arg3[%c0_6, %c0_7, %c0_8] : memref<1x1x8xf32, #tpu.memory_space<vmem>>, vector<1x1x8xf32>
    %16 = vector.shape_cast %15 : vector<1x1x8xf32> to vector<1x8xf32>
    %cst_9 = arith.constant 0.000000e+00 : f32
    %17 = vector.broadcast %cst_9 : f32 to vector<8x128xf32>
    %18 = vector.extract_strided_slice %14 {offsets = [0, 0], sizes = [8, 128], strides = [1, 1]} : vector<8x512xbf16> to vector<8x128xbf16>
    %c0_10 = arith.constant 0 : index
    %c0_11 = arith.constant 0 : index
    %19 = vector.load %arg16[%c0_10, %c0_11] : memref<8x512xbf16, #tpu.memory_space<vmem>>, vector<8x128xbf16>
    %c0_12 = arith.constant 0 : index
    %c0_13 = arith.constant 0 : index
    %20 = vector.load %arg17[%c0_12, %c0_13] : memref<8x512xbf16, #tpu.memory_space<vmem>>, vector<8x128xbf16>
    "tpu.trace_start"() <{level = 10 : i32, message = "qd,kd->qk"}> : () -> ()
    %cst_14 = arith.constant dense<0.000000e+00> : vector<8x8xf32>
    %21 = tpu.matmul %18, %19, %cst_14 {dimension_numbers = #tpu.dot_dimension_numbers<[1], [1], [0], [0], [0, 0, 1, 0], [], []>} : vector<8x128xbf16>, vector<8x128xbf16>, vector<8x8xf32> -> vector<8x8xf32>
    "tpu.trace_stop"() : () -> ()
    %22 = vector.broadcast %16 : vector<1x8xf32> to vector<8x8xf32>
    %23 = arith.addf %21, %22 : vector<8x8xf32>
    %cst_15 = arith.constant dense<0xFF800000> : vector<8xf32>
    %24 = vector.multi_reduction <maximumf>, %23, %cst_15 [1] : vector<8x8xf32> to vector<8xf32>
    %25 = vector.shape_cast %24 : vector<8xf32> to vector<8x1xf32>
    %26 = vector.broadcast %25 : vector<8x1xf32> to vector<8x8xf32>
    %27 = arith.subf %23, %26 : vector<8x8xf32>
    %28 = math.exp %27 : vector<8x8xf32>
    %cst_16 = arith.constant dense<0.000000e+00> : vector<8xf32>
    %29 = vector.multi_reduction <add>, %28, %cst_16 [1] : vector<8x8xf32> to vector<8xf32>
    %30 = vector.shape_cast %29 : vector<8xf32> to vector<8x1xf32>
    %31 = tpu.reciprocal %30 {approx = true} : vector<8x1xf32> -> vector<8x1xf32>
    %32 = vector.broadcast %31 : vector<8x1xf32> to vector<8x8xf32>
    %33 = arith.mulf %28, %32 : vector<8x8xf32>
    %34 = arith.truncf %33 : vector<8x8xf32> to vector<8x8xbf16>
    %cst_17 = arith.constant dense<0.000000e+00> : vector<8x128xf32>
    %35 = tpu.matmul %34, %20, %cst_17 {dimension_numbers = #tpu.dot_dimension_numbers<[1], [0], [0], [1], [0, 0, 1, 1], [], []>} : vector<8x8xbf16>, vector<8x128xbf16>, vector<8x128xf32> -> vector<8x128xf32>
    %36 = arith.truncf %35 : vector<8x128xf32> to vector<8x128xbf16>
    %c0_18 = arith.constant 0 : index
    %c0_19 = arith.constant 0 : index
    %c0_20 = arith.constant 0 : index
    %37 = vector.load %arg10[%c0_18, %c0_19, %c0_20] : memref<4x128x128xbf16, #tpu.memory_space<vmem>>, vector<1x128x128xbf16>
    %38 = vector.shape_cast %37 : vector<1x128x128xbf16> to vector<128x128xbf16>
    %cst_21 = arith.constant dense<0.000000e+00> : vector<8x128xf32>
    %39 = tpu.matmul %36, %38, %cst_21 {dimension_numbers = #tpu.dot_dimension_numbers<[1], [0], [0], [1], [0, 0, 1, 1], [], []>} : vector<8x128xbf16>, vector<128x128xbf16>, vector<8x128xf32> -> vector<8x128xf32>
    %40 = arith.addf %17, %39 : vector<8x128xf32>
    %41 = vector.extract_strided_slice %14 {offsets = [0, 128], sizes = [8, 128], strides = [1, 1]} : vector<8x512xbf16> to vector<8x128xbf16>
    %c0_22 = arith.constant 0 : index
    %c128 = arith.constant 128 : index
    %42 = vector.load %arg16[%c0_22, %c128] : memref<8x512xbf16, #tpu.memory_space<vmem>>, vector<8x128xbf16>
    %c0_23 = arith.constant 0 : index
    %c128_24 = arith.constant 128 : index
    %43 = vector.load %arg17[%c0_23, %c128_24] : memref<8x512xbf16, #tpu.memory_space<vmem>>, vector<8x128xbf16>
    "tpu.trace_start"() <{level = 10 : i32, message = "qd,kd->qk"}> : () -> ()
    %cst_25 = arith.constant dense<0.000000e+00> : vector<8x8xf32>
    %44 = tpu.matmul %41, %42, %cst_25 {dimension_numbers = #tpu.dot_dimension_numbers<[1], [1], [0], [0], [0, 0, 1, 0], [], []>} : vector<8x128xbf16>, vector<8x128xbf16>, vector<8x8xf32> -> vector<8x8xf32>
    "tpu.trace_stop"() : () -> ()
    %45 = vector.broadcast %16 : vector<1x8xf32> to vector<8x8xf32>
    %46 = arith.addf %44, %45 : vector<8x8xf32>
    %cst_26 = arith.constant dense<0xFF800000> : vector<8xf32>
    %47 = vector.multi_reduction <maximumf>, %46, %cst_26 [1] : vector<8x8xf32> to vector<8xf32>
    %48 = vector.shape_cast %47 : vector<8xf32> to vector<8x1xf32>
    %49 = vector.broadcast %48 : vector<8x1xf32> to vector<8x8xf32>
    %50 = arith.subf %46, %49 : vector<8x8xf32>
    %51 = math.exp %50 : vector<8x8xf32>
    %cst_27 = arith.constant dense<0.000000e+00> : vector<8xf32>
    %52 = vector.multi_reduction <add>, %51, %cst_27 [1] : vector<8x8xf32> to vector<8xf32>
    %53 = vector.shape_cast %52 : vector<8xf32> to vector<8x1xf32>
    %54 = tpu.reciprocal %53 {approx = true} : vector<8x1xf32> -> vector<8x1xf32>
    %55 = vector.broadcast %54 : vector<8x1xf32> to vector<8x8xf32>
    %56 = arith.mulf %51, %55 : vector<8x8xf32>
    %57 = arith.truncf %56 : vector<8x8xf32> to vector<8x8xbf16>
    %cst_28 = arith.constant dense<0.000000e+00> : vector<8x128xf32>
    %58 = tpu.matmul %57, %43, %cst_28 {dimension_numbers = #tpu.dot_dimension_numbers<[1], [0], [0], [1], [0, 0, 1, 1], [], []>} : vector<8x8xbf16>, vector<8x128xbf16>, vector<8x128xf32> -> vector<8x128xf32>
    %59 = arith.truncf %58 : vector<8x128xf32> to vector<8x128xbf16>
    %c1 = arith.constant 1 : index
    %c0_29 = arith.constant 0 : index
    %c0_30 = arith.constant 0 : index
    %60 = vector.load %arg10[%c1, %c0_29, %c0_30] : memref<4x128x128xbf16, #tpu.memory_space<vmem>>, vector<1x128x128xbf16>
    %61 = vector.shape_cast %60 : vector<1x128x128xbf16> to vector<128x128xbf16>
    %cst_31 = arith.constant dense<0.000000e+00> : vector<8x128xf32>
    %62 = tpu.matmul %59, %61, %cst_31 {dimension_numbers = #tpu.dot_dimension_numbers<[1], [0], [0], [1], [0, 0, 1, 1], [], []>} : vector<8x128xbf16>, vector<128x128xbf16>, vector<8x128xf32> -> vector<8x128xf32>
    %63 = arith.addf %40, %62 : vector<8x128xf32>
    %64 = vector.extract_strided_slice %14 {offsets = [0, 256], sizes = [8, 128], strides = [1, 1]} : vector<8x512xbf16> to vector<8x128xbf16>
    %c0_32 = arith.constant 0 : index
    %c256 = arith.constant 256 : index
    %65 = vector.load %arg16[%c0_32, %c256] : memref<8x512xbf16, #tpu.memory_space<vmem>>, vector<8x128xbf16>
    %c0_33 = arith.constant 0 : index
    %c256_34 = arith.constant 256 : index
    %66 = vector.load %arg17[%c0_33, %c256_34] : memref<8x512xbf16, #tpu.memory_space<vmem>>, vector<8x128xbf16>
    "tpu.trace_start"() <{level = 10 : i32, message = "qd,kd->qk"}> : () -> ()
    %cst_35 = arith.constant dense<0.000000e+00> : vector<8x8xf32>
    %67 = tpu.matmul %64, %65, %cst_35 {dimension_numbers = #tpu.dot_dimension_numbers<[1], [1], [0], [0], [0, 0, 1, 0], [], []>} : vector<8x128xbf16>, vector<8x128xbf16>, vector<8x8xf32> -> vector<8x8xf32>
    "tpu.trace_stop"() : () -> ()
    %68 = vector.broadcast %16 : vector<1x8xf32> to vector<8x8xf32>
    %69 = arith.addf %67, %68 : vector<8x8xf32>
    %cst_36 = arith.constant dense<0xFF800000> : vector<8xf32>
    %70 = vector.multi_reduction <maximumf>, %69, %cst_36 [1] : vector<8x8xf32> to vector<8xf32>
    %71 = vector.shape_cast %70 : vector<8xf32> to vector<8x1xf32>
    %72 = vector.broadcast %71 : vector<8x1xf32> to vector<8x8xf32>
    %73 = arith.subf %69, %72 : vector<8x8xf32>
    %74 = math.exp %73 : vector<8x8xf32>
    %cst_37 = arith.constant dense<0.000000e+00> : vector<8xf32>
    %75 = vector.multi_reduction <add>, %74, %cst_37 [1] : vector<8x8xf32> to vector<8xf32>
    %76 = vector.shape_cast %75 : vector<8xf32> to vector<8x1xf32>
    %77 = tpu.reciprocal %76 {approx = true} : vector<8x1xf32> -> vector<8x1xf32>
    %78 = vector.broadcast %77 : vector<8x1xf32> to vector<8x8xf32>
    %79 = arith.mulf %74, %78 : vector<8x8xf32>
    %80 = arith.truncf %79 : vector<8x8xf32> to vector<8x8xbf16>
    %cst_38 = arith.constant dense<0.000000e+00> : vector<8x128xf32>
    %81 = tpu.matmul %80, %66, %cst_38 {dimension_numbers = #tpu.dot_dimension_numbers<[1], [0], [0], [1], [0, 0, 1, 1], [], []>} : vector<8x8xbf16>, vector<8x128xbf16>, vector<8x128xf32> -> vector<8x128xf32>
    %82 = arith.truncf %81 : vector<8x128xf32> to vector<8x128xbf16>
    %c2 = arith.constant 2 : index
    %c0_39 = arith.constant 0 : index
    %c0_40 = arith.constant 0 : index
    %83 = vector.load %arg10[%c2, %c0_39, %c0_40] : memref<4x128x128xbf16, #tpu.memory_space<vmem>>, vector<1x128x128xbf16>
    %84 = vector.shape_cast %83 : vector<1x128x128xbf16> to vector<128x128xbf16>
    %cst_41 = arith.constant dense<0.000000e+00> : vector<8x128xf32>
    %85 = tpu.matmul %82, %84, %cst_41 {dimension_numbers = #tpu.dot_dimension_numbers<[1], [0], [0], [1], [0, 0, 1, 1], [], []>} : vector<8x128xbf16>, vector<128x128xbf16>, vector<8x128xf32> -> vector<8x128xf32>
    %86 = arith.addf %63, %85 : vector<8x128xf32>
    %87 = vector.extract_strided_slice %14 {offsets = [0, 384], sizes = [8, 128], strides = [1, 1]} : vector<8x512xbf16> to vector<8x128xbf16>
    %c0_42 = arith.constant 0 : index
    %c384 = arith.constant 384 : index
    %88 = vector.load %arg16[%c0_42, %c384] : memref<8x512xbf16, #tpu.memory_space<vmem>>, vector<8x128xbf16>
    %c0_43 = arith.constant 0 : index
    %c384_44 = arith.constant 384 : index
    %89 = vector.load %arg17[%c0_43, %c384_44] : memref<8x512xbf16, #tpu.memory_space<vmem>>, vector<8x128xbf16>
    "tpu.trace_start"() <{level = 10 : i32, message = "qd,kd->qk"}> : () -> ()
    %cst_45 = arith.constant dense<0.000000e+00> : vector<8x8xf32>
    %90 = tpu.matmul %87, %88, %cst_45 {dimension_numbers = #tpu.dot_dimension_numbers<[1], [1], [0], [0], [0, 0, 1, 0], [], []>} : vector<8x128xbf16>, vector<8x128xbf16>, vector<8x8xf32> -> vector<8x8xf32>
    "tpu.trace_stop"() : () -> ()
    %91 = vector.broadcast %16 : vector<1x8xf32> to vector<8x8xf32>
    %92 = arith.addf %90, %91 : vector<8x8xf32>
    %cst_46 = arith.constant dense<0xFF800000> : vector<8xf32>
    %93 = vector.multi_reduction <maximumf>, %92, %cst_46 [1] : vector<8x8xf32> to vector<8xf32>
    %94 = vector.shape_cast %93 : vector<8xf32> to vector<8x1xf32>
    %95 = vector.broadcast %94 : vector<8x1xf32> to vector<8x8xf32>
    %96 = arith.subf %92, %95 : vector<8x8xf32>
    %97 = math.exp %96 : vector<8x8xf32>
    %cst_47 = arith.constant dense<0.000000e+00> : vector<8xf32>
    %98 = vector.multi_reduction <add>, %97, %cst_47 [1] : vector<8x8xf32> to vector<8xf32>
    %99 = vector.shape_cast %98 : vector<8xf32> to vector<8x1xf32>
    %100 = tpu.reciprocal %99 {approx = true} : vector<8x1xf32> -> vector<8x1xf32>
    %101 = vector.broadcast %100 : vector<8x1xf32> to vector<8x8xf32>
    %102 = arith.mulf %97, %101 : vector<8x8xf32>
    %103 = arith.truncf %102 : vector<8x8xf32> to vector<8x8xbf16>
    %cst_48 = arith.constant dense<0.000000e+00> : vector<8x128xf32>
    %104 = tpu.matmul %103, %89, %cst_48 {dimension_numbers = #tpu.dot_dimension_numbers<[1], [0], [0], [1], [0, 0, 1, 1], [], []>} : vector<8x8xbf16>, vector<8x128xbf16>, vector<8x128xf32> -> vector<8x128xf32>
    %105 = arith.truncf %104 : vector<8x128xf32> to vector<8x128xbf16>
    %c3 = arith.constant 3 : index
    %c0_49 = arith.constant 0 : index
    %c0_50 = arith.constant 0 : index
    %106 = vector.load %arg10[%c3, %c0_49, %c0_50] : memref<4x128x128xbf16, #tpu.memory_space<vmem>>, vector<1x128x128xbf16>
    %107 = vector.shape_cast %106 : vector<1x128x128xbf16> to vector<128x128xbf16>
    %cst_51 = arith.constant dense<0.000000e+00> : vector<8x128xf32>
    %108 = tpu.matmul %105, %107, %cst_51 {dimension_numbers = #tpu.dot_dimension_numbers<[1], [0], [0], [1], [0, 0, 1, 1], [], []>} : vector<8x128xbf16>, vector<128x128xbf16>, vector<8x128xf32> -> vector<8x128xf32>
    %109 = arith.addf %86, %108 : vector<8x128xf32>
    %110 = arith.addf %7, %109 : vector<8x128xf32>
    %111 = arith.truncf %110 : vector<8x128xf32> to vector<8x128xbf16>
    %c0_52 = arith.constant 0 : index
    %c0_53 = arith.constant 0 : index
    %112 = vector.load %arg14[%c0_52, %c0_53] : memref<1x128xf32, #tpu.memory_space<vmem>>, vector<1x128xf32>
    %113 = vector.broadcast %112 : vector<1x128xf32> to vector<8x128xf32>
    %114 = arith.addf %110, %113 : vector<8x128xf32>
    %c0_54 = arith.constant 0 : index
    %c0_55 = arith.constant 0 : index
    %c0_56 = arith.constant 0 : index
    %115 = vector.load %arg15[%c0_54, %c0_55, %c0_56] : memref<1x8x128xf32, #tpu.memory_space<vmem>>, vector<1x8x128xf32>
    %116 = vector.shape_cast %115 : vector<1x8x128xf32> to vector<8x128xf32>
    %117 = vector.shape_cast %114 : vector<8x128xf32> to vector<1x8x128xf32>
    tpu.vector_store %arg15[%c0_54, %c0_55, %c0_56], %117 {strides = array<i32>} : memref<1x8x128xf32, #tpu.memory_space<vmem>>, vector<1x8x128xf32>,
    %c0_i32_57 = arith.constant 0 : i32
    %118 = arith.index_cast %c0_i32_57 : i32 to index
    %c0_58 = arith.constant 0 : index
    %c0_59 = arith.constant 0 : index
    %119 = vector.load %arg11[%118, %c0_58, %c0_59] : memref<1x128x128xbf16, #tpu.memory_space<vmem>>, vector<1x128x128xbf16>
    %120 = vector.shape_cast %119 : vector<1x128x128xbf16> to vector<128x128xbf16>
    %cst_60 = arith.constant dense<0.000000e+00> : vector<8x128xf32>
    %121 = tpu.matmul %111, %120, %cst_60 {dimension_numbers = #tpu.dot_dimension_numbers<[1], [0], [0], [1], [0, 0, 1, 1], [], []>} : vector<8x128xbf16>, vector<128x128xbf16>, vector<8x128xf32> -> vector<8x128xf32>
    %122 = arith.index_cast %c0_i32_57 : i32 to index
    %c0_61 = arith.constant 0 : index
    %c0_62 = arith.constant 0 : index
    %123 = vector.load %arg12[%122, %c0_61, %c0_62] : memref<1x1x128xf32, #tpu.memory_space<vmem>>, vector<1x1x128xf32>
    %124 = vector.shape_cast %123 : vector<1x1x128xf32> to vector<1x128xf32>
    %125 = vector.broadcast %124 : vector<1x128xf32> to vector<8x128xf32>
    %126 = arith.addf %121, %125 : vector<8x128xf32>
    %cst_63 = arith.constant 5.000000e-01 : f32
    %127 = vector.broadcast %cst_63 : f32 to vector<8x128xf32>
    %128 = arith.mulf %126, %127 : vector<8x128xf32>
    %cst_64 = arith.constant 0.707106769 : f32
    %129 = vector.broadcast %cst_64 : f32 to vector<8x128xf32>
    %130 = arith.mulf %126, %129 : vector<8x128xf32>
    %131 = math.erf %130 : vector<8x128xf32>
    %cst_65 = arith.constant 1.000000e+00 : f32
    %132 = vector.broadcast %cst_65 : f32 to vector<8x128xf32>
    %133 = arith.addf %132, %131 : vector<8x128xf32>
    %134 = arith.mulf %128, %133 : vector<8x128xf32>
    %c0_66 = arith.constant 0 : index
    %c0_67 = arith.constant 0 : index
    %c0_68 = arith.constant 0 : index
    %135 = vector.load %arg15[%c0_66, %c0_67, %c0_68] : memref<1x8x128xf32, #tpu.memory_space<vmem>>, vector<1x8x128xf32>
    %136 = vector.shape_cast %135 : vector<1x8x128xf32> to vector<8x128xf32>
    %137 = arith.truncf %134 : vector<8x128xf32> to vector<8x128xbf16>
    %138 = arith.index_cast %c0_i32_57 : i32 to index
    %c0_69 = arith.constant 0 : index
    %c0_70 = arith.constant 0 : index
    %139 = vector.load %arg13[%138, %c0_69, %c0_70] : memref<1x128x128xbf16, #tpu.memory_space<vmem>>, vector<1x128x128xbf16>
    %140 = vector.shape_cast %139 : vector<1x128x128xbf16> to vector<128x128xbf16>
    %cst_71 = arith.constant dense<0.000000e+00> : vector<8x128xf32>
    %141 = tpu.matmul %137, %140, %cst_71 {dimension_numbers = #tpu.dot_dimension_numbers<[1], [0], [0], [1], [0, 0, 1, 1], [], []>} : vector<8x128xbf16>, vector<128x128xbf16>, vector<8x128xf32> -> vector<8x128xf32>
    %142 = arith.addf %136, %141 : vector<8x128xf32>
    %c0_72 = arith.constant 0 : index
    %c0_73 = arith.constant 0 : index
    %c0_74 = arith.constant 0 : index
    %143 = vector.load %arg15[%c0_72, %c0_73, %c0_74] : memref<1x8x128xf32, #tpu.memory_space<vmem>>, vector<1x8x128xf32>
    %144 = vector.shape_cast %143 : vector<1x8x128xf32> to vector<8x128xf32>
    %145 = vector.shape_cast %142 : vector<8x128xf32> to vector<1x8x128xf32>
    tpu.vector_store %arg15[%c0_72, %c0_73, %c0_74], %145 {strides = array<i32>} : memref<1x8x128xf32, #tpu.memory_space<vmem>>, vector<1x8x128xf32>,
    %c1_i32 = arith.constant 1 : i32
    return
  }
  func.func @transform_0(%arg0: i32, %arg1: i32) -> (i32, i32, i32) {
    %c0_i32 = arith.constant 0 : i32
    %c0_i32_0 = arith.constant 0 : i32
    %c0_i32_1 = arith.constant 0 : i32
    return %arg0, %c0_i32, %c0_i32_0 : i32, i32, i32
  }
  func.func @transform_1(%arg0: i32, %arg1: i32) -> (i32, i32, i32) {
    %c0_i32 = arith.constant 0 : i32
    %c0_i32_0 = arith.constant 0 : i32
    %c0_i32_1 = arith.constant 0 : i32
    return %arg0, %c0_i32, %c0_i32_0 : i32, i32, i32
  }
  func.func @transform_2(%arg0: i32, %arg1: i32) -> (i32, i32) {
    %c0_i32 = arith.constant 0 : i32
    %c0_i32_0 = arith.constant 0 : i32
    %c0_i32_1 = arith.constant 0 : i32
    return %c0_i32, %c0_i32_0 : i32, i32
  }
  func.func @transform_3(%arg0: i32, %arg1: i32) -> (i32, i32) {
    %c0_i32 = arith.constant 0 : i32
    %c0_i32_0 = arith.constant 0 : i32
    %c0_i32_1 = arith.constant 0 : i32
    return %c0_i32, %c0_i32_0 : i32, i32
  }
  func.func @transform_4(%arg0: i32, %arg1: i32) -> (i32, i32) {
    %c0_i32 = arith.constant 0 : i32
    %c0_i32_0 = arith.constant 0 : i32
    %c0_i32_1 = arith.constant 0 : i32
    return %c0_i32, %c0_i32_0 : i32, i32
  }
  func.func @transform_5(%arg0: i32, %arg1: i32) -> (i32, i32) {
    %c0_i32 = arith.constant 0 : i32
    %c0_i32_0 = arith.constant 0 : i32
    %c0_i32_1 = arith.constant 0 : i32
    return %c0_i32, %c0_i32_0 : i32, i32
  }
  func.func @transform_6(%arg0: i32, %arg1: i32) -> (i32, i32) {
    %c0_i32 = arith.constant 0 : i32
    %c0_i32_0 = arith.constant 0 : i32
    %c0_i32_1 = arith.constant 0 : i32
    return %c0_i32, %c0_i32_0 : i32, i32
  }
  func.func @transform_7(%arg0: i32, %arg1: i32) -> (i32, i32) {
    %c0_i32 = arith.constant 0 : i32
    %c0_i32_0 = arith.constant 0 : i32
    %c0_i32_1 = arith.constant 0 : i32
    return %c0_i32, %c0_i32_0 : i32, i32
  }
  func.func @transform_8(%arg0: i32, %arg1: i32) -> (i32, i32, i32) {
    %c0_i32 = arith.constant 0 : i32
    %c0_i32_0 = arith.constant 0 : i32
    %c0_i32_1 = arith.constant 0 : i32
    %c0_i32_2 = arith.constant 0 : i32
    return %c0_i32, %c0_i32_0, %c0_i32_1 : i32, i32, i32
  }
  func.func @transform_9(%arg0: i32, %arg1: i32) -> (i32, i32, i32) {
    %c0_i32 = arith.constant 0 : i32
    %c0_i32_0 = arith.constant 0 : i32
    %c0_i32_1 = arith.constant 0 : i32
    %c0_i32_2 = arith.constant 0 : i32
    return %c0_i32, %c0_i32_0, %c0_i32_1 : i32, i32, i32
  }
  func.func @transform_10(%arg0: i32, %arg1: i32) -> (i32, i32, i32) {
    %c0_i32 = arith.constant 0 : i32
    %c0_i32_0 = arith.constant 0 : i32
    %c0_i32_1 = arith.constant 0 : i32
    %c0_i32_2 = arith.constant 0 : i32
    return %c0_i32, %c0_i32_0, %c0_i32_1 : i32, i32, i32
  }
  func.func @transform_11(%arg0: i32, %arg1: i32) -> (i32, i32, i32) {
    %c0_i32 = arith.constant 0 : i32
    %c0_i32_0 = arith.constant 0 : i32
    %c0_i32_1 = arith.constant 0 : i32
    %c0_i32_2 = arith.constant 0 : i32
    return %c0_i32, %c0_i32_0, %c0_i32_1 : i32, i32, i32
  }
  func.func @transform_12(%arg0: i32, %arg1: i32) -> (i32, i32) {
    %c0_i32 = arith.constant 0 : i32
    %c0_i32_0 = arith.constant 0 : i32
    %c0_i32_1 = arith.constant 0 : i32
    return %c0_i32, %c0_i32_0 : i32, i32
  }
  func.func @transform_13(%arg0: i32, %arg1: i32) -> (i32, i32, i32) {
    %c0_i32 = arith.constant 0 : i32
    %c0_i32_0 = arith.constant 0 : i32
    return %arg0, %arg1, %c0_i32 : i32, i32, i32
  }
}

module attributes {stable_mosaic.version = 11 : i64} {
  func.func @att_l_kernel(%arg0: i32, %arg1: i32, %arg2: memref<1x8x128xf32, #tpu.memory_space<vmem>>, %arg3: memref<1x1x8xf32, #tpu.memory_space<vmem>>, %arg4: memref<128x512xbf16, #tpu.memory_space<vmem>>, %arg5: memref<1x512xf32, #tpu.memory_space<vmem>>, %arg6: memref<128x512xbf16, #tpu.memory_space<vmem>>, %arg7: memref<1x512xf32, #tpu.memory_space<vmem>>, %arg8: memref<128x512xbf16, #tpu.memory_space<vmem>>, %arg9: memref<1x512xf32, #tpu.memory_space<vmem>>, %arg10: memref<4x128x128xbf16, #tpu.memory_space<vmem>>, %arg11: memref<1x128x128xbf16, #tpu.memory_space<vmem>>, %arg12: memref<1x1x128xf32, #tpu.memory_space<vmem>>, %arg13: memref<1x128x128xbf16, #tpu.memory_space<vmem>>, %arg14: memref<1x128xf32, #tpu.memory_space<vmem>>, %arg15: memref<1x8x128xf32, #tpu.memory_space<vmem>>, %arg16: memref<8x512xbf16, #tpu.memory_space<vmem>>, %arg17: memref<8x512xbf16, #tpu.memory_space<vmem>>) attributes {dimension_semantics = [#tpu.dimension_semantics<parallel>, #tpu.dimension_semantics<arbitrary>], iteration_bounds = array<i64: 2, 1>, scalar_prefetch = 0 : i64, scratch_operands = 2 : i64, tpu.core_type = #tpu.core_type<tc>, window_params = [{transform_indices = @transform_0, window_bounds = array<i64: 1, 8, 128>}, {transform_indices = @transform_1, window_bounds = array<i64: 1, 1, 8>}, {pipeline_mode = #tpu.pipeline_mode<synchronous>, transform_indices = @transform_2, window_bounds = array<i64: 128, 512>}, {pipeline_mode = #tpu.pipeline_mode<synchronous>, transform_indices = @transform_3, window_bounds = array<i64: 1, 512>}, {pipeline_mode = #tpu.pipeline_mode<synchronous>, transform_indices = @transform_4, window_bounds = array<i64: 128, 512>}, {pipeline_mode = #tpu.pipeline_mode<synchronous>, transform_indices = @transform_5, window_bounds = array<i64: 1, 512>}, {pipeline_mode = #tpu.pipeline_mode<synchronous>, transform_indices = @transform_6, window_bounds = array<i64: 128, 512>}, {pipeline_mode = #tpu.pipeline_mode<synchronous>, transform_indices = @transform_7, window_bounds = array<i64: 1, 512>}, {pipeline_mode = #tpu.pipeline_mode<synchronous>, transform_indices = @transform_8, window_bounds = array<i64: 4, 128, 128>}, {pipeline_mode = #tpu.pipeline_mode<synchronous>, transform_indices = @transform_9, window_bounds = array<i64: 1, 128, 128>}, {pipeline_mode = #tpu.pipeline_mode<synchronous>, transform_indices = @transform_10, window_bounds = array<i64: 1, 1, 128>}, {pipeline_mode = #tpu.pipeline_mode<synchronous>, transform_indices = @transform_11, window_bounds = array<i64: 1, 128, 128>}, {pipeline_mode = #tpu.pipeline_mode<synchronous>, transform_indices = @transform_12, window_bounds = array<i64: 1, 128>}, {transform_indices = @transform_13, window_bounds = array<i64: 1, 8, 128>}]} {
    %c0_i32 = arith.constant 0 : i32
    %0 = arith.cmpi eq, %arg1, %c0_i32 : i32
    %1 = arith.extui %0 : i1 to i32
    %c0_i32_0 = arith.constant 0 : i32
    %2 = arith.cmpi ne, %1, %c0_i32_0 : i32
    scf.if %2 {
      %c0_75 = arith.constant 0 : index
      %c0_76 = arith.constant 0 : index
      %c0_77 = arith.constant 0 : index
      %146 = vector.load %arg2[%c0_75, %c0_76, %c0_77] : memref<1x8x128xf32, #tpu.memory_space<vmem>>, vector<1x8x128xf32>
      %147 = vector.shape_cast %146 : vector<1x8x128xf32> to vector<8x128xf32>
      %148 = arith.truncf %147 : vector<8x128xf32> to vector<8x128xbf16>
      %c0_78 = arith.constant 0 : index
      %c0_79 = arith.constant 0 : index
      %149 = vector.load %arg6[%c0_78, %c0_79] : memref<128x512xbf16, #tpu.memory_space<vmem>>, vector<128x512xbf16>
      %cst_80 = arith.constant dense<0.000000e+00> : vector<8x512xf32>
      %150 = tpu.matmul %148, %149, %cst_80 {dimension_numbers = #tpu.dot_dimension_numbers<[1], [0], [0], [1], [0, 0, 1, 1], [], []>} : vector<8x128xbf16>, vector<128x512xbf16>, vector<8x512xf32> -> vector<8x512xf32>
      %c0_81 = arith.constant 0 : index
      %c0_82 = arith.constant 0 : index
      %151 = vector.load %arg7[%c0_81, %c0_82] : memref<1x512xf32, #tpu.memory_space<vmem>>, vector<1x512xf32>
      %152 = vector.broadcast %151 : vector<1x512xf32> to vector<8x512xf32>
      %153 = arith.addf %150, %152 : vector<8x512xf32>
      %c0_83 = arith.constant 0 : index
      %c0_84 = arith.constant 0 : index
      %154 = vector.load %arg8[%c0_83, %c0_84] : memref<128x512xbf16, #tpu.memory_space<vmem>>, vector<128x512xbf16>
      %cst_85 = arith.constant dense<0.000000e+00> : vector<8x512xf32>
      %155 = tpu.matmul %148, %154, %cst_85 {dimension_numbers = #tpu.dot_dimension_numbers<[1], [0], [0], [1], [0, 0, 1, 1], [], []>} : vector<8x128xbf16>, vector<128x512xbf16>, vector<8x512xf32> -> vector<8x512xf32>
      %c0_86 = arith.constant 0 : index
      %c0_87 = arith.constant 0 : index
      %156 = vector.load %arg9[%c0_86, %c0_87] : memref<1x512xf32, #tpu.memory_space<vmem>>, vector<1x512xf32>
      %157 = vector.broadcast %156 : vector<1x512xf32> to vector<8x512xf32>
      %158 = arith.addf %155, %157 : vector<8x512xf32>
      %159 = arith.truncf %153 : vector<8x512xf32> to vector<8x512xbf16>
      %c0_88 = arith.constant 0 : index
      %c0_89 = arith.constant 0 : index
      %160 = vector.load %arg16[%c0_88, %c0_89] : memref<8x512xbf16, #tpu.memory_space<vmem>>, vector<8x512xbf16>
      tpu.vector_store %arg16[%c0_88, %c0_89], %159 {strides = array<i32>} : memref<8x512xbf16, #tpu.memory_space<vmem>>, vector<8x512xbf16>,
      %161 = arith.truncf %158 : vector<8x512xf32> to vector<8x512xbf16>
      %c0_90 = arith.constant 0 : index
      %c0_91 = arith.constant 0 : index
      %162 = vector.load %arg17[%c0_90, %c0_91] : memref<8x512xbf16, #tpu.memory_space<vmem>>, vector<8x512xbf16>
      tpu.vector_store %arg17[%c0_90, %c0_91], %161 {strides = array<i32>} : memref<8x512xbf16, #tpu.memory_space<vmem>>, vector<8x512xbf16>,
    } else {
    }
    %c8_i32 = arith.constant 8 : i32
    %3 = arith.muli %arg1, %c8_i32 : i32
    %4 = tpu.assume_multiple %3, 8 : i32
    %c0 = arith.constant 0 : index
    %5 = arith.index_cast %4 : i32 to index
    %c0_1 = arith.constant 0 : index
    %6 = vector.load %arg2[%c0, %5, %c0_1] : memref<1x8x128xf32, #tpu.memory_space<vmem>>, vector<1x8x128xf32>
    %7 = vector.shape_cast %6 : vector<1x8x128xf32> to vector<8x128xf32>
    %8 = arith.truncf %7 : vector<8x128xf32> to vector<8x128xbf16>
    %c0_2 = arith.constant 0 : index
    %c0_3 = arith.constant 0 : index
    %9 = vector.load %arg4[%c0_2, %c0_3] : memref<128x512xbf16, #tpu.memory_space<vmem>>, vector<128x512xbf16>
    %cst = arith.constant dense<0.000000e+00> : vector<8x512xf32>
    %10 = tpu.matmul %8, %9, %cst {dimension_numbers = #tpu.dot_dimension_numbers<[1], [0], [0], [1], [0, 0, 1, 1], [], []>} : vector<8x128xbf16>, vector<128x512xbf16>, vector<8x512xf32> -> vector<8x512xf32>
    %c0_4 = arith.constant 0 : index
    %c0_5 = arith.constant 0 : index
    %11 = vector.load %arg5[%c0_4, %c0_5] : memref<1x512xf32, #tpu.memory_space<vmem>>, vector<1x512xf32>
    %12 = vector.broadcast %11 : vector<1x512xf32> to vector<8x512xf32>
    %13 = arith.addf %10, %12 : vector<8x512xf32>
    %14 = arith.truncf %13 : vector<8x512xf32> to vector<8x512xbf16>
    %c0_6 = arith.constant 0 : index
    %c0_7 = arith.constant 0 : index
    %c0_8 = arith.constant 0 : index
    %15 = vector.load %arg3[%c0_6, %c0_7, %c0_8] : memref<1x1x8xf32, #tpu.memory_space<vmem>>, vector<1x1x8xf32>
    %16 = vector.shape_cast %15 : vector<1x1x8xf32> to vector<1x8xf32>
    %cst_9 = arith.constant 0.000000e+00 : f32
    %17 = vector.broadcast %cst_9 : f32 to vector<8x128xf32>
    %18 = vector.extract_strided_slice %14 {offsets = [0, 0], sizes = [8, 128], strides = [1, 1]} : vector<8x512xbf16> to vector<8x128xbf16>
    %c0_10 = arith.constant 0 : index
    %c0_11 = arith.constant 0 : index
    %19 = vector.load %arg16[%c0_10, %c0_11] : memref<8x512xbf16, #tpu.memory_space<vmem>>, vector<8x128xbf16>
    %c0_12 = arith.constant 0 : index
    %c0_13 = arith.constant 0 : index
    %20 = vector.load %arg17[%c0_12, %c0_13] : memref<8x512xbf16, #tpu.memory_space<vmem>>, vector<8x128xbf16>
    "tpu.trace_start"() <{level = 10 : i32, message = "qd,kd->qk"}> : () -> ()
    %cst_14 = arith.constant dense<0.000000e+00> : vector<8x8xf32>
    %21 = tpu.matmul %18, %19, %cst_14 {dimension_numbers = #tpu.dot_dimension_numbers<[1], [1], [0], [0], [0, 0, 1, 0], [], []>} : vector<8x128xbf16>, vector<8x128xbf16>, vector<8x8xf32> -> vector<8x8xf32>
    "tpu.trace_stop"() : () -> ()
    %22 = vector.broadcast %16 : vector<1x8xf32> to vector<8x8xf32>
    %23 = arith.addf %21, %22 : vector<8x8xf32>
    %cst_15 = arith.constant dense<0xFF800000> : vector<8xf32>
    %24 = vector.multi_reduction <maximumf>, %23, %cst_15 [1] : vector<8x8xf32> to vector<8xf32>
    %25 = vector.shape_cast %24 : vector<8xf32> to vector<8x1xf32>
    %26 = vector.broadcast %25 : vector<8x1xf32> to vector<8x8xf32>
    %27 = arith.subf %23, %26 : vector<8x8xf32>
    %28 = math.exp %27 : vector<8x8xf32>
    %cst_16 = arith.constant dense<0.000000e+00> : vector<8xf32>
    %29 = vector.multi_reduction <add>, %28, %cst_16 [1] : vector<8x8xf32> to vector<8xf32>
    %30 = vector.shape_cast %29 : vector<8xf32> to vector<8x1xf32>
    %31 = tpu.reciprocal %30 {approx = true} : vector<8x1xf32> -> vector<8x1xf32>
    %32 = vector.broadcast %31 : vector<8x1xf32> to vector<8x8xf32>
    %33 = arith.mulf %28, %32 : vector<8x8xf32>
    %34 = arith.truncf %33 : vector<8x8xf32> to vector<8x8xbf16>
    %cst_17 = arith.constant dense<0.000000e+00> : vector<8x128xf32>
    %35 = tpu.matmul %34, %20, %cst_17 {dimension_numbers = #tpu.dot_dimension_numbers<[1], [0], [0], [1], [0, 0, 1, 1], [], []>} : vector<8x8xbf16>, vector<8x128xbf16>, vector<8x128xf32> -> vector<8x128xf32>
    %36 = arith.truncf %35 : vector<8x128xf32> to vector<8x128xbf16>
    %c0_18 = arith.constant 0 : index
    %c0_19 = arith.constant 0 : index
    %c0_20 = arith.constant 0 : index
    %37 = vector.load %arg10[%c0_18, %c0_19, %c0_20] : memref<4x128x128xbf16, #tpu.memory_space<vmem>>, vector<1x128x128xbf16>
    %38 = vector.shape_cast %37 : vector<1x128x128xbf16> to vector<128x128xbf16>
    %cst_21 = arith.constant dense<0.000000e+00> : vector<8x128xf32>
    %39 = tpu.matmul %36, %38, %cst_21 {dimension_numbers = #tpu.dot_dimension_numbers<[1], [0], [0], [1], [0, 0, 1, 1], [], []>} : vector<8x128xbf16>, vector<128x128xbf16>, vector<8x128xf32> -> vector<8x128xf32>
    %40 = arith.addf %17, %39 : vector<8x128xf32>
    %41 = vector.extract_strided_slice %14 {offsets = [0, 128], sizes = [8, 128], strides = [1, 1]} : vector<8x512xbf16> to vector<8x128xbf16>
    %c0_22 = arith.constant 0 : index
    %c128 = arith.constant 128 : index
    %42 = vector.load %arg16[%c0_22, %c128] : memref<8x512xbf16, #tpu.memory_space<vmem>>, vector<8x128xbf16>
    %c0_23 = arith.constant 0 : index
    %c128_24 = arith.constant 128 : index
    %43 = vector.load %arg17[%c0_23, %c128_24] : memref<8x512xbf16, #tpu.memory_space<vmem>>, vector<8x128xbf16>
    "tpu.trace_start"() <{level = 10 : i32, message = "qd,kd->qk"}> : () -> ()
    %cst_25 = arith.constant dense<0.000000e+00> : vector<8x8xf32>
    %44 = tpu.matmul %41, %42, %cst_25 {dimension_numbers = #tpu.dot_dimension_numbers<[1], [1], [0], [0], [0, 0, 1, 0], [], []>} : vector<8x128xbf16>, vector<8x128xbf16>, vector<8x8xf32> -> vector<8x8xf32>
    "tpu.trace_stop"() : () -> ()
    %45 = vector.broadcast %16 : vector<1x8xf32> to vector<8x8xf32>
    %46 = arith.addf %44, %45 : vector<8x8xf32>
    %cst_26 = arith.constant dense<0xFF800000> : vector<8xf32>
    %47 = vector.multi_reduction <maximumf>, %46, %cst_26 [1] : vector<8x8xf32> to vector<8xf32>
    %48 = vector.shape_cast %47 : vector<8xf32> to vector<8x1xf32>
    %49 = vector.broadcast %48 : vector<8x1xf32> to vector<8x8xf32>
    %50 = arith.subf %46, %49 : vector<8x8xf32>
    %51 = math.exp %50 : vector<8x8xf32>
    %cst_27 = arith.constant dense<0.000000e+00> : vector<8xf32>
    %52 = vector.multi_reduction <add>, %51, %cst_27 [1] : vector<8x8xf32> to vector<8xf32>
    %53 = vector.shape_cast %52 : vector<8xf32> to vector<8x1xf32>
    %54 = tpu.reciprocal %53 {approx = true} : vector<8x1xf32> -> vector<8x1xf32>
    %55 = vector.broadcast %54 : vector<8x1xf32> to vector<8x8xf32>
    %56 = arith.mulf %51, %55 : vector<8x8xf32>
    %57 = arith.truncf %56 : vector<8x8xf32> to vector<8x8xbf16>
    %cst_28 = arith.constant dense<0.000000e+00> : vector<8x128xf32>
    %58 = tpu.matmul %57, %43, %cst_28 {dimension_numbers = #tpu.dot_dimension_numbers<[1], [0], [0], [1], [0, 0, 1, 1], [], []>} : vector<8x8xbf16>, vector<8x128xbf16>, vector<8x128xf32> -> vector<8x128xf32>
    %59 = arith.truncf %58 : vector<8x128xf32> to vector<8x128xbf16>
    %c1 = arith.constant 1 : index
    %c0_29 = arith.constant 0 : index
    %c0_30 = arith.constant 0 : index
    %60 = vector.load %arg10[%c1, %c0_29, %c0_30] : memref<4x128x128xbf16, #tpu.memory_space<vmem>>, vector<1x128x128xbf16>
    %61 = vector.shape_cast %60 : vector<1x128x128xbf16> to vector<128x128xbf16>
    %cst_31 = arith.constant dense<0.000000e+00> : vector<8x128xf32>
    %62 = tpu.matmul %59, %61, %cst_31 {dimension_numbers = #tpu.dot_dimension_numbers<[1], [0], [0], [1], [0, 0, 1, 1], [], []>} : vector<8x128xbf16>, vector<128x128xbf16>, vector<8x128xf32> -> vector<8x128xf32>
    %63 = arith.addf %40, %62 : vector<8x128xf32>
    %64 = vector.extract_strided_slice %14 {offsets = [0, 256], sizes = [8, 128], strides = [1, 1]} : vector<8x512xbf16> to vector<8x128xbf16>
    %c0_32 = arith.constant 0 : index
    %c256 = arith.constant 256 : index
    %65 = vector.load %arg16[%c0_32, %c256] : memref<8x512xbf16, #tpu.memory_space<vmem>>, vector<8x128xbf16>
    %c0_33 = arith.constant 0 : index
    %c256_34 = arith.constant 256 : index
    %66 = vector.load %arg17[%c0_33, %c256_34] : memref<8x512xbf16, #tpu.memory_space<vmem>>, vector<8x128xbf16>
    "tpu.trace_start"() <{level = 10 : i32, message = "qd,kd->qk"}> : () -> ()
    %cst_35 = arith.constant dense<0.000000e+00> : vector<8x8xf32>
    %67 = tpu.matmul %64, %65, %cst_35 {dimension_numbers = #tpu.dot_dimension_numbers<[1], [1], [0], [0], [0, 0, 1, 0], [], []>} : vector<8x128xbf16>, vector<8x128xbf16>, vector<8x8xf32> -> vector<8x8xf32>
    "tpu.trace_stop"() : () -> ()
    %68 = vector.broadcast %16 : vector<1x8xf32> to vector<8x8xf32>
    %69 = arith.addf %67, %68 : vector<8x8xf32>
    %cst_36 = arith.constant dense<0xFF800000> : vector<8xf32>
    %70 = vector.multi_reduction <maximumf>, %69, %cst_36 [1] : vector<8x8xf32> to vector<8xf32>
    %71 = vector.shape_cast %70 : vector<8xf32> to vector<8x1xf32>
    %72 = vector.broadcast %71 : vector<8x1xf32> to vector<8x8xf32>
    %73 = arith.subf %69, %72 : vector<8x8xf32>
    %74 = math.exp %73 : vector<8x8xf32>
    %cst_37 = arith.constant dense<0.000000e+00> : vector<8xf32>
    %75 = vector.multi_reduction <add>, %74, %cst_37 [1] : vector<8x8xf32> to vector<8xf32>
    %76 = vector.shape_cast %75 : vector<8xf32> to vector<8x1xf32>
    %77 = tpu.reciprocal %76 {approx = true} : vector<8x1xf32> -> vector<8x1xf32>
    %78 = vector.broadcast %77 : vector<8x1xf32> to vector<8x8xf32>
    %79 = arith.mulf %74, %78 : vector<8x8xf32>
    %80 = arith.truncf %79 : vector<8x8xf32> to vector<8x8xbf16>
    %cst_38 = arith.constant dense<0.000000e+00> : vector<8x128xf32>
    %81 = tpu.matmul %80, %66, %cst_38 {dimension_numbers = #tpu.dot_dimension_numbers<[1], [0], [0], [1], [0, 0, 1, 1], [], []>} : vector<8x8xbf16>, vector<8x128xbf16>, vector<8x128xf32> -> vector<8x128xf32>
    %82 = arith.truncf %81 : vector<8x128xf32> to vector<8x128xbf16>
    %c2 = arith.constant 2 : index
    %c0_39 = arith.constant 0 : index
    %c0_40 = arith.constant 0 : index
    %83 = vector.load %arg10[%c2, %c0_39, %c0_40] : memref<4x128x128xbf16, #tpu.memory_space<vmem>>, vector<1x128x128xbf16>
    %84 = vector.shape_cast %83 : vector<1x128x128xbf16> to vector<128x128xbf16>
    %cst_41 = arith.constant dense<0.000000e+00> : vector<8x128xf32>
    %85 = tpu.matmul %82, %84, %cst_41 {dimension_numbers = #tpu.dot_dimension_numbers<[1], [0], [0], [1], [0, 0, 1, 1], [], []>} : vector<8x128xbf16>, vector<128x128xbf16>, vector<8x128xf32> -> vector<8x128xf32>
    %86 = arith.addf %63, %85 : vector<8x128xf32>
    %87 = vector.extract_strided_slice %14 {offsets = [0, 384], sizes = [8, 128], strides = [1, 1]} : vector<8x512xbf16> to vector<8x128xbf16>
    %c0_42 = arith.constant 0 : index
    %c384 = arith.constant 384 : index
    %88 = vector.load %arg16[%c0_42, %c384] : memref<8x512xbf16, #tpu.memory_space<vmem>>, vector<8x128xbf16>
    %c0_43 = arith.constant 0 : index
    %c384_44 = arith.constant 384 : index
    %89 = vector.load %arg17[%c0_43, %c384_44] : memref<8x512xbf16, #tpu.memory_space<vmem>>, vector<8x128xbf16>
    "tpu.trace_start"() <{level = 10 : i32, message = "qd,kd->qk"}> : () -> ()
    %cst_45 = arith.constant dense<0.000000e+00> : vector<8x8xf32>
    %90 = tpu.matmul %87, %88, %cst_45 {dimension_numbers = #tpu.dot_dimension_numbers<[1], [1], [0], [0], [0, 0, 1, 0], [], []>} : vector<8x128xbf16>, vector<8x128xbf16>, vector<8x8xf32> -> vector<8x8xf32>
    "tpu.trace_stop"() : () -> ()
    %91 = vector.broadcast %16 : vector<1x8xf32> to vector<8x8xf32>
    %92 = arith.addf %90, %91 : vector<8x8xf32>
    %cst_46 = arith.constant dense<0xFF800000> : vector<8xf32>
    %93 = vector.multi_reduction <maximumf>, %92, %cst_46 [1] : vector<8x8xf32> to vector<8xf32>
    %94 = vector.shape_cast %93 : vector<8xf32> to vector<8x1xf32>
    %95 = vector.broadcast %94 : vector<8x1xf32> to vector<8x8xf32>
    %96 = arith.subf %92, %95 : vector<8x8xf32>
    %97 = math.exp %96 : vector<8x8xf32>
    %cst_47 = arith.constant dense<0.000000e+00> : vector<8xf32>
    %98 = vector.multi_reduction <add>, %97, %cst_47 [1] : vector<8x8xf32> to vector<8xf32>
    %99 = vector.shape_cast %98 : vector<8xf32> to vector<8x1xf32>
    %100 = tpu.reciprocal %99 {approx = true} : vector<8x1xf32> -> vector<8x1xf32>
    %101 = vector.broadcast %100 : vector<8x1xf32> to vector<8x8xf32>
    %102 = arith.mulf %97, %101 : vector<8x8xf32>
    %103 = arith.truncf %102 : vector<8x8xf32> to vector<8x8xbf16>
    %cst_48 = arith.constant dense<0.000000e+00> : vector<8x128xf32>
    %104 = tpu.matmul %103, %89, %cst_48 {dimension_numbers = #tpu.dot_dimension_numbers<[1], [0], [0], [1], [0, 0, 1, 1], [], []>} : vector<8x8xbf16>, vector<8x128xbf16>, vector<8x128xf32> -> vector<8x128xf32>
    %105 = arith.truncf %104 : vector<8x128xf32> to vector<8x128xbf16>
    %c3 = arith.constant 3 : index
    %c0_49 = arith.constant 0 : index
    %c0_50 = arith.constant 0 : index
    %106 = vector.load %arg10[%c3, %c0_49, %c0_50] : memref<4x128x128xbf16, #tpu.memory_space<vmem>>, vector<1x128x128xbf16>
    %107 = vector.shape_cast %106 : vector<1x128x128xbf16> to vector<128x128xbf16>
    %cst_51 = arith.constant dense<0.000000e+00> : vector<8x128xf32>
    %108 = tpu.matmul %105, %107, %cst_51 {dimension_numbers = #tpu.dot_dimension_numbers<[1], [0], [0], [1], [0, 0, 1, 1], [], []>} : vector<8x128xbf16>, vector<128x128xbf16>, vector<8x128xf32> -> vector<8x128xf32>
    %109 = arith.addf %86, %108 : vector<8x128xf32>
    %110 = arith.addf %7, %109 : vector<8x128xf32>
    %111 = arith.truncf %110 : vector<8x128xf32> to vector<8x128xbf16>
    %c0_52 = arith.constant 0 : index
    %c0_53 = arith.constant 0 : index
    %112 = vector.load %arg14[%c0_52, %c0_53] : memref<1x128xf32, #tpu.memory_space<vmem>>, vector<1x128xf32>
    %113 = vector.broadcast %112 : vector<1x128xf32> to vector<8x128xf32>
    %114 = arith.addf %110, %113 : vector<8x128xf32>
    %c0_54 = arith.constant 0 : index
    %c0_55 = arith.constant 0 : index
    %c0_56 = arith.constant 0 : index
    %115 = vector.load %arg15[%c0_54, %c0_55, %c0_56] : memref<1x8x128xf32, #tpu.memory_space<vmem>>, vector<1x8x128xf32>
    %116 = vector.shape_cast %115 : vector<1x8x128xf32> to vector<8x128xf32>
    %117 = vector.shape_cast %114 : vector<8x128xf32> to vector<1x8x128xf32>
    tpu.vector_store %arg15[%c0_54, %c0_55, %c0_56], %117 {strides = array<i32>} : memref<1x8x128xf32, #tpu.memory_space<vmem>>, vector<1x8x128xf32>,
    %c0_i32_57 = arith.constant 0 : i32
    %118 = arith.index_cast %c0_i32_57 : i32 to index
    %c0_58 = arith.constant 0 : index
    %c0_59 = arith.constant 0 : index
    %119 = vector.load %arg11[%118, %c0_58, %c0_59] : memref<1x128x128xbf16, #tpu.memory_space<vmem>>, vector<1x128x128xbf16>
    %120 = vector.shape_cast %119 : vector<1x128x128xbf16> to vector<128x128xbf16>
    %cst_60 = arith.constant dense<0.000000e+00> : vector<8x128xf32>
    %121 = tpu.matmul %111, %120, %cst_60 {dimension_numbers = #tpu.dot_dimension_numbers<[1], [0], [0], [1], [0, 0, 1, 1], [], []>} : vector<8x128xbf16>, vector<128x128xbf16>, vector<8x128xf32> -> vector<8x128xf32>
    %122 = arith.index_cast %c0_i32_57 : i32 to index
    %c0_61 = arith.constant 0 : index
    %c0_62 = arith.constant 0 : index
    %123 = vector.load %arg12[%122, %c0_61, %c0_62] : memref<1x1x128xf32, #tpu.memory_space<vmem>>, vector<1x1x128xf32>
    %124 = vector.shape_cast %123 : vector<1x1x128xf32> to vector<1x128xf32>
    %125 = vector.broadcast %124 : vector<1x128xf32> to vector<8x128xf32>
    %126 = arith.addf %121, %125 : vector<8x128xf32>
    %cst_63 = arith.constant 5.000000e-01 : f32
    %127 = vector.broadcast %cst_63 : f32 to vector<8x128xf32>
    %128 = arith.mulf %126, %127 : vector<8x128xf32>
    %cst_64 = arith.constant 0.707106769 : f32
    %129 = vector.broadcast %cst_64 : f32 to vector<8x128xf32>
    %130 = arith.mulf %126, %129 : vector<8x128xf32>
    %131 = math.erf %130 : vector<8x128xf32>
    %cst_65 = arith.constant 1.000000e+00 : f32
    %132 = vector.broadcast %cst_65 : f32 to vector<8x128xf32>
    %133 = arith.addf %132, %131 : vector<8x128xf32>
    %134 = arith.mulf %128, %133 : vector<8x128xf32>
    %c0_66 = arith.constant 0 : index
    %c0_67 = arith.constant 0 : index
    %c0_68 = arith.constant 0 : index
    %135 = vector.load %arg15[%c0_66, %c0_67, %c0_68] : memref<1x8x128xf32, #tpu.memory_space<vmem>>, vector<1x8x128xf32>
    %136 = vector.shape_cast %135 : vector<1x8x128xf32> to vector<8x128xf32>
    %137 = arith.truncf %134 : vector<8x128xf32> to vector<8x128xbf16>
    %138 = arith.index_cast %c0_i32_57 : i32 to index
    %c0_69 = arith.constant 0 : index
    %c0_70 = arith.constant 0 : index
    %139 = vector.load %arg13[%138, %c0_69, %c0_70] : memref<1x128x128xbf16, #tpu.memory_space<vmem>>, vector<1x128x128xbf16>
    %140 = vector.shape_cast %139 : vector<1x128x128xbf16> to vector<128x128xbf16>
    %cst_71 = arith.constant dense<0.000000e+00> : vector<8x128xf32>
    %141 = tpu.matmul %137, %140, %cst_71 {dimension_numbers = #tpu.dot_dimension_numbers<[1], [0], [0], [1], [0, 0, 1, 1], [], []>} : vector<8x128xbf16>, vector<128x128xbf16>, vector<8x128xf32> -> vector<8x128xf32>
    %142 = arith.addf %136, %141 : vector<8x128xf32>
    %c0_72 = arith.constant 0 : index
    %c0_73 = arith.constant 0 : index
    %c0_74 = arith.constant 0 : index
    %143 = vector.load %arg15[%c0_72, %c0_73, %c0_74] : memref<1x8x128xf32, #tpu.memory_space<vmem>>, vector<1x8x128xf32>
    %144 = vector.shape_cast %143 : vector<1x8x128xf32> to vector<8x128xf32>
    %145 = vector.shape_cast %142 : vector<8x128xf32> to vector<1x8x128xf32>
    tpu.vector_store %arg15[%c0_72, %c0_73, %c0_74], %145 {strides = array<i32>} : memref<1x8x128xf32, #tpu.memory_space<vmem>>, vector<1x8x128xf32>,
    %c1_i32 = arith.constant 1 : i32
    return
  }
  func.func @transform_0(%arg0: i32, %arg1: i32) -> (i32, i32, i32) {
    %c0_i32 = arith.constant 0 : i32
    %c0_i32_0 = arith.constant 0 : i32
    %c0_i32_1 = arith.constant 0 : i32
    return %arg0, %c0_i32, %c0_i32_0 : i32, i32, i32
  }
  func.func @transform_1(%arg0: i32, %arg1: i32) -> (i32, i32, i32) {
    %c0_i32 = arith.constant 0 : i32
    %c0_i32_0 = arith.constant 0 : i32
    %c0_i32_1 = arith.constant 0 : i32
    return %arg0, %c0_i32, %c0_i32_0 : i32, i32, i32
  }
  func.func @transform_2(%arg0: i32, %arg1: i32) -> (i32, i32) {
    %c0_i32 = arith.constant 0 : i32
    %c0_i32_0 = arith.constant 0 : i32
    %c0_i32_1 = arith.constant 0 : i32
    return %c0_i32, %c0_i32_0 : i32, i32
  }
  func.func @transform_3(%arg0: i32, %arg1: i32) -> (i32, i32) {
    %c0_i32 = arith.constant 0 : i32
    %c0_i32_0 = arith.constant 0 : i32
    %c0_i32_1 = arith.constant 0 : i32
    return %c0_i32, %c0_i32_0 : i32, i32
  }
  func.func @transform_4(%arg0: i32, %arg1: i32) -> (i32, i32) {
    %c0_i32 = arith.constant 0 : i32
    %c0_i32_0 = arith.constant 0 : i32
    %c0_i32_1 = arith.constant 0 : i32
    return %c0_i32, %c0_i32_0 : i32, i32
  }
  func.func @transform_5(%arg0: i32, %arg1: i32) -> (i32, i32) {
    %c0_i32 = arith.constant 0 : i32
    %c0_i32_0 = arith.constant 0 : i32
    %c0_i32_1 = arith.constant 0 : i32
    return %c0_i32, %c0_i32_0 : i32, i32
  }
  func.func @transform_6(%arg0: i32, %arg1: i32) -> (i32, i32) {
    %c0_i32 = arith.constant 0 : i32
    %c0_i32_0 = arith.constant 0 : i32
    %c0_i32_1 = arith.constant 0 : i32
    return %c0_i32, %c0_i32_0 : i32, i32
  }
  func.func @transform_7(%arg0: i32, %arg1: i32) -> (i32, i32) {
    %c0_i32 = arith.constant 0 : i32
    %c0_i32_0 = arith.constant 0 : i32
    %c0_i32_1 = arith.constant 0 : i32
    return %c0_i32, %c0_i32_0 : i32, i32
  }
  func.func @transform_8(%arg0: i32, %arg1: i32) -> (i32, i32, i32) {
    %c0_i32 = arith.constant 0 : i32
    %c0_i32_0 = arith.constant 0 : i32
    %c0_i32_1 = arith.constant 0 : i32
    %c0_i32_2 = arith.constant 0 : i32
    return %c0_i32, %c0_i32_0, %c0_i32_1 : i32, i32, i32
  }
  func.func @transform_9(%arg0: i32, %arg1: i32) -> (i32, i32, i32) {
    %c0_i32 = arith.constant 0 : i32
    %c0_i32_0 = arith.constant 0 : i32
    %c0_i32_1 = arith.constant 0 : i32
    %c0_i32_2 = arith.constant 0 : i32
    return %c0_i32, %c0_i32_0, %c0_i32_1 : i32, i32, i32
  }
  func.func @transform_10(%arg0: i32, %arg1: i32) -> (i32, i32, i32) {
    %c0_i32 = arith.constant 0 : i32
    %c0_i32_0 = arith.constant 0 : i32
    %c0_i32_1 = arith.constant 0 : i32
    %c0_i32_2 = arith.constant 0 : i32
    return %c0_i32, %c0_i32_0, %c0_i32_1 : i32, i32, i32
  }
  func.func @transform_11(%arg0: i32, %arg1: i32) -> (i32, i32, i32) {
    %c0_i32 = arith.constant 0 : i32
    %c0_i32_0 = arith.constant 0 : i32
    %c0_i32_1 = arith.constant 0 : i32
    %c0_i32_2 = arith.constant 0 : i32
    return %c0_i32, %c0_i32_0, %c0_i32_1 : i32, i32, i32
  }
  func.func @transform_12(%arg0: i32, %arg1: i32) -> (i32, i32) {
    %c0_i32 = arith.constant 0 : i32
    %c0_i32_0 = arith.constant 0 : i32
    %c0_i32_1 = arith.constant 0 : i32
    return %c0_i32, %c0_i32_0 : i32, i32
  }
  func.func @transform_13(%arg0: i32, %arg1: i32) -> (i32, i32, i32) {
    %c0_i32 = arith.constant 0 : i32
    %c0_i32_0 = arith.constant 0 : i32
    return %arg0, %arg1, %c0_i32 : i32, i32, i32
  }
}

</mosaic_0001>

<bundles_post_ra>
// kernel: tpu_custom_call.1
= control target key start
LH: loop header
LB: loop body
LE: loop exit
PB: predicated region body
PF: predicated region fallthrough
CT: control target
= control target key end

     0   :  { %s4394_s0 = inlined_call_operand.hbm [shape: f32[2,8,128], index: 0, kind: input, shape index: {}]   ;;  %s4395_s1 = inlined_call_operand.hbm [shape: f32[2,1,8], index: 1, kind: input, shape index: {}]   ;;  %s4396_s2 = inlined_call_operand.hbm [shape: bf16[128,512], index: 2, kind: input, shape index: {}]   ;;  %s4397_s3 = inlined_call_operand.vmem [shape: f32[1,512], index: 3, kind: input, shape index: {}]   ;;  %s4398_s4 = inlined_call_operand.hbm [shape: bf16[128,512], index: 4, kind: input, shape index: {}]   ;;  %s4399_s5 = inlined_call_operand.vmem [shape: f32[1,512], index: 5, kind: input, shape index: {}]   ;;  %s4400_s6 = inlined_call_operand.hbm [shape: bf16[128,512], index: 6, kind: input, shape index: {}]   ;;  %s4401_s7 = inlined_call_operand.vmem [shape: f32[1,512], index: 7, kind: input, shape index: {}]   ;;  %s4402_s8 = inlined_call_operand.hbm [shape: bf16[4,128,128], index: 8, kind: input, shape index: {}]   ;;  %s4403_s9 = inlined_call_operand.hbm [shape: bf16[1,128,128], index: 9, kind: input, shape index: {}]   ;;  %s4404_s10 = inlined_call_operand.vmem [shape: f32[1,1,128], index: 10, kind: input, shape index: {}]   ;;  %s4405_s11 = inlined_call_operand.hbm [shape: bf16[1,128,128], index: 11, kind: input, shape index: {}]   ;;  %s4406_s12 = inlined_call_operand.vmem [shape: f32[1,128], index: 12, kind: input, shape index: {}]   ;;  %s4407_s13 = inlined_call_operand.hbm [shape: f32[2,8,128], index: 13, kind: output, shape index: {}]  }
   0x1   :  { %4413 = sst [smem:[#allocation30_spill]] %s4394_s0 }
   0x2   :  { %4414 = sst [smem:[#allocation31_spill]] %s4396_s2 }
   0x3   :  { %4415 = sst [smem:[#allocation32_spill]] %s4398_s4 }
   0x4   :  { %4416 = sst [smem:[#allocation33_spill]] %s4400_s6 }
   0x5   :  { %4417 = sst [smem:[#allocation34_spill]] %s4402_s8 }
   0x6   :  { %4418 = sst [smem:[#allocation35_spill]] %s4403_s9 }
   0x7   :  { %4419 = sst [smem:[#allocation36_spill]] %s4405_s11 }
   0x8   :  { %4420 = sst [smem:[#allocation37_spill]] %s4406_s12 }
   0x9   :  { %4421 = sst [smem:[#allocation38_spill]] %s4407_s13 }
   0xa   :  { %18 = vsyncpa [#allocation5], 0 }
   0xb   :  { %20 = vsyncpa [#allocation5 + $0x1], 0 }
   0xc   :  { %21 = vsyncpa [#allocation8], 0 }
   0xd   :  { %23 = vsyncpa [#allocation8 + $0x1], 0 }
   0xe   :  { %24 = vsyncpa [#allocation11], 0 }
   0xf   :  { %25 = vsyncpa [#allocation14], 0 }
  0x10   :  { %26 = vsyncpa [#allocation17], 0 }
  0x11   :  { %27 = vsyncpa [#allocation6], 0 }
  0x12   :  { %29 = vsyncpa [#allocation6 + $0x1], 0  ;;  %s3941_s25 = smov 0   ;;  %s3943_s26 = smov 0  }
  0x13   :  { %s3945_s27 = smov 0   ;;  %s3947_s28 = smov 0  }
  0x14   :  { %s3949_s29 = smov 0   ;;  %s3951_s30 = smov 0  }
  0x15 LB: > { %4422 = sst [smem:[#allocation26_spill]] %s3841_s27  ;;  %s3972_s14 = sadd.s32 4294967295, %s3853_s30   ;;  %s3853_s30 = sphi %s3951_s30, %s35_s30   ;;  %s3849_s29 = sphi %s3949_s29, %s4453_s29   ;;  %s3845_s28 = sphi %s3947_s28, %s4452_s28   ;;  %s3841_s27 = sphi %s3945_s27, %s4448_s27   ;;  %s3837_s26 = sphi %s3943_s26, %s4451_s26   ;;  %s3833_s25 = sphi %s3941_s25, %s4450_s25  }
  0x16   : > { %4423 = sst [smem:[#allocation27_spill]] %s3845_s28  ;;  %p2774_p0 = scmp.ge.s32.totalorder %s3853_s30, 1 }
  0x17   : > { %p68_p1 = scmp.eq.s32.totalorder %s3972_s14, 0  ;;  %p363_p2 = scmp.lt.s32.totalorder %s3853_s30, 3 }
  0x18   : > { %s3855_s16 = smov [#allocation9]   ;;  %s3856_s19 = smov [#allocation10]  }
  0x19   : > { %p3977_p3 = pnand %p2774_p0, %p363_p2  ;;  %s375_s17 = sshll.u32 %s3855_s16, 4  ;;  %s376_s17 = int_to_ptr.vmem [resolvable:$true] %s375_s17 }
  0x1a   : > { %s391_s20 = sshll.u32 %s3856_s19, 4  ;;  %s3857_s21 = smov [#allocation13]   ;;  %s392_s20 = int_to_ptr.vmem [resolvable:$true] %s391_s20 }
  0x1b   : > { %p3225_p4 = pneg %p3977_p3  ;;  %s423_s22 = sshll.u32 %s3857_s21, 4  ;;  %s424_s22 = int_to_ptr.vmem [resolvable:$true] %s423_s22 }
  0x1c   : > { %s3552_s24 = scalar_lea.vmem %s376_s17, 4096  ;;  %p3560_p11 = scmp.lt.s32.totalorder %s376_s17, %s376_s17 }
  0x1d   : > { %p3986_p6 = pnand %p3225_p4, %p68_p1  ;;  %p3553_p8 = scmp.ne.s32.totalorder %s376_s17, %s3552_s24 }
  0x1e   : > { %p3561_p12 = scmp.lt.s32.totalorder %s3552_s24, %s3552_s24 }
  0x1f   : > { %p3992_p7 = pneg %p3986_p6 }
  0x20   : > { %p3562_p13 = por %p3561_p12, %p3560_p11 }
  0x21   : > { %p3555_p9 = pnand %p3553_p8, %p3992_p7 }
  0x23   : > { %p3556_p10 = pneg %p3555_p9 }
  0x25   : > { %p3563_p0 = pnand %p3562_p13, %p3556_p10 }
  0x27   : > { %3566 = shalt.err (!%p3563_p0)
}
  0x28   : > { %s4409_s16 = smov 256   ;;  %s4410_s19 = smov 16  }
  0x29   : > { %s4427_s2 = sld [smem:[#allocation31_spill]]  ;;  %s3578_s12 = scalar_lea.vmem %s392_s20, 4096 }
  0x2a   : > { %p3579_p2 = scmp.ne.s32.totalorder %s392_s20, %s3578_s12  ;;  %p3586_p9 = scmp.lt.s32.totalorder %s392_s20, %s392_s20 }
  0x2b   : > { %p3587_p10 = scmp.lt.s32.totalorder %s3578_s12, %s3578_s12 }
  0x2c   : > { %p3581_p4 = pnand %p3579_p2, %p3992_p7 }
  0x2d   : > { %p3588_p11 = por %p3587_p10, %p3586_p9 }
  0x2e   : > { %p3582_p8 = pneg %p3581_p4 }
  0x2f   : > { %3228 = dma.hbm_to_vmem [thread:$0]  (!%p3986_p6), %s4427_s2, 4096, %s376_s17, [#allocation8], %s4409_s16, %s4409_s16, %s4410_s19  }
  0x30   : > { %p3589_p12 = pnand %p3588_p11, %p3582_p8 }
  0x32   : > { %3592 = shalt.err (!%p3589_p12)
}
  0x33   : > { %s4428_s4 = sld [smem:[#allocation32_spill]]  ;;  %s3604_s13 = scalar_lea.vmem %s424_s22, 4096 }
  0x34   : > { %p3605_p13 = scmp.ne.s32.totalorder %s424_s22, %s3604_s13  ;;  %p3612_p4 = scmp.lt.s32.totalorder %s424_s22, %s424_s22 }
  0x35   : > { %p3613_p9 = scmp.lt.s32.totalorder %s3604_s13, %s3604_s13 }
  0x36   : > { %p3607_p0 = pnand %p3605_p13, %p3992_p7 }
  0x37   : > { %p3614_p8 = por %p3613_p9, %p3612_p4 }
  0x38   : > { %p3608_p2 = pneg %p3607_p0 }
  0x39   : > { %3231 = dma.hbm_to_vmem [thread:$0]  (!%p3986_p6), %s4428_s4, 4096, %s392_s20, [#allocation11], %s4409_s16, %s4409_s16, %s4410_s19  }
  0x3a   : > { %p3615_p10 = pnand %p3614_p8, %p3608_p2 }
  0x3c   : > { %3618 = shalt.err (!%p3615_p10)
}
  0x3d   : > { %s3860_s12 = smov 64   ;;  %s3861_s17 = smov 4  }
  0x3e   : > { %s4429_s8 = sld [smem:[#allocation34_spill]]  ;;  %s3862_s21 = smov [#allocation12]  }
  0x3f   : > { %s407_s24 = sshll.u32 %s3862_s21, 4  ;;  %s3863_s16 = smov [#allocation15]   ;;  %s408_s24 = int_to_ptr.vmem [resolvable:$true] %s407_s24 }
  0x40   : > { %s436_s13 = sshll.u32 %s3863_s16, 4  ;;  %s3630_s19 = scalar_lea.vmem %s408_s24, 4096  ;;  %s437_s13 = int_to_ptr.vmem [resolvable:$true] %s436_s13 }
  0x41   : > { %p3631_p11 = scmp.ne.s32.totalorder %s408_s24, %s3630_s19  ;;  %p3638_p0 = scmp.lt.s32.totalorder %s408_s24, %s408_s24 }
  0x42   : > { %p3639_p2 = scmp.lt.s32.totalorder %s3630_s19, %s3630_s19 }
  0x43   : > { %p3633_p12 = pnand %p3631_p11, %p3992_p7 }
  0x44   : > { %3237 = dma.hbm_to_vmem [thread:$0]  (!%p3986_p6), %s4429_s8, 4096, %s424_s22, [#allocation14], %s3860_s12, %s3860_s12, %s3861_s17  }
  0x45   : > { %p3634_p13 = pneg %p3633_p12  ;;  %p3640_p4 = por %p3639_p2, %p3638_p0 }
  0x47   : > { %p3641_p9 = pnand %p3640_p4, %p3634_p13 }
  0x49   : > { %3644 = shalt.err (!%p3641_p9)
}
  0x4a   : > { %s4430_s2 = smov 16   ;;  %s4431_s28 = smov 256  }
  0x4b   : > { %s4432_s6 = sld [smem:[#allocation33_spill]]  ;;  %s3656_s16 = scalar_lea.vmem %s437_s13, 1024 }
  0x4c   : > { %p3657_p8 = scmp.ne.s32.totalorder %s437_s13, %s3656_s16  ;;  %p3664_p12 = scmp.lt.s32.totalorder %s437_s13, %s437_s13 }
  0x4d   : > { %p3665_p0 = scmp.lt.s32.totalorder %s3656_s16, %s3656_s16 }
  0x4e   : > { %p3659_p10 = pnand %p3657_p8, %p3992_p7 }
  0x4f   : > { %p3666_p13 = por %p3665_p0, %p3664_p12 }
  0x50   : > { %p3660_p11 = pneg %p3659_p10 }
  0x51   : > { %3234 = dma.hbm_to_vmem [thread:$0]  (!%p3986_p6), %s4432_s6, 4096, %s408_s24, [#allocation11], %s4431_s28, %s4431_s28, %s4430_s2  }
  0x52   : > { %p3667_p2 = pnand %p3666_p13, %p3660_p11 }
  0x54   : > { %3670 = shalt.err (!%p3667_p2)
}
  0x55   : > { %s4433_s9 = sld [smem:[#allocation35_spill]]  ;;  %s3864_s2 = smov [#allocation16]  }
  0x56   : > { %s452_s24 = sshll.u32 %s3864_s2, 4  ;;  %s453_s24 = int_to_ptr.vmem [resolvable:$true] %s452_s24 }
  0x57   : > { %s3682_s28 = scalar_lea.vmem %s453_s24, 1024  ;;  %p3690_p10 = scmp.lt.s32.totalorder %s453_s24, %s453_s24 }
  0x58   : > { %p3683_p4 = scmp.ne.s32.totalorder %s453_s24, %s3682_s28  ;;  %p3691_p11 = scmp.lt.s32.totalorder %s3682_s28, %s3682_s28 }
  0x5a   : > { %p3685_p9 = pnand %p3683_p4, %p3992_p7  ;;  %p3692_p12 = por %p3691_p11, %p3690_p10 }
  0x5b   : > { %3240 = dma.hbm_to_vmem [thread:$0]  (!%p3986_p6), %s4433_s9, 1024, %s437_s13, [#allocation14], %s3860_s12, %s3860_s12, %s3861_s17  }
  0x5c   : > { %p3686_p8 = pneg %p3685_p9 }
  0x5e   : > { %p3693_p0 = pnand %p3692_p12, %p3686_p8 }
  0x60   : > { %3696 = shalt.err (!%p3693_p0)
}
  0x61   : > { %s4434_s11 = sld [smem:[#allocation36_spill]]  ;;  %s2773_s18 = sadd.s32 4294967294, %s3853_s30  }
  0x62   : > { %s47_s23 = sadd.s32 1, %s3849_s29  ;;  %s54_s20 = sadd.s32 1, %s3841_s27 }
  0x63   : > { %p49_p7 = scmp.ge.s32.totalorder %s47_s23, 2  ;;  %p61_p13 = scmp.ne.s32.totalorder %s3841_s27, %s3837_s26 }
  0x64   : > { %p62_p2 = scmp.eq.s32.totalorder %s3853_s30, 0  ;;  %p67_p9 = scmp.ne.s32.totalorder %s3837_s26, %s3833_s25 }
  0x65   : > { %s4455_s23 = smov (%p49_p7, %s47_s23), 0  ;;  %p356_p12 = scmp.eq.s32.totalorder %s2773_s18, 1 }
  0x66   : > { %4435 = sst [smem:[#allocation28_spill]] %s4455_s23  ;;  %p4064_p4 = por %p62_p2, %p61_p13 }
  0x67   : > { %3243 = dma.hbm_to_vmem [thread:$0]  (!%p3986_p6), %s4434_s11, 1024, %s453_s24, [#allocation17], %s3860_s12, %s3860_s12, %s3861_s17  }
  0x68   : > { %s51_s12 = ssub.s32 %s3849_s29, %s4455_s23  ;;  %p350_p6 = scmp.eq.s32.totalorder %s3972_s14, 1 }
  0x69   : > { %p52_p8 = scmp.eq.s32.totalorder %s51_s12, 0  ;;  %p4075_p10 = por %p68_p1, %p67_p9 }
  0x6a   : > { %p4079_p11 = por %p350_p6, %p61_p13  ;;  %p4086_p0 = por %p356_p12, %p67_p9 }
  0x6b   : > { %s4084_s21 = scalar_select %p52_p8, %s3841_s27, %s54_s20  }
  0x6c   : > { %p3261_p7 = scmp.lt.s32.totalorder %s3853_s30, 2  ;;  %s469_s24 = sand.u32 1, %s3841_s27  }
  0x6d   : > { %4439 = sst [smem:[#allocation29_spill]] %s4084_s21  ;;  %s2783_s28 = sshll.u32 %s3849_s29, 7 }
  0x6e   : > { %s2782_s22 = sshll.u32 %s469_s24, 3  ;;  %s4441_s0 = sld [smem:[#allocation30_spill]] }
  0x6f   : > { %s473_s6 = scalar_lea.vmem [#allocation4], %s2782_s22  ;;  %p4098_p13 = pnand %p3261_p7, %p4064_p4 }
  0x70   : > { %s480_s8 = sshll.u32 %s473_s6, 4  ;;  %s487_s18 = sand.u32 1, %s3853_s30   ;;  %s481_s8 = int_to_ptr.vmem [resolvable:$true] %s480_s8 }
  0x71   : > { %s470_s20 = scalar_lea.sflag [#allocation5], %s469_s24  ;;  %p3699_p2 = pneg %p4098_p13 }
  0x72   : > { %s3710_s11 = scalar_lea.vmem %s481_s8, 128 }
  0x73   : > { %p3711_p9 = scmp.ne.s32.totalorder %s481_s8, %s3710_s11 }
  0x74   : > { %s478_s4 = scalar_lea.hbm %s4441_s0, %s2783_s28  ;;  %s3865_s28 = smov [#allocation4]  }
  0x75   : > { %p3713_p6 = pnand %p3711_p9, %p3699_p2  ;;  %s3715_s6 = sshll.u32 %s3865_s28, 4  ;;  %s3716_s6 = int_to_ptr.vmem [resolvable:$false] %s3715_s6 }
  0x76   : > { %s3717_s16 = scalar_lea.vmem %s3716_s6, 256  ;;  %p3718_p4 = scmp.lt.s32.totalorder %s481_s8, %s3716_s6 }
  0x77   : > { %p3714_p8 = pneg %p3713_p6  ;;  %p3719_p12 = scmp.lt.s32.totalorder %s3717_s16, %s3710_s11 }
  0x79   : > { %p3720_p7 = por %p3719_p12, %p3718_p4 }
  0x7b   : > { %p3721_p5 = pnand %p3720_p7, %p3714_p8 }
  0x7d   : > { %3724 = shalt.err (!%p3721_p5)
}
  0x7e   : > { %3247 = dma.hbm_to_vmem [thread:$0]  (!%p4098_p13), %s478_s4, 128, %s481_s8, %s470_s20  }
  0x7f   : > { %s2784_s22 = sshll.u32 %s3849_s29, 4  ;;  %s490_s23 = scalar_lea.vmem [#allocation7], %s469_s24 }
  0x80   : > { %s495_s0 = scalar_lea.hbm %s4395_s1, %s2784_s22  ;;  %s497_s21 = sshll.u32 %s490_s23, 4  ;;  %s498_s21 = int_to_ptr.vmem [resolvable:$true] %s497_s21 }
  0x81   : > { %s488_s28 = scalar_lea.sflag [#allocation8], %s487_s18  ;;  %s3738_s27 = scalar_lea.vmem %s498_s21, 16 }
  0x82   : > { %p3739_p9 = scmp.ne.s32.totalorder %s498_s21, %s3738_s27  ;;  %s3866_s11 = smov [#allocation7]  }
  0x83   : > { %s3743_s6 = sshll.u32 %s3866_s11, 4  ;;  %s3744_s6 = int_to_ptr.vmem [resolvable:$false] %s3743_s6 }
  0x84   : > { %p3741_p6 = pnand %p3739_p9, %p3699_p2  ;;  %s3745_s16 = scalar_lea.vmem %s3744_s6, 32 }
  0x85   : > { %p3746_p8 = scmp.lt.s32.totalorder %s498_s21, %s3744_s6  ;;  %p3747_p4 = scmp.lt.s32.totalorder %s3745_s16, %s3738_s27 }
  0x86   : > { %p3742_p5 = pneg %p3741_p6 }
  0x87   : > { %p3748_p12 = por %p3747_p4, %p3746_p8 }
  0x89   : > { %p3749_p7 = pnand %p3748_p12, %p3742_p5 }
  0x8b   : > { %3752 = shalt.err (!%p3749_p7)
}
  0x8c   : > { %3250 = dma.hbm_to_vmem [thread:$0]  (!%p4098_p13), %s495_s0, 16, %s498_s21, %s488_s28  }
  0x8d   : > { %506 = sbr.rel (%p3977_p3) target bundleno = 3528 (0xdc8), region = 72  ;;  %s4122_s4 = sand.u32 (!%p3977_p3), 1, %s3837_s26  }
  0x8e   : > { %s2786_s8 = sshll.u32 (!%p3977_p3), %s4122_s4, 3  ;;  %s509_s23 = scalar_lea.sflag (!%p3977_p3), [#allocation5], %s4122_s4 }
  0x8f   : > { %s4128_s27 = scalar_lea.vmem (!%p3977_p3), [#allocation4], %s2786_s8 }
  0x92   : > { %3804 = dma.done.wait (%p4075_p10), %s509_s23, 128  }
  0x93   : > { %3806 = vsyncadd (%p4075_p10), %s509_s23, 4294967168  ;;  %s517_s0 = sand.u32 1, %s3972_s14   ;;  %s520_s15 = scalar_lea.vmem [#allocation7], %s4122_s4 }
  0x94   : > { %s518_s9 = scalar_lea.sflag [#allocation8], %s517_s0 }
  0x95   : > { %3808 = dma.done.wait (%p4075_p10), %s518_s9, 16  }
  0x96   : > { %3810 = vsyncadd (%p4075_p10), %s518_s9, 4294967280 }
  0x97   : > { %3812 = dma.done.wait (%p68_p1), [#allocation8], 4096  }
  0x98   : > { %3814 = vsyncadd (%p68_p1), [#allocation8], 4294963200 }
  0x99   : > { %3816 = dma.done.wait (%p68_p1), [#allocation11], 8192  }
  0x9a   : > { %3818 = vsyncadd (%p68_p1), [#allocation11], 4294959104 }
  0x9b   : > { %3820 = dma.done.wait (%p68_p1), [#allocation14], 5120  }
  0x9c   : > { %3822 = vsyncadd (%p68_p1), [#allocation14], 4294962176 }
  0x9d   : > { %3824 = dma.done.wait (%p68_p1), [#allocation17], 1024  }
  0x9e   : > { %3826 = vsyncadd (%p68_p1), [#allocation17], 4294966272  ;;  %v3867_v0 = vmov 0   ;;  %v3330_v1 = vld [vmem:[#allocation10 + $0xe4] ss:$16 sps:$4 sm:$0xff]   ;;  %vm3869_vm0 = vmmov 0  }
  0x9f   : > { %844 = vmatprep.mubr.bf16.mxu0 %v3867_v0  ;;  %885 = vmatprep.mubr.bf16.mxu1 %v3867_v0  ;;  %v3332_v2 = vld [vmem:[#allocation10 + $0xe0] ss:$16 sps:$4 sm:$0xff]   ;;  %v3333_v3 = vld [vmem:[#allocation10 + $0xc4] ss:$16 sps:$4 sm:$0xff]   ;;  %v3402_v22 = vld [vmem:[#allocation10 + $0xec] ss:$16 sps:$4 sm:$0xff]  }
  0xa0   : > { %812 = vmatprep.subr.bf16.mxu0 %v3330_v1  ;;  %v3335_v4 = vld [vmem:[#allocation10 + $0xc0] ss:$16 sps:$4 sm:$0xff]   ;;  %v3336_v5 = vld [vmem:[#allocation10 + $0xa4] ss:$16 sps:$4 sm:$0xff]   ;;  %v3404_v23 = vld [vmem:[#allocation10 + $0xe8] ss:$16 sps:$4 sm:$0xff]   ;;  %853 = vmatprep.subr.bf16.mxu1 %v3402_v22 }
  0xa1   : > { %813 = vmatpush1.bf16.msra.mxu0 %v3332_v2  ;;  %v3338_v6 = vld [vmem:[#allocation10 + $0xa0] ss:$16 sps:$4 sm:$0xff]   ;;  %v3339_v7 = vld [vmem:[#allocation10 + $0x84] ss:$16 sps:$4 sm:$0xff]   ;;  %v3405_v24 = vld [vmem:[#allocation10 + $0xcc] ss:$16 sps:$4 sm:$0xff]   ;;  %854 = vmatpush1.bf16.msra.mxu1 %v3404_v23 }
  0xa2   : > { %814 = vmatprep.subr.bf16.mxu0 %v3333_v3  ;;  %v3341_v8 = vld [vmem:[#allocation10 + $0x80] ss:$16 sps:$4 sm:$0xff]   ;;  %v3342_v9 = vld [vmem:[#allocation10 + $0x64] ss:$16 sps:$4 sm:$0xff]   ;;  %v3407_v27 = vld [vmem:[#allocation10 + $0xc8] ss:$16 sps:$4 sm:$0xff]   ;;  %855 = vmatprep.subr.bf16.mxu1 %v3405_v24 }
  0xa3   : > { %v3344_v10 = vld [vmem:[#allocation10 + $0x60] ss:$16 sps:$4 sm:$0xff]   ;;  %v3345_v11 = vld [vmem:[#allocation10 + $0x44] ss:$16 sps:$4 sm:$0xff]   ;;  %v3408_v28 = vld [vmem:[#allocation10 + $0xac] ss:$16 sps:$4 sm:$0xff]  }
  0xa4   : > { %v3347_v12 = vld [vmem:[#allocation10 + $0x40] ss:$16 sps:$4 sm:$0xff]   ;;  %v3348_v13 = vld [vmem:[#allocation10 + $0x24] ss:$16 sps:$4 sm:$0xff]   ;;  %v3410_v31 = vld [vmem:[#allocation10 + $0xa8] ss:$16 sps:$4 sm:$0xff]  }
  0xa5   : > { %815 = vmatpush1.bf16.msra.mxu0 %v3335_v4  ;;  %v3350_v14 = vld [vmem:[#allocation10 + $0x20] ss:$16 sps:$4 sm:$0xff]   ;;  %v3351_v15 = vld [vmem:[#allocation10 + $0x4] ss:$16 sps:$4 sm:$0xff]   ;;  %856 = vmatpush1.bf16.msra.mxu1 %v3407_v27  ;;  %v3411_v32 = vld [vmem:[#allocation10 + $0x8c] ss:$16 sps:$4 sm:$0xff]  }
  0xa6   : > { %816 = vmatprep.subr.bf16.mxu0 %v3336_v5  ;;  %v3353_v16 = vld [vmem:[#allocation10] ss:$16 sps:$4 sm:$0xff]   ;;  %v3356_v18 = vld [vmem:[#allocation12 + $0xe4] ss:$16 sps:$4 sm:$0xff]   ;;  %857 = vmatprep.subr.bf16.mxu1 %v3408_v28  ;;  %v3413_v35 = vld [vmem:[#allocation10 + $0x88] ss:$16 sps:$4 sm:$0xff]  }
  0xa7   : > { %v596_v17 = vld [vmem:[%s4128_s27] sm:$0xff]  ;;  %vm1595_vm1 = vcmask 1043456   ;;  %vm1579_vm2 = vcmask 64512   ;;  %s4443_s12 = sld [smem:[#allocation27_spill]]  ;;  %s590_s23 = scalar_lea.vmem [#allocation18], %s2786_s8 }
  0xa8   : > { %v4159_v19 = vpack.c.bf16 %v596_v17, %v596_v17  ;;  %v3354_v20 = vld [vmem:[#allocation12 + $0xe0] ss:$16 sps:$4 sm:$0xff]   ;;  %v3359_v21 = vld [vmem:[#allocation12 + $0xc4] ss:$16 sps:$4 sm:$0xff]   ;;  %v3414_v36 = vld [vmem:[#allocation10 + $0x6c] ss:$16 sps:$4 sm:$0xff]  }
  0xa9   : > { %817 = vmatpush1.bf16.msra.mxu0 %v3338_v6  ;;  %v3357_v25 = vld [vmem:[#allocation12 + $0xc0] ss:$16 sps:$4 sm:$0xff]   ;;  %v3362_v26 = vld [vmem:[#allocation12 + $0xa4] ss:$16 sps:$4 sm:$0xff]   ;;  %858 = vmatpush1.bf16.msra.mxu1 %v3410_v31  ;;  %v3416_v40 = vld [vmem:[#allocation10 + $0x68] ss:$16 sps:$4 sm:$0xff]  }
  0xaa   : > { %818 = vmatprep.subr.bf16.mxu0 %v3339_v7  ;;  %v3360_v29 = vld [vmem:[#allocation12 + $0xa0] ss:$16 sps:$4 sm:$0xff]   ;;  %v3365_v30 = vld [vmem:[#allocation12 + $0x84] ss:$16 sps:$4 sm:$0xff]   ;;  %859 = vmatprep.subr.bf16.mxu1 %v3411_v32  ;;  %v3417_v41 = vld [vmem:[#allocation10 + $0x4c] ss:$16 sps:$4 sm:$0xff]  }
  0xab   : > { %v3363_v33 = vld [vmem:[#allocation12 + $0x80] ss:$16 sps:$4 sm:$0xff]   ;;  %v3368_v34 = vld [vmem:[#allocation12 + $0x64] ss:$16 sps:$4 sm:$0xff]   ;;  %v3419_v43 = vld [vmem:[#allocation10 + $0x48] ss:$16 sps:$4 sm:$0xff]  }
  0xac   : > { %v3366_v37 = vld [vmem:[#allocation12 + $0x60] ss:$16 sps:$4 sm:$0xff]   ;;  %v3371_v38 = vld [vmem:[#allocation12 + $0x44] ss:$16 sps:$4 sm:$0xff]   ;;  %v3420_v44 = vld [vmem:[#allocation10 + $0x2c] ss:$16 sps:$4 sm:$0xff]  }
  0xad   : > { %819 = vmatpush1.bf16.msra.mxu0 %v3341_v8  ;;  %v3369_v39 = vld [vmem:[#allocation12 + $0x40] ss:$16 sps:$4 sm:$0xff]   ;;  %860 = vmatpush1.bf16.msra.mxu1 %v3413_v35  ;;  %v3374_v42 = vld [vmem:[#allocation12 + $0x24] ss:$16 sps:$4 sm:$0xff]   ;;  %v3422_v47 = vld [vmem:[#allocation10 + $0x28] ss:$16 sps:$4 sm:$0xff]  }
  0xae   : > { %820 = vmatprep.subr.bf16.mxu0 %v3342_v9  ;;  %861 = vmatprep.subr.bf16.mxu1 %v3414_v36  ;;  %v3372_v45 = vld [vmem:[#allocation12 + $0x20] ss:$16 sps:$4 sm:$0xff]   ;;  %v3377_v46 = vld [vmem:[#allocation12 + $0x4] ss:$16 sps:$4 sm:$0xff]   ;;  %v3423_v48 = vld [vmem:[#allocation10 + $0xc] ss:$16 sps:$4 sm:$0xff]  }
  0xaf   : > { %v3375_v49 = vld [vmem:[#allocation12] ss:$16 sps:$4 sm:$0xff]   ;;  %v3380_v50 = vld [vmem:[#allocation9 + $0xe4] ss:$16 sps:$4 sm:$0xff]   ;;  %v3425_v51 = vld [vmem:[#allocation10 + $0x8] ss:$16 sps:$4 sm:$0xff]  }
  0xb0   : > { %v3428_v52 = vld [vmem:[#allocation12 + $0xec] ss:$16 sps:$4 sm:$0xff]   ;;  %v3378_v53 = vld [vmem:[#allocation9 + $0xe0] ss:$16 sps:$4 sm:$0xff]   ;;  %v3383_v54 = vld [vmem:[#allocation9 + $0xc4] ss:$16 sps:$4 sm:$0xff]  }
  0xb1   : > { %821 = vmatpush1.bf16.msra.mxu0 %v3344_v10  ;;  %862 = vmatpush1.bf16.msra.mxu1 %v3416_v40  ;;  %v3426_v55 = vld [vmem:[#allocation12 + $0xe8] ss:$16 sps:$4 sm:$0xff]   ;;  %v3431_v56 = vld [vmem:[#allocation12 + $0xcc] ss:$16 sps:$4 sm:$0xff]   ;;  %v3381_v57 = vld [vmem:[#allocation9 + $0xc0] ss:$16 sps:$4 sm:$0xff]  }
  0xb2   : > { %822 = vmatprep.subr.bf16.mxu0 %v3345_v11  ;;  %863 = vmatprep.subr.bf16.mxu1 %v3417_v41  ;;  %v3386_v58 = vld [vmem:[#allocation9 + $0xa4] ss:$16 sps:$4 sm:$0xff]   ;;  %v3429_v59 = vld [vmem:[#allocation12 + $0xc8] ss:$16 sps:$4 sm:$0xff]   ;;  %v3434_v60 = vld [vmem:[#allocation12 + $0xac] ss:$16 sps:$4 sm:$0xff]  }
  0xb3   : > { %v3384_v61 = vld [vmem:[#allocation9 + $0xa0] ss:$16 sps:$4 sm:$0xff]   ;;  %v3389_v62 = vld [vmem:[#allocation9 + $0x84] ss:$16 sps:$4 sm:$0xff]   ;;  %v3432_v63 = vld [vmem:[#allocation12 + $0xa8] ss:$16 sps:$4 sm:$0xff]  }
  0xb4   : > { %v3437_v1 = vld [vmem:[#allocation12 + $0x8c] ss:$16 sps:$4 sm:$0xff]   ;;  %v3387_v2 = vld [vmem:[#allocation9 + $0x80] ss:$16 sps:$4 sm:$0xff]   ;;  %v3392_v3 = vld [vmem:[#allocation9 + $0x64] ss:$16 sps:$4 sm:$0xff]  }
  0xb5   : > { %823 = vmatpush1.bf16.msra.mxu0 %v3347_v12  ;;  %864 = vmatpush1.bf16.msra.mxu1 %v3419_v43  ;;  %v3435_v4 = vld [vmem:[#allocation12 + $0x88] ss:$16 sps:$4 sm:$0xff]   ;;  %v3440_v5 = vld [vmem:[#allocation12 + $0x6c] ss:$16 sps:$4 sm:$0xff]   ;;  %v3390_v6 = vld [vmem:[#allocation9 + $0x60] ss:$16 sps:$4 sm:$0xff]  }
  0xb6   : > { %824 = vmatprep.subr.bf16.mxu0 %v3348_v13  ;;  %865 = vmatprep.subr.bf16.mxu1 %v3420_v44  ;;  %v3395_v7 = vld [vmem:[#allocation9 + $0x44] ss:$16 sps:$4 sm:$0xff]   ;;  %v3438_v8 = vld [vmem:[#allocation12 + $0x68] ss:$16 sps:$4 sm:$0xff]   ;;  %v3393_v9 = vld [vmem:[#allocation9 + $0x40] ss:$16 sps:$4 sm:$0xff]  }
  0xb7   : > { %v3398_v10 = vld [vmem:[#allocation9 + $0x24] ss:$16 sps:$4 sm:$0xff]   ;;  %v3396_v11 = vld [vmem:[#allocation9 + $0x20] ss:$16 sps:$4 sm:$0xff]   ;;  %v3444_v17 = vld [vmem:[#allocation12 + $0x28] ss:$16 sps:$4 sm:$0xff]  }
  0xb8   : > { %v3401_v12 = vld [vmem:[#allocation9 + $0x4] ss:$16 sps:$4 sm:$0xff]   ;;  %v3399_v13 = vld [vmem:[#allocation9] ss:$16 sps:$4 sm:$0xff]   ;;  %v3452_v22 = vld [vmem:[#allocation9 + $0xec] ss:$16 sps:$4 sm:$0xff]  }
  0xb9   : > { %825 = vmatpush1.bf16.msra.mxu0 %v3350_v14  ;;  %866 = vmatpush1.bf16.msra.mxu1 %v3422_v47  ;;  %v3443_v14 = vld [vmem:[#allocation12 + $0x4c] ss:$16 sps:$4 sm:$0xff]   ;;  %v3450_v23 = vld [vmem:[#allocation9 + $0xe8] ss:$16 sps:$4 sm:$0xff]   ;;  %s4444_s6 = sld [smem:[#allocation37_spill]]  ;;  %s2950_s16 = sshll.u32 %s4443_s12, 7 }
  0xba   : > { %826 = vmatprep.subr.bf16.mxu0 %v3351_v15  ;;  %867 = vmatprep.subr.bf16.mxu1 %v3423_v48  ;;  %v3441_v15 = vld [vmem:[#allocation12 + $0x48] ss:$16 sps:$4 sm:$0xff]   ;;  %v3455_v24 = vld [vmem:[#allocation9 + $0xcc] ss:$16 sps:$4 sm:$0xff]   ;;  %s2600_s17 = scalar_lea.sflag [#allocation6], %s4122_s4  ;;  %s3870_s8 = smov [#allocation18]  }
  0xbb   : > { %v3456_v27 = vld [vmem:[#allocation9 + $0xa8] ss:$16 sps:$4 sm:$0xff]   ;;  %v3461_v28 = vld [vmem:[#allocation9 + $0x8c] ss:$16 sps:$4 sm:$0xff]   ;;  %s3757_s24 = sshll.u32 %s3870_s8, 4  ;;  %s3758_s24 = int_to_ptr.vmem [resolvable:$false] %s3757_s24 }
  0xbc   : > { %v3462_v31 = vld [vmem:[#allocation9 + $0x68] ss:$16 sps:$4 sm:$0xff]   ;;  %v3467_v32 = vld [vmem:[#allocation9 + $0x4c] ss:$16 sps:$4 sm:$0xff]   ;;  %s3759_s18 = scalar_lea.vmem %s3758_s24, 256 }
  0xbd   : > { %827 = vmatpush1.bf16.msra.mxu0 %v3353_v16  ;;  %868 = vmatpush1.bf16.msra.mxu1 %v3425_v51  ;;  %v3446_v16 = vld [vmem:[#allocation12 + $0x2c] ss:$16 sps:$4 sm:$0xff]   ;;  %v3471_v36 = vld [vmem:[#allocation9 + $0x8] ss:$16 sps:$4 sm:$0xff]  }
  0xbe   : > { %1108 = vmatprep.subr.bf16.mxu0 %v3356_v18  ;;  %1149 = vmatprep.subr.bf16.mxu1 %v3428_v52  ;;  %v3449_v18 = vld [vmem:[#allocation12 + $0xc] ss:$16 sps:$4 sm:$0xff]  }
  0xbf   : > { %v3473_v35 = vld [vmem:[#allocation9 + $0xc] ss:$16 sps:$4 sm:$0xff]  }
  0xc0   : > { %845 = vmatmul.mubr.bf16.vlgmr.msra.gmra.mxu0 %v4159_v19  ;;  %886 = vmatmul.mubr.bf16.vlgmr.msra.gmra.mxu1 %v4159_v19  ;;  %v4183_v40 = vld [vmem:[%s4399_s5] sm:$0xf] }
  0xc1   : > { %1109 = vmatpush1.bf16.msra.mxu0 %v3354_v20  ;;  %1140 = vmatprep.mubr.bf16.mxu0 %v3867_v0  ;;  %v3447_v20 = vld [vmem:[#allocation12 + $0x8] ss:$16 sps:$4 sm:$0xff]   ;;  %v4192_v51 = vld [vmem:[%s4401_s7] sm:$0xf] }
  0xc2   : > { %1110 = vmatprep.subr.bf16.mxu0 %v3359_v21  ;;  %1150 = vmatpush1.bf16.msra.mxu1 %v3426_v55  ;;  %v3868_v21 = vmov 0.0  }
  0xc3   : > { %1181 = vmatprep.mubr.bf16.mxu1 %v3867_v0  ;;  %1151 = vmatprep.subr.bf16.mxu1 %v3431_v56 }
  0xc5   : > { %1111 = vmatpush1.bf16.msra.mxu0 %v3357_v25  ;;  %v3453_v25 = vld [vmem:[#allocation9 + $0xc8] ss:$16 sps:$4 sm:$0xff]  }
  0xc6   : > { %1112 = vmatprep.subr.bf16.mxu0 %v3362_v26  ;;  %1152 = vmatpush1.bf16.msra.mxu1 %v3429_v59  ;;  %v3458_v26 = vld [vmem:[#allocation9 + $0xac] ss:$16 sps:$4 sm:$0xff]  }
  0xc7   : > { %1153 = vmatprep.subr.bf16.mxu1 %v3434_v60 }
  0xc9   : > { %1113 = vmatpush1.bf16.msra.mxu0 %v3360_v29  ;;  %v3459_v29 = vld [vmem:[#allocation9 + $0x88] ss:$16 sps:$4 sm:$0xff]  }
  0xca   : > { %1114 = vmatprep.subr.bf16.mxu0 %v3365_v30  ;;  %1154 = vmatpush1.bf16.msra.mxu1 %v3432_v63  ;;  %v3464_v30 = vld [vmem:[#allocation9 + $0x6c] ss:$16 sps:$4 sm:$0xff]  }
  0xcb   : > { %1155 = vmatprep.subr.bf16.mxu1 %v3437_v1  ;;  %v4201_v63 = vld [vmem:[%s4397_s3] sm:$0xf] }
  0xcd   : > { %1115 = vmatpush1.bf16.msra.mxu0 %v3363_v33  ;;  %v3465_v33 = vld [vmem:[#allocation9 + $0x48] ss:$16 sps:$4 sm:$0xff]  }
  0xce   : > { %1116 = vmatprep.subr.bf16.mxu0 %v3368_v34  ;;  %1156 = vmatpush1.bf16.msra.mxu1 %v3435_v4  ;;  %v3470_v34 = vld [vmem:[#allocation9 + $0x2c] ss:$16 sps:$4 sm:$0xff]  }
  0xcf   : > { %1157 = vmatprep.subr.bf16.mxu1 %v3440_v5 }
  0xd1   : > { %1117 = vmatpush1.bf16.msra.mxu0 %v3366_v37  ;;  %v632_v37 = vlaneseq }
  0xd2   : > { %1118 = vmatprep.subr.bf16.mxu0 %v3371_v38  ;;  %1158 = vmatpush1.bf16.msra.mxu1 %v3438_v8 }
  0xd3   : > { %1159 = vmatprep.subr.bf16.mxu1 %v3443_v14  ;;  %v4177_v38 = vshrl.u32 %v632_v37, 7 }
  0xd5   : > { %1119 = vmatpush1.bf16.msra.mxu0 %v3369_v39  ;;  %v634_v39 = vsub.s32 0, %v4177_v38  ;;  %v638_v41 = vsub.s32 1, %v4177_v38 }
  0xd6   : > { %1120 = vmatprep.subr.bf16.mxu0 %v3374_v42  ;;  %1160 = vmatpush1.bf16.msra.mxu1 %v3441_v15 }
  0xd7   : > { %1161 = vmatprep.subr.bf16.mxu1 %v3446_v16  ;;  %v639_v42 = vrot.slane %v4183_v40, %v638_v41  ;;  %v931_v52 = vrot.slane %v4192_v51, %v634_v39  ;;  %v1267_v1 = vrot.slane %v4201_v63, %v634_v39 }
  0xd9   : > { %1121 = vmatpush1.bf16.msra.mxu0 %v3372_v45 }
  0xda   : > { %1122 = vmatprep.subr.bf16.mxu0 %v3377_v46  ;;  %1162 = vmatpush1.bf16.msra.mxu1 %v3444_v17 }
  0xdb   : > { %1163 = vmatprep.subr.bf16.mxu1 %v3449_v18 }
  0xdd   : > { %1123 = vmatpush1.bf16.msra.mxu0 %v3375_v49 }
  0xde   : > { %1444 = vmatprep.subr.bf16.mxu0 %v3380_v50  ;;  %1164 = vmatpush1.bf16.msra.mxu1 %v3447_v20 }
  0xdf   : > { %1485 = vmatprep.subr.bf16.mxu1 %v3452_v22 }
  0xe0   : > { %1141 = vmatmul.mubr.bf16.vlgmr.msra.gmra.mxu0 %v4159_v19 }
  0xe1   : > { %1445 = vmatpush1.bf16.msra.mxu0 %v3378_v53  ;;  %1476 = vmatprep.mubr.bf16.mxu0 %v3867_v0  ;;  %v935_v53 = vrot.slane %v4192_v51, %v638_v41 }
  0xe2   : > { %1446 = vmatprep.subr.bf16.mxu0 %v3383_v54  ;;  %1182 = vmatmul.mubr.bf16.vlgmr.msra.gmra.mxu1 %v4159_v19 }
  0xe3   : > { %1486 = vmatpush1.bf16.msra.mxu1 %v3450_v23  ;;  %1517 = vmatprep.mubr.bf16.mxu1 %v3867_v0  ;;  %v3468_v0 = vld [vmem:[#allocation9 + $0x28] ss:$16 sps:$4 sm:$0xff]  }
  0xe4   : > { %1487 = vmatprep.subr.bf16.mxu1 %v3455_v24 }
  0xe5   : > { %1447 = vmatpush1.bf16.msra.mxu0 %v3381_v57 }
  0xe6   : > { %1448 = vmatprep.subr.bf16.mxu0 %v3386_v58 }
  0xe7   : > { %1488 = vmatpush1.bf16.msra.mxu1 %v3453_v25 }
  0xe8   : > { %1489 = vmatprep.subr.bf16.mxu1 %v3458_v26 }
  0xe9   : > { %1449 = vmatpush1.bf16.msra.mxu0 %v3384_v61 }
  0xea   : > { %1450 = vmatprep.subr.bf16.mxu0 %v3389_v62 }
  0xeb   : > { %1490 = vmatpush1.bf16.msra.mxu1 %v3456_v27 }
  0xec   : > { %1491 = vmatprep.subr.bf16.mxu1 %v3461_v28 }
  0xed   : > { %1451 = vmatpush1.bf16.msra.mxu0 %v3387_v2  ;;  %v1271_v2 = vrot.slane %v4201_v63, %v638_v41 }
  0xee   : > { %1452 = vmatprep.subr.bf16.mxu0 %v3392_v3 }
  0xef   : > { %1492 = vmatpush1.bf16.msra.mxu1 %v3459_v29 }
  0xf0   : > { %1493 = vmatprep.subr.bf16.mxu1 %v3464_v30 }
  0xf1   : > { %1453 = vmatpush1.bf16.msra.mxu0 %v3390_v6 }
  0xf2   : > { %1454 = vmatprep.subr.bf16.mxu0 %v3395_v7 }
  0xf3   : > { %1494 = vmatpush1.bf16.msra.mxu1 %v3462_v31 }
  0xf4   : > { %1495 = vmatprep.subr.bf16.mxu1 %v3467_v32 }
  0xf5   : > { %1455 = vmatpush1.bf16.msra.mxu0 %v3393_v9 }
  0xf6   : > { %1456 = vmatprep.subr.bf16.mxu0 %v3398_v10 }
  0xf7   : > { %1496 = vmatpush1.bf16.msra.mxu1 %v3465_v33 }
  0xf8   : > { %1497 = vmatprep.subr.bf16.mxu1 %v3470_v34 }
  0xf9   : > { %1457 = vmatpush1.bf16.msra.mxu0 %v3396_v11 }
  0xfa   : > { %1458 = vmatprep.subr.bf16.mxu0 %v3401_v12  ;;  %v4211_v12 = vld [vmem:[%s520_s15] ss:$0 sm:$0xff]  ;;  %s4445_s15 = sld [smem:[#allocation38_spill]] }
  0xfb   : > { %1498 = vmatpush1.bf16.msra.mxu1 %v3468_v0 }
  0xfc   : > { %1499 = vmatprep.subr.bf16.mxu1 %v3473_v35 }
  0xfd   : > { %1459 = vmatpush1.bf16.msra.mxu0 %v3399_v13 }
  0xfe   : > { %3027 = vmatprep.subr.bf16.mxu0 %v3868_v21 }
  0xff   : > { %1500 = vmatpush1.bf16.msra.mxu1 %v3471_v36 }
 0x100   : > { %1477 = vmatmul.mubr.bf16.vlgmr.msra.gmra.mxu0 %v4159_v19  ;;  %3045 = vmatprep.subr.bf16.mxu1 %v3868_v21  ;;  %s4346_s14 = scalar_lea.hbm %s4445_s15, %s2950_s16 }
 0x101   : > { %3029 = vmatprep.mubr.msk.bf16.mxu0 %vm3869_vm0, %v3868_v21 }
 0x102   : > { %1518 = vmatmul.mubr.bf16.vlgmr.msra.gmra.mxu1 %v4159_v19  ;;  %v635_v19 = vrot.slane %v4183_v40, %v634_v39 }
 0x103   : > { %3047 = vmatprep.mubr.msk.bf16.mxu1 %vm3869_vm0, %v3868_v21 }
 0x180   : > { %v846_v43 = vpop.f32.mrf.mxu0 }
 0x181   : > { %v847_v44 = vadd.f32 %v846_v43, %v635_v19 }
 0x182   : > { %v848_v45 = vpop.f32.mrf.mxu0 }
 0x183   : > { %v849_v46 = vadd.f32 %v848_v45, %v639_v42 }
 0x184   : > { %v850_v47 = vpop.f32.mrf.mxu0 }
 0x185   : > { %v2953_v48 = vpack.c.bf16 %v849_v46, %v847_v44  ;;  %v642_v47 = vsub.s32 2, %v4177_v38 }
 0x186   : > { %v851_v49 = vpop.f32.mrf.mxu0 }
 0x187   : > { %1206 = vst [vmem:[#allocation2] sm:$0xff] %v2953_v48  ;;  %v887_v48 = vpop.f32.mrf.mxu1  ;;  %v646_v49 = vsub.s32 3, %v4177_v38 }
 0x189   : > { %v943_v38 = vrot.slane %v4192_v51, %v646_v49 }
 0x18e   : > { %v1531_v50 = vld [vmem:[#allocation2] sm:$0xf]  ;;  %v1656_v30 = vld [vmem:[#allocation2 + $0x4] sm:$0xf] }
 0x18f   : > { %3028 = vmatpush3.bf16.xpose.msra.mxu0 %v1531_v50  ;;  %v3482_v50 = vld [vmem:[#allocation13 + $0x78] sm:$0xff]  }
 0x190   : > { %3033 = vmatprep.subr.bf16.mxu0 %v3868_v21 }
 0x1a0   : > { %v1142_v54 = vpop.f32.mrf.mxu0 }
 0x1a1   : > { %v1143_v55 = vadd.f32 %v1142_v54, %v931_v52  ;;  %v643_v52 = vrot.slane %v4183_v40, %v642_v47  ;;  %v889_v54 = vpop.f32.mrf.mxu1 }
 0x1a2   : > { %v1144_v56 = vpop.f32.mrf.mxu0 }
 0x1a3   : > { %v1145_v57 = vadd.f32 %v1144_v56, %v935_v53  ;;  %v647_v53 = vrot.slane %v4183_v40, %v646_v49  ;;  %v888_v56 = vadd.f32 %v887_v48, %v643_v52 }
 0x1a4   : > { %v1146_v58 = vpop.f32.mrf.mxu0 }
 0x1a5   : > { %v2955_v59 = vpack.c.bf16 %v1145_v57, %v1143_v55  ;;  %v3483_v55 = vld [vmem:[#allocation13 + $0x70] sm:$0xff]   ;;  %v890_v57 = vadd.f32 %v889_v54, %v647_v53  ;;  %v891_v58 = vpop.f32.mrf.mxu1 }
 0x1a6   : > { %v1147_v60 = vpop.f32.mrf.mxu0 }
 0x1a7   : > { %1224 = vst [vmem:[#allocation3] sm:$0xff] %v2955_v59  ;;  %v939_v59 = vrot.slane %v4192_v51, %v642_v47  ;;  %v2954_v60 = vpack.c.bf16 %v890_v57, %v888_v56  ;;  %v1279_v51 = vrot.slane %v4201_v63, %v646_v49 }
 0x1a9   : > { %1207 = vst [vmem:[#allocation2 + $0x8] sm:$0xff] %v2954_v60 }
 0x1ae   : > { %v1657_v61 = vld [vmem:[#allocation3 + $0x4] sm:$0xf]  ;;  %v1532_v6 = vld [vmem:[#allocation3] sm:$0xf] }
 0x1af   : > { %v1714_v62 = vsel %vm1595_vm1, %v1657_v61, 0  ;;  %v1597_v10 = vsel %vm1595_vm1, %v1532_v6, 0  ;;  %v892_v61 = vpop.f32.mrf.mxu1 }
 0x1b0   : > { %3046 = vmatpush3.bf16.msra.mxu1 %v1714_v62  ;;  %v3484_v62 = vld [vmem:[#allocation13 + $0x68] sm:$0xff]  }
 0x1b1   : > { %3071 = vmatprep.subr.bf16.mxu1 %v3868_v21  ;;  %v1183_v40 = vpop.f32.mrf.mxu1 }
 0x1c0   : > { %v1478_v3 = vpop.f32.mrf.mxu0 }
 0x1c1   : > { %v1479_v4 = vadd.f32 %v1478_v3, %v1267_v1  ;;  %v1184_v1 = vadd.f32 %v1183_v40, %v939_v59  ;;  %v3485_v3 = vld [vmem:[#allocation13 + $0x60] sm:$0xff]   ;;  %v3491_v40 = vld [vmem:[#allocation13 + $0xb0] sm:$0xff]  }
 0x1c2   : > { %v1480_v5 = vpop.f32.mrf.mxu0 }
 0x1c3   : > { %v1526_v7 = vpack.c.bf16 %v1479_v4, %v1479_v4  ;;  %v1481_v8 = vadd.f32 %v1480_v5, %v1271_v2  ;;  %v1185_v2 = vpop.f32.mrf.mxu1 }
 0x1c4   : > { %v1482_v9 = vpop.f32.mrf.mxu0  ;;  %v1186_v4 = vadd.f32 %v1185_v2, %v943_v38  ;;  %v3490_v38 = vld [vmem:[#allocation13 + $0xb8] sm:$0xff]   ;;  %v3493_v2 = vld [vmem:[#allocation13 + $0xa0] sm:$0xff]  }
 0x1c5   : > { %3030 = vmatmul.mubr.bf16.vlgmr.msra.gmra.mxu0 %v1526_v7  ;;  %v1527_v31 = vpack.c.bf16 %v1481_v8, %v1481_v8  ;;  %v1187_v5 = vpop.f32.mrf.mxu1  ;;  %v1275_v7 = vrot.slane %v4201_v63, %v642_v47  ;;  %v3486_v9 = vld [vmem:[#allocation13 + $0x58] sm:$0xff]  }
 0x1c6   : > { %3034 = vmatpush3.bf16.msra.mxu0 %v1597_v10  ;;  %v1483_v11 = vpop.f32.mrf.mxu0  ;;  %3035 = vmatprep.mubr.msk.bf16.mxu0 %vm3869_vm0, %v3868_v21  ;;  %v2956_v6 = vpack.c.bf16 %v1186_v4, %v1184_v1  ;;  %v3492_v1 = vld [vmem:[#allocation13 + $0xa8] sm:$0xff]   ;;  %v3495_v4 = vld [vmem:[#allocation13 + $0x90] sm:$0xff]  }
 0x1c7   : > { %3039 = vmatprep.subr.bf16.mxu0 %v3868_v21  ;;  %v1188_v8 = vpop.f32.mrf.mxu1  ;;  %v3496_v5 = vld [vmem:[#allocation13 + $0x88] sm:$0xff]  }
 0x1c8   : > { %1225 = vst [vmem:[#allocation3 + $0x8] sm:$0xff] %v2956_v6 }
 0x1c9   : > { %v1519_v10 = vpop.f32.mrf.mxu1 }
 0x1ca   : > { %v4239_v11 = vadd.f32 %v1519_v10, %v1275_v7 }
 0x1cf   : > { %v2158_v10 = vld [vmem:[#allocation3 + $0xc] sm:$0xf] }
 0x285   : > { %v1573_v13 = vpop.f32.mrf.mxu0 }
 0x286   : > { %v1574_v14 = vadd.f32 %v4211_v12, %v1573_v13  ;;  %v1521_v13 = vpop.f32.mrf.mxu1 }
 0x287   : > { %v3031_v15 = vpop.f32.mrf.mxu0 }
 0x288   : > { %v1580_v16 = vsel %vm1579_vm2, %v1574_v14, -inf  ;;  %v4241_v15 = vadd.f32 %v1521_v13, %v1279_v51  ;;  %v2157_v51 = vld [vmem:[#allocation2 + $0xc] sm:$0xf]  ;;  %v2215_v13 = vsel %vm1595_vm1, %v2158_v10, 0 }
 0x289   : > { %1581 = vmax.xlane.f32.xlu0 %v1580_v16  ;;  %v1576_v17 = vpop.f32.mrf.mxu0  ;;  %v1523_v16 = vpop.f32.mrf.mxu1  ;;  %v3518_v10 = vld [vmem:[#allocation16 + $0x18] sm:$0xff]  }
 0x28b   : > { %v3032_v18 = vpop.f32.mrf.mxu0  ;;  %v1524_v17 = vpop.f32.mrf.mxu1 }
 0x28c   : > { %v3488_v18 = vld [vmem:[#allocation13 + $0x48] sm:$0xff]  }
 0x312   : > { %v1582_v20 = vpop.xlane.xlu0 %1581 }
 0x313   : > { %v1583_v22 = vsub.f32 %v1574_v14, %v1582_v20  ;;  %v3487_v14 = vld [vmem:[#allocation13 + $0x50] sm:$0xff]   ;;  %v3489_v20 = vld [vmem:[#allocation13 + $0x40] sm:$0xff]  }
 0x315   : > { %v1584_v23 = vmul.f32 1.442695, %v1583_v22 }
 0x317   : > { %3522 = vpow2.f32 %v1584_v23 }
 0x324   : > { %v3523_v24 = vpop.eup %3522 }
 0x325   : > { %v1586_v25 = vsel %vm1579_vm2, %v3523_v24, 0.0 }
 0x326   : > { %1587 = vadd.xlane.f32.xlu0 %v1586_v25 }
 0x3af   : > { %v1588_v26 = vpop.xlane.xlu0 %1587 }
 0x3b0   : > { %3524 = vrcp.f32 %v1588_v26  ;;  %v3475_v26 = vld [vmem:[#allocation13 + $0x30] sm:$0xff]  }
 0x3bd   : > { %v3525_v27 = vpop.eup %3524 }
 0x3be   : > { %v1590_v28 = vmul.f32 %v3525_v27, %v3523_v24  ;;  %v3474_v24 = vld [vmem:[#allocation13 + $0x38] sm:$0xff]   ;;  %v3476_v27 = vld [vmem:[#allocation13 + $0x28] sm:$0xff]  }
 0x3c0   : > { %v1591_v29 = vpack.c.bf16 %v1590_v28, %v1590_v28  ;;  %v3477_v28 = vld [vmem:[#allocation13 + $0x20] sm:$0xff]  }
 0x3c2   : > { %3036 = vmatmul.mubr.msk.bf16.vlgmr.msra.gmra.mxu0 %vm1579_vm2, %v1591_v29  ;;  %v3478_v29 = vld [vmem:[#allocation13 + $0x18] sm:$0xff]  }
 0x3c3   : > { %3040 = vmatpush3.bf16.xpose.msra.mxu0 %v1656_v30  ;;  %3041 = vmatprep.mubr.msk.bf16.mxu0 %vm3869_vm0, %v3868_v21  ;;  %v3479_v30 = vld [vmem:[#allocation13 + $0x10] sm:$0xff]  }
 0x3c4   : > { %3051 = vmatprep.subr.bf16.mxu0 %v3868_v21 }
 0x3ca   : > { %3042 = vmatmul.mubr.bf16.vlgmr.msra.gmra.mxu0 %v1527_v31  ;;  %v3480_v31 = vld [vmem:[#allocation13 + $0x8] sm:$0xff]  }
 0x3cb   : > { %3067 = vmatprep.mubr.msk.bf16.mxu0 %vm3869_vm0, %v3868_v21  ;;  %3052 = vmatpush3.bf16.msra.mxu0 %v3482_v50 }
 0x3cc   : > { %3053 = vmatprep.subr.bf16.mxu0 %v3868_v21 }
 0x3cf   : > { %3054 = vmatpush3.bf16.msra.mxu0 %v3483_v55 }
 0x3d0   : > { %3055 = vmatprep.subr.bf16.mxu0 %v3868_v21 }
 0x3d3   : > { %3056 = vmatpush3.bf16.msra.mxu0 %v3484_v62 }
 0x3d4   : > { %3057 = vmatprep.subr.bf16.mxu0 %v3868_v21 }
 0x3d7   : > { %3058 = vmatpush3.bf16.msra.mxu0 %v3485_v3  ;;  %v3494_v3 = vld [vmem:[#allocation13 + $0x98] sm:$0xff]  }
 0x3d8   : > { %3059 = vmatprep.subr.bf16.mxu0 %v3868_v21 }
 0x3db   : > { %3060 = vmatpush3.bf16.msra.mxu0 %v3486_v9 }
 0x3dc   : > { %3061 = vmatprep.subr.bf16.mxu0 %v3868_v21 }
 0x3df   : > { %3062 = vmatpush3.bf16.msra.mxu0 %v3487_v14  ;;  %v3497_v14 = vld [vmem:[#allocation13 + $0x80] sm:$0xff]  }
 0x3e0   : > { %3063 = vmatprep.subr.bf16.mxu0 %v3868_v21 }
 0x3e3   : > { %3064 = vmatpush3.bf16.msra.mxu0 %v3488_v18 }
 0x3e4   : > { %3065 = vmatprep.subr.bf16.mxu0 %v3868_v21 }
 0x3e7   : > { %3066 = vmatpush3.bf16.msra.mxu0 %v3489_v20 }
 0x3e8   : > { %3091 = vmatprep.subr.bf16.mxu0 %v3868_v21 }
 0x482   : > { %v4222_v32 = vpop.f32.mrf.mxu0 }
 0x484   : > { %v3037_v33 = vpop.f32.mrf.mxu0 }
 0x485   : > { %v3481_v33 = vld [vmem:[#allocation13] sm:$0xff]  }
 0x486   : > { %v1636_v34 = vpop.f32.mrf.mxu0 }
 0x487   : > { %v1951_v34 = vld [vmem:[#allocation3 + $0x8] sm:$0xf] }
 0x488   : > { %v3038_v0 = vpop.f32.mrf.mxu0 }
 0x489   : > { %v1639_v0 = vpack.c.bf16 %v4222_v32, %v4222_v32 }
 0x48a   : > { %v1692_v35 = vpop.f32.mrf.mxu0 }
 0x48b   : > { %v1693_v36 = vadd.f32 %v4211_v12, %v1692_v35  ;;  %v2008_v35 = vsel %vm1595_vm1, %v1951_v34, 0 }
 0x48c   : > { %v3043_v37 = vpop.f32.mrf.mxu0 }
 0x48d   : > { %v1698_v39 = vsel %vm1579_vm2, %v1693_v36, -inf }
 0x48e   : > { %1699 = vmax.xlane.f32.xlu1 %v1698_v39  ;;  %v1695_v41 = vpop.f32.mrf.mxu0 }
 0x48f   : > { %v1950_v41 = vld [vmem:[#allocation2 + $0x8] sm:$0xf] }
 0x490   : > { %v3044_v19 = vpop.f32.mrf.mxu0 }
 0x517   : > { %v1700_v42 = vpop.xlane.xlu1 %1699 }
 0x518   : > { %v1701_v43 = vsub.f32 %v1693_v36, %v1700_v42  ;;  %v1528_v42 = vpack.c.bf16 %v4239_v11, %v4239_v11  ;;  %v1529_v11 = vpack.c.bf16 %v4241_v15, %v4241_v15 }
 0x51a   : > { %v1702_v44 = vmul.f32 1.442695, %v1701_v43 }
 0x51c   : > { %3526 = vpow2.f32 %v1702_v44 }
 0x529   : > { %v3527_v45 = vpop.eup %3526 }
 0x52a   : > { %v1704_v46 = vsel %vm1579_vm2, %v3527_v45, 0.0 }
 0x52b   : > { %1705 = vadd.xlane.f32.xlu1 %v1704_v46 }
 0x5b4   : > { %v1706_v63 = vpop.xlane.xlu1 %1705 }
 0x5b5   : > { %3528 = vrcp.f32 %v1706_v63 }
 0x5c2   : > { %v3529_v22 = vpop.eup %3528 }
 0x5c3   : > { %v1708_v23 = vmul.f32 %v3529_v22, %v3527_v45 }
 0x5c5   : > { %v1709_v25 = vpack.c.bf16 %v1708_v23, %v1708_v23 }
 0x5c7   : > { %3048 = vmatmul.mubr.msk.bf16.vlgmr.msra.gmra.mxu1 %vm1579_vm2, %v1709_v25 }
 0x5c8   : > { %3072 = vmatpush3.bf16.msra.mxu1 %v3474_v24  ;;  %3087 = vmatprep.mubr.msk.bf16.mxu1 %vm3869_vm0, %v3868_v21 }
 0x5c9   : > { %3073 = vmatprep.subr.bf16.mxu1 %v3868_v21 }
 0x5cc   : > { %3074 = vmatpush3.bf16.msra.mxu1 %v3475_v26 }
 0x5cd   : > { %3075 = vmatprep.subr.bf16.mxu1 %v3868_v21 }
 0x5d0   : > { %3076 = vmatpush3.bf16.msra.mxu1 %v3476_v27 }
 0x5d1   : > { %3077 = vmatprep.subr.bf16.mxu1 %v3868_v21 }
 0x5d4   : > { %3078 = vmatpush3.bf16.msra.mxu1 %v3477_v28 }
 0x5d5   : > { %3079 = vmatprep.subr.bf16.mxu1 %v3868_v21 }
 0x5d8   : > { %3080 = vmatpush3.bf16.msra.mxu1 %v3478_v29 }
 0x5d9   : > { %3081 = vmatprep.subr.bf16.mxu1 %v3868_v21 }
 0x5dc   : > { %3082 = vmatpush3.bf16.msra.mxu1 %v3479_v30 }
 0x5dd   : > { %3083 = vmatprep.subr.bf16.mxu1 %v3868_v21 }
 0x5e0   : > { %3084 = vmatpush3.bf16.msra.mxu1 %v3480_v31 }
 0x5e1   : > { %3085 = vmatprep.subr.bf16.mxu1 %v3868_v21 }
 0x5e4   : > { %3086 = vmatpush3.bf16.msra.mxu1 %v3481_v33 }
 0x5e5   : > { %3097 = vmatprep.subr.bf16.mxu1 %v3868_v21 }
 0x5e7   : > { %3088 = vmatmul.mubr.bf16.vlgmr.msra.gmra.mxu1 %v1639_v0 }
 0x5e8   : > { %3098 = vmatpush3.bf16.msra.mxu1 %v2008_v35  ;;  %3099 = vmatprep.mubr.msk.bf16.mxu1 %vm3869_vm0, %v3868_v21 }
 0x5e9   : > { %3123 = vmatprep.subr.bf16.mxu1 %v3868_v21 }
 0x687   : > { %v1750_v36 = vpop.f32.mrf.mxu1 }
 0x688   : > { %v1756_v37 = vpack.c.bf16 %v1750_v36, %v1750_v36 }
 0x689   : > { %v3049_v39 = vpop.f32.mrf.mxu1 }
 0x68a   : > { %3068 = vmatmul.mubr.bf16.vlgmr.msra.gmra.mxu0 %v1756_v37 }
 0x68b   : > { %3092 = vmatpush3.bf16.xpose.msra.mxu0 %v1950_v41  ;;  %v1753_v19 = vpop.f32.mrf.mxu1  ;;  %3093 = vmatprep.mubr.msk.bf16.mxu0 %vm3869_vm0, %v3868_v21 }
 0x68c   : > { %3103 = vmatprep.subr.bf16.mxu0 %v3868_v21  ;;  %v3498_v19 = vld [vmem:[#allocation13 + $0xf8] sm:$0xff]  }
 0x68d   : > { %v3050_v32 = vpop.f32.mrf.mxu1 }
 0x692   : > { %3094 = vmatmul.mubr.bf16.vlgmr.msra.gmra.mxu0 %v1528_v42  ;;  %v3499_v42 = vld [vmem:[#allocation13 + $0xf0] sm:$0xff]  }
 0x693   : > { %3119 = vmatprep.mubr.msk.bf16.mxu0 %vm3869_vm0, %v3868_v21  ;;  %3104 = vmatpush3.bf16.msra.mxu0 %v3490_v38  ;;  %v3514_v38 = vld [vmem:[#allocation16 + $0x38] sm:$0xff]  }
 0x694   : > { %3105 = vmatprep.subr.bf16.mxu0 %v3868_v21 }
 0x697   : > { %3106 = vmatpush3.bf16.msra.mxu0 %v3491_v40  ;;  %v3515_v40 = vld [vmem:[#allocation16 + $0x30] sm:$0xff]  }
 0x698   : > { %3107 = vmatprep.subr.bf16.mxu0 %v3868_v21 }
 0x69b   : > { %3108 = vmatpush3.bf16.msra.mxu0 %v3492_v1 }
 0x69c   : > { %3109 = vmatprep.subr.bf16.mxu0 %v3868_v21 }
 0x69f   : > { %3110 = vmatpush3.bf16.msra.mxu0 %v3493_v2 }
 0x6a0   : > { %3111 = vmatprep.subr.bf16.mxu0 %v3868_v21 }
 0x6a3   : > { %3112 = vmatpush3.bf16.msra.mxu0 %v3494_v3 }
 0x6a4   : > { %3113 = vmatprep.subr.bf16.mxu0 %v3868_v21 }
 0x6a7   : > { %v4271_v43 = vpop.f32.mrf.mxu1  ;;  %3114 = vmatpush3.bf16.msra.mxu0 %v3495_v4  ;;  %v3540_v4 = vld [vmem:[%s4128_s27] sm:$0xff]  ;;  %s2614_s27 = sshll.u32 %s590_s23, 4  ;;  %s4348_s27 = int_to_ptr.vmem [resolvable:$true] %s2614_s27 }
 0x6a8   : > { %3115 = vmatprep.subr.bf16.mxu0 %v3868_v21  ;;  %s3753_s21 = scalar_lea.vmem %s4348_s27, 128  ;;  %p3760_p13 = scmp.lt.s32.totalorder %s4348_s27, %s3758_s24 }
 0x6a9   : > { %v3089_v44 = vpop.f32.mrf.mxu1  ;;  %p3754_p1 = scmp.ne.s32.totalorder %s4348_s27, %s3753_s21  ;;  %p3761_p2 = scmp.lt.s32.totalorder %s3759_s18, %s3753_s21 }
 0x6aa   : > { %v3501_v44 = vld [vmem:[#allocation13 + $0xe0] sm:$0xff]  }
 0x6ab   : > { %v1947_v45 = vpop.f32.mrf.mxu1  ;;  %3116 = vmatpush3.bf16.msra.mxu0 %v3496_v5  ;;  %p3755_p3 = pnand %p3754_p1, %p4079_p11  ;;  %p3762_p9 = por %p3761_p2, %p3760_p13 }
 0x6ac   : > { %3117 = vmatprep.subr.bf16.mxu0 %v3868_v21  ;;  %v3502_v45 = vld [vmem:[#allocation13 + $0xd8] sm:$0xff]  }
 0x6ad   : > { %v3090_v46 = vpop.f32.mrf.mxu1  ;;  %p3756_p10 = pneg %p3755_p3 }
 0x6ae   : > { %v3503_v46 = vld [vmem:[#allocation13 + $0xd0] sm:$0xff]  }
 0x6af   : > { %3118 = vmatpush3.bf16.msra.mxu0 %v3497_v14  ;;  %v3521_v14 = vld [vmem:[#allocation16] sm:$0xff]   ;;  %p3763_p6 = pnand %p3762_p9, %p3756_p10 }
 0x6b0   : > { %3155 = vmatprep.subr.bf16.mxu0 %v3868_v21 }
 0x74a   : > { %v4273_v47 = vpop.f32.mrf.mxu0 }
 0x74b   : > { %v1945_v33 = vadd.f32 %v4271_v43, %v4273_v47  ;;  %v3500_v43 = vld [vmem:[#allocation13 + $0xe8] sm:$0xff]  }
 0x74c   : > { %v3069_v48 = vpop.f32.mrf.mxu0  ;;  %v3504_v47 = vld [vmem:[#allocation13 + $0xc8] sm:$0xff]  }
 0x74d   : > { %v3505_v48 = vld [vmem:[#allocation13 + $0xc0] sm:$0xff]  }
 0x74e   : > { %v1859_v49 = vpop.f32.mrf.mxu0 }
 0x74f   : > { %v3506_v49 = vld [vmem:[#allocation15 + $0x38] sm:$0xff]  }
 0x750   : > { %v3070_v50 = vpop.f32.mrf.mxu0 }
 0x751   : > { %v3507_v50 = vld [vmem:[#allocation15 + $0x30] sm:$0xff]  }
 0x752   : > { %v1986_v52 = vpop.f32.mrf.mxu0 }
 0x753   : > { %v1987_v53 = vadd.f32 %v4211_v12, %v1986_v52  ;;  %v3508_v52 = vld [vmem:[#allocation15 + $0x28] sm:$0xff]  }
 0x754   : > { %v3095_v54 = vpop.f32.mrf.mxu0 }
 0x755   : > { %v1992_v55 = vsel %vm1579_vm2, %v1987_v53, -inf  ;;  %v3510_v54 = vld [vmem:[#allocation15 + $0x18] sm:$0xff]  }
 0x756   : > { %1993 = vmax.xlane.f32.xlu0 %v1992_v55  ;;  %v1989_v56 = vpop.f32.mrf.mxu0  ;;  %v3511_v55 = vld [vmem:[#allocation15 + $0x10] sm:$0xff]  }
 0x758   : > { %v3096_v57 = vpop.f32.mrf.mxu0 }
 0x7df   : > { %v1994_v58 = vpop.xlane.xlu0 %1993 }
 0x7e0   : > { %v1995_v59 = vsub.f32 %v1987_v53, %v1994_v58  ;;  %v3509_v53 = vld [vmem:[#allocation15 + $0x20] sm:$0xff]  }
 0x7e2   : > { %v1996_v60 = vmul.f32 1.442695, %v1995_v59 }
 0x7e4   : > { %3530 = vpow2.f32 %v1996_v60 }
 0x7f1   : > { %v3531_v61 = vpop.eup %3530 }
 0x7f2   : > { %v1998_v62 = vsel %vm1579_vm2, %v3531_v61, 0.0 }
 0x7f3   : > { %1999 = vadd.xlane.f32.xlu1 %v1998_v62  ;;  %v3513_v62 = vld [vmem:[#allocation15] sm:$0xff]  }
 0x87c   : > { %v2000_v6 = vpop.xlane.xlu1 %1999 }
 0x87d   : > { %3532 = vrcp.f32 %v2000_v6 }
 0x88a   : > { %v3533_v7 = vpop.eup %3532 }
 0x88b   : > { %v2002_v8 = vmul.f32 %v3533_v7, %v3531_v61  ;;  %v3512_v61 = vld [vmem:[#allocation15 + $0x8] sm:$0xff]  }
 0x88d   : > { %v2003_v9 = vpack.c.bf16 %v2002_v8, %v2002_v8 }
 0x88f   : > { %3100 = vmatmul.mubr.msk.bf16.vlgmr.msra.gmra.mxu1 %vm1579_vm2, %v2003_v9  ;;  %v3516_v9 = vld [vmem:[#allocation16 + $0x28] sm:$0xff]  }
 0x890   : > { %3124 = vmatpush3.bf16.xpose.msra.mxu1 %v2157_v51  ;;  %3125 = vmatprep.mubr.msk.bf16.mxu1 %vm3869_vm0, %v3868_v21  ;;  %v3517_v51 = vld [vmem:[#allocation16 + $0x20] sm:$0xff]  }
 0x891   : > { %3129 = vmatprep.subr.bf16.mxu1 %v3868_v21 }
 0x897   : > { %3126 = vmatmul.mubr.bf16.vlgmr.msra.gmra.mxu1 %v1529_v11  ;;  %v3519_v11 = vld [vmem:[#allocation16 + $0x10] sm:$0xff]  }
 0x898   : > { %3130 = vmatpush3.bf16.msra.mxu1 %v2215_v13  ;;  %3131 = vmatprep.mubr.msk.bf16.mxu1 %vm3869_vm0, %v3868_v21  ;;  %v3520_v13 = vld [vmem:[#allocation16 + $0x8] sm:$0xff]  }
 0x899   : > { %3135 = vmatprep.subr.bf16.mxu1 %v3868_v21 }
 0x94f   : > { %v2044_v16 = vpop.f32.mrf.mxu1 }
 0x950   : > { %v2050_v17 = vpack.c.bf16 %v2044_v16, %v2044_v16  ;;  %v2932_v16 = vld [vmem:[%s4404_s10] ss:$0 sm:$0xff] }
 0x951   : > { %v3101_v18 = vpop.f32.mrf.mxu1 }
 0x952   : > { %3120 = vmatmul.mubr.bf16.vlgmr.msra.gmra.mxu0 %v2050_v17 }
 0x953   : > { %v2047_v20 = vpop.f32.mrf.mxu1  ;;  %3171 = vmatprep.mubr.msk.bf16.mxu0 %vm3869_vm0, %v3868_v21  ;;  %3156 = vmatpush3.bf16.msra.mxu0 %v3506_v49 }
 0x954   : > { %3157 = vmatprep.subr.bf16.mxu0 %v3868_v21 }
 0x955   : > { %v3102_v15 = vpop.f32.mrf.mxu1 }
 0x957   : > { %v2193_v63 = vpop.f32.mrf.mxu1  ;;  %3158 = vmatpush3.bf16.msra.mxu0 %v3507_v50 }
 0x958   : > { %v2194_v22 = vadd.f32 %v4211_v12, %v2193_v63  ;;  %3159 = vmatprep.subr.bf16.mxu0 %v3868_v21 }
 0x959   : > { %v3127_v23 = vpop.f32.mrf.mxu1 }
 0x95a   : > { %v2199_v24 = vsel %vm1579_vm2, %v2194_v22, -inf }
 0x95b   : > { %2200 = vmax.xlane.f32.xlu0 %v2199_v24  ;;  %v2196_v25 = vpop.f32.mrf.mxu1  ;;  %3160 = vmatpush3.bf16.msra.mxu0 %v3508_v52 }
 0x95c   : > { %3161 = vmatprep.subr.bf16.mxu0 %v3868_v21 }
 0x95d   : > { %v3128_v26 = vpop.f32.mrf.mxu1 }
 0x95f   : > { %3162 = vmatpush3.bf16.msra.mxu0 %v3509_v53 }
 0x960   : > { %3163 = vmatprep.subr.bf16.mxu0 %v3868_v21 }
 0x963   : > { %3164 = vmatpush3.bf16.msra.mxu0 %v3510_v54 }
 0x964   : > { %3165 = vmatprep.subr.bf16.mxu0 %v3868_v21 }
 0x967   : > { %3166 = vmatpush3.bf16.msra.mxu0 %v3511_v55 }
 0x968   : > { %3167 = vmatprep.subr.bf16.mxu0 %v3868_v21 }
 0x96b   : > { %3168 = vmatpush3.bf16.msra.mxu0 %v3512_v61 }
 0x96c   : > { %3169 = vmatprep.subr.bf16.mxu0 %v3868_v21 }
 0x96f   : > { %3170 = vmatpush3.bf16.msra.mxu0 %v3513_v62 }
 0x9e4   : > { %v2201_v27 = vpop.xlane.xlu0 %2200 }
 0x9e5   : > { %v2202_v28 = vsub.f32 %v2194_v22, %v2201_v27  ;;  %v2931_v27 = vld [vmem:[%s4444_s6] ss:$0 sm:$0xff] }
 0x9e7   : > { %v2203_v29 = vmul.f32 1.442695, %v2202_v28 }
 0x9e9   : > { %3534 = vpow2.f32 %v2203_v29 }
 0x9f6   : > { %v3535_v30 = vpop.eup %3534 }
 0x9f7   : > { %v2205_v31 = vsel %vm1579_vm2, %v3535_v30, 0.0 }
 0x9f8   : > { %2206 = vadd.xlane.f32.xlu1 %v2205_v31 }
 0xa12   : > { %v2150_v34 = vpop.f32.mrf.mxu0 }
 0xa13   : > { %v4303_v0 = vadd.f32 %v2150_v34, %v1945_v33 }
 0xa14   : > { %v3121_v12 = vpop.f32.mrf.mxu0 }
 0xa16   : > { %v2153_v35 = vpop.f32.mrf.mxu0 }
 0xa18   : > { %v3122_v36 = vpop.f32.mrf.mxu0 }
 0xa81   : > { %v2207_v37 = vpop.xlane.xlu1 %2206 }
 0xa82   : > { %3536 = vrcp.f32 %v2207_v37 }
 0xa8f   : > { %v3537_v39 = vpop.eup %3536 }
 0xa90   : > { %v2209_v41 = vmul.f32 %v3537_v39, %v3535_v30 }
 0xa92   : > { %v2210_v32 = vpack.c.bf16 %v2209_v41, %v2209_v41 }
 0xa94   : > { %3132 = vmatmul.mubr.msk.bf16.vlgmr.msra.gmra.mxu1 %vm1579_vm2, %v2210_v32 }
 0xa95   : > { %3136 = vmatpush3.bf16.msra.mxu1 %v3498_v19  ;;  %3151 = vmatprep.mubr.msk.bf16.mxu1 %vm3869_vm0, %v3868_v21 }
 0xa96   : > { %3137 = vmatprep.subr.bf16.mxu1 %v3868_v21 }
 0xa99   : > { %3138 = vmatpush3.bf16.msra.mxu1 %v3499_v42 }
 0xa9a   : > { %3139 = vmatprep.subr.bf16.mxu1 %v3868_v21 }
 0xa9d   : > { %3140 = vmatpush3.bf16.msra.mxu1 %v3500_v43 }
 0xa9e   : > { %3141 = vmatprep.subr.bf16.mxu1 %v3868_v21 }
 0xaa1   : > { %3142 = vmatpush3.bf16.msra.mxu1 %v3501_v44 }
 0xaa2   : > { %3143 = vmatprep.subr.bf16.mxu1 %v3868_v21 }
 0xaa5   : > { %3144 = vmatpush3.bf16.msra.mxu1 %v3502_v45 }
 0xaa6   : > { %3145 = vmatprep.subr.bf16.mxu1 %v3868_v21 }
 0xaa9   : > { %3146 = vmatpush3.bf16.msra.mxu1 %v3503_v46 }
 0xaaa   : > { %3147 = vmatprep.subr.bf16.mxu1 %v3868_v21 }
 0xaad   : > { %3148 = vmatpush3.bf16.msra.mxu1 %v3504_v47 }
 0xaae   : > { %3149 = vmatprep.subr.bf16.mxu1 %v3868_v21 }
 0xab1   : > { %3150 = vmatpush3.bf16.msra.mxu1 %v3505_v48 }
 0xab2   : > { %3175 = vmatprep.subr.bf16.mxu1 %v3868_v21 }
 0xb54   : > { %v2251_v56 = vpop.f32.mrf.mxu1 }
 0xb55   : > { %v2257_v57 = vpack.c.bf16 %v2251_v56, %v2251_v56 }
 0xb56   : > { %v3133_v58 = vpop.f32.mrf.mxu1 }
 0xb57   : > { %3152 = vmatmul.mubr.bf16.vlgmr.msra.gmra.mxu1 %v2257_v57 }
 0xb58   : > { %v2254_v59 = vpop.f32.mrf.mxu1  ;;  %3191 = vmatprep.mubr.msk.bf16.mxu1 %vm3869_vm0, %v3868_v21  ;;  %3176 = vmatpush3.bf16.msra.mxu1 %v3514_v38 }
 0xb59   : > { %3177 = vmatprep.subr.bf16.mxu1 %v3868_v21 }
 0xb5a   : > { %v3134_v60 = vpop.f32.mrf.mxu1 }
 0xb5c   : > { %3178 = vmatpush3.bf16.msra.mxu1 %v3515_v40 }
 0xb5d   : > { %3179 = vmatprep.subr.bf16.mxu1 %v3868_v21 }
 0xb60   : > { %3180 = vmatpush3.bf16.msra.mxu1 %v3516_v9 }
 0xb61   : > { %3181 = vmatprep.subr.bf16.mxu1 %v3868_v21 }
 0xb64   : > { %3182 = vmatpush3.bf16.msra.mxu1 %v3517_v51 }
 0xb65   : > { %3183 = vmatprep.subr.bf16.mxu1 %v3868_v21 }
 0xb68   : > { %3184 = vmatpush3.bf16.msra.mxu1 %v3518_v10 }
 0xb69   : > { %3185 = vmatprep.subr.bf16.mxu1 %v3868_v21 }
 0xb6c   : > { %3186 = vmatpush3.bf16.msra.mxu1 %v3519_v11 }
 0xb6d   : > { %3187 = vmatprep.subr.bf16.mxu1 %v3868_v21 }
 0xb70   : > { %3188 = vmatpush3.bf16.msra.mxu1 %v3520_v13 }
 0xb71   : > { %3189 = vmatprep.subr.bf16.mxu1 %v3868_v21 }
 0xb74   : > { %3190 = vmatpush3.bf16.msra.mxu1 %v3521_v14 }
 0xc17   : > { %v2357_v1 = vpop.f32.mrf.mxu1 }
 0xc18   : > { %v2363_v2 = vadd.f32 %v2357_v1, %v4303_v0 }
 0xc19   : > { %v3153_v3 = vpop.f32.mrf.mxu1 }
 0xc1a   : > { %v2364_v5 = vadd.f32 %v3540_v4, %v2363_v2 }
 0xc1b   : > { %v2360_v6 = vpop.f32.mrf.mxu1 }
 0xc1c   : > { %v2365_v7 = vpack.c.bf16 %v2364_v5, %v2364_v5  ;;  %v2373_v28 = vadd.f32 %v2931_v27, %v2364_v5 }
 0xc1d   : > { %v3154_v8 = vpop.f32.mrf.mxu1 }
 0xc1e   : > { %3172 = vmatmul.mubr.bf16.vlgmr.msra.gmra.mxu0 %v2365_v7 }
 0xcde   : > { %v2480_v17 = vpop.f32.mrf.mxu0 }
 0xcdf   : > { %v2481_v18 = vadd.f32 %v2932_v16, %v2480_v17 }
 0xce0   : > { %v3173_v20 = vpop.f32.mrf.mxu0 }
 0xce1   : > { %v2487_v15 = vmul.f32 0.70710677, %v2481_v18  ;;  %v2486_v24 = vmul.f32 0.5, %v2481_v18 }
 0xce2   : > { %v2483_v63 = vpop.f32.mrf.mxu0 }
 0xce3   : > { %3538 = verf.f32 %v2487_v15 }
 0xce4   : > { %v3174_v22 = vpop.f32.mrf.mxu0 }
 0xcf0   : > { %v3539_v23 = vpop.eup %3538 }
 0xcf1   : > { %v2489_v25 = vadd.f32 1.0, %v3539_v23 }
 0xcf3   : > { %v2490_v21 = vmul.f32 %v2489_v25, %v2486_v24 }
 0xcf5   : > { %v2492_v26 = vpack.c.bf16 %v2490_v21, %v2490_v21 }
 0xcf7   : > { %3192 = vmatmul.mubr.bf16.vlgmr.msra.gmra.mxu1 %v2492_v26 }
 0xdb7   : > { %v2591_v29 = vpop.f32.mrf.mxu1 }
 0xdb8   : > { %v2597_v30 = vadd.f32 %v2591_v29, %v2373_v28 }
 0xdb9   : > { %v3193_v31 = vpop.f32.mrf.mxu1 }
 0xdba   : > { %2598 = vst [vmem:[%s590_s23] sm:$0xff] %v2597_v30 }
 0xdbb   : > { %v2594_v33 = vpop.f32.mrf.mxu1 }
 0xdbc   : > { %3766 = shalt.err (!%p3763_p6)
}
 0xdbd   : > { %s3767_s20 = scalar_lea.hbm %s4346_s14, 128  ;;  %s3771_s13 = scalar_lea.hbm %s4445_s15, 256 }
 0xdbe   : > { %p3768_p5 = scmp.ne.s32.totalorder %s4346_s14, %s3767_s20  ;;  %p3772_p12 = scmp.lt.s32.totalorder %s4346_s14, %s4445_s15 }
 0xdbf   : > { %p3773_p7 = scmp.lt.s32.totalorder %s3771_s13, %s3767_s20 }
 0xdc0   : > { %p3769_p8 = pnand %p3768_p5, %p4079_p11 }
 0xdc1   : > { %p3774_p1 = por %p3773_p7, %p3772_p12 }
 0xdc2   : > { %p3770_p4 = pneg %p3769_p8 }
 0xdc4   : > { %p3775_p3 = pnand %p3774_p1, %p3770_p4 }
 0xdc6   : > { %3778 = shalt.err (!%p3775_p3)
}
 0xdc7   : > { %3223 = dma.vmem_to_hbm [thread:$0]  (%p4079_p11), %s4348_s27, 128, %s4346_s14, %s2600_s17   ;;  %v3194_v34 = vpop.f32.mrf.mxu1 }
 0xdc8 PF: > { %s2626_s11 = sand.u32 1, %s3833_s25   ;;  %p4446_p10 = scmp.ge.s32.totalorder %s3853_s30, 2 }
 0xdc9   : > { %s2627_s6 = scalar_lea.sflag [#allocation6], %s2626_s11 }
 0xdca   : > { %p3252_p13 = pnand %p4446_p10, %p4086_p0 }
 0xdcc   : > { %p3253_p2 = pneg %p3252_p13 }
 0xdce   : > { %3828 = dma.done.wait (%p3253_p2), %s2627_s6, 128  }
 0xdcf   : > { %3830 = vsyncadd (%p3253_p2), %s2627_s6, 4294967168  ;;  %s35_s30 = sadd.s32 1, %s3853_s30   ;;  %s4447_s19 = sld [smem:[#allocation26_spill]] }
 0xdd0   : > { %p32_p9 = scmp.ge.s32.totalorder %s35_s30, 4   ;;  %s4448_s27 = sld [smem:[#allocation29_spill]] }
 0xdd1   : > { %s4449_s16 = sld [smem:[#allocation28_spill]]  ;;  %s4450_s25 = smov %s3837_s26 }
 0xdd2   : > { %s4452_s28 = smov %s3849_s29 }
 0xdd3   :  { %34 = sbr.rel (!%p32_p9) target bundleno = 21 (0x15), region = 162 }
 0xdd5   : > { %s4451_s26 = smov %s4447_s19 }
 0xdd7   : > { %s4453_s29 = smov %s4449_s16 }
 0xdd8   :  { %2632 = vsyncpa [#allocation5], 1 }
 0xdd9   :  { %2634 = vsyncpa [#allocation5 + $0x1], 1 }
 0xdda   :  { %2635 = vsyncpa [#allocation8], 1 }
 0xddb   :  { %2637 = vsyncpa [#allocation8 + $0x1], 1 }
 0xddc   :  { %2638 = vsyncpa [#allocation11], 1 }
 0xddd   :  { %2639 = vsyncpa [#allocation14], 1 }
 0xdde   :  { %2640 = vsyncpa [#allocation17], 1 }
 0xddf   :  { %2641 = vsyncpa [#allocation6], 1 }
 0xde0   :  { %2643 = vsyncpa [#allocation6 + $0x1], 1 }

// kernel: tpu_custom_call.1
= control target key start
LH: loop header
LB: loop body
LE: loop exit
PB: predicated region body
PF: predicated region fallthrough
CT: control target
= control target key end

     0   :  { %s4394_s0 = inlined_call_operand.hbm [shape: f32[2,8,128], index: 0, kind: input, shape index: {}]   ;;  %s4395_s1 = inlined_call_operand.hbm [shape: f32[2,1,8], index: 1, kind: input, shape index: {}]   ;;  %s4396_s2 = inlined_call_operand.hbm [shape: bf16[128,512], index: 2, kind: input, shape index: {}]   ;;  %s4397_s3 = inlined_call_operand.vmem [shape: f32[1,512], index: 3, kind: input, shape index: {}]   ;;  %s4398_s4 = inlined_call_operand.hbm [shape: bf16[128,512], index: 4, kind: input, shape index: {}]   ;;  %s4399_s5 = inlined_call_operand.vmem [shape: f32[1,512], index: 5, kind: input, shape index: {}]   ;;  %s4400_s6 = inlined_call_operand.hbm [shape: bf16[128,512], index: 6, kind: input, shape index: {}]   ;;  %s4401_s7 = inlined_call_operand.vmem [shape: f32[1,512], index: 7, kind: input, shape index: {}]   ;;  %s4402_s8 = inlined_call_operand.hbm [shape: bf16[4,128,128], index: 8, kind: input, shape index: {}]   ;;  %s4403_s9 = inlined_call_operand.hbm [shape: bf16[1,128,128], index: 9, kind: input, shape index: {}]   ;;  %s4404_s10 = inlined_call_operand.vmem [shape: f32[1,1,128], index: 10, kind: input, shape index: {}]   ;;  %s4405_s11 = inlined_call_operand.hbm [shape: bf16[1,128,128], index: 11, kind: input, shape index: {}]   ;;  %s4406_s12 = inlined_call_operand.vmem [shape: f32[1,128], index: 12, kind: input, shape index: {}]   ;;  %s4407_s13 = inlined_call_operand.hbm [shape: f32[2,8,128], index: 13, kind: output, shape index: {}]  }
   0x1   :  { %4413 = sst [smem:[#allocation30_spill]] %s4394_s0 }
   0x2   :  { %4414 = sst [smem:[#allocation31_spill]] %s4396_s2 }
   0x3   :  { %4415 = sst [smem:[#allocation32_spill]] %s4398_s4 }
   0x4   :  { %4416 = sst [smem:[#allocation33_spill]] %s4400_s6 }
   0x5   :  { %4417 = sst [smem:[#allocation34_spill]] %s4402_s8 }
   0x6   :  { %4418 = sst [smem:[#allocation35_spill]] %s4403_s9 }
   0x7   :  { %4419 = sst [smem:[#allocation36_spill]] %s4405_s11 }
   0x8   :  { %4420 = sst [smem:[#allocation37_spill]] %s4406_s12 }
   0x9   :  { %4421 = sst [smem:[#allocation38_spill]] %s4407_s13 }
   0xa   :  { %18 = vsyncpa [#allocation5], 0 }
   0xb   :  { %20 = vsyncpa [#allocation5 + $0x1], 0 }
   0xc   :  { %21 = vsyncpa [#allocation8], 0 }
   0xd   :  { %23 = vsyncpa [#allocation8 + $0x1], 0 }
   0xe   :  { %24 = vsyncpa [#allocation11], 0 }
   0xf   :  { %25 = vsyncpa [#allocation14], 0 }
  0x10   :  { %26 = vsyncpa [#allocation17], 0 }
  0x11   :  { %27 = vsyncpa [#allocation6], 0 }
  0x12   :  { %29 = vsyncpa [#allocation6 + $0x1], 0  ;;  %s3941_s25 = smov 0   ;;  %s3943_s26 = smov 0  }
  0x13   :  { %s3945_s27 = smov 0   ;;  %s3947_s28 = smov 0  }
  0x14   :  { %s3949_s29 = smov 0   ;;  %s3951_s30 = smov 0  }
  0x15 LB: > { %4422 = sst [smem:[#allocation26_spill]] %s3841_s27  ;;  %s3972_s14 = sadd.s32 4294967295, %s3853_s30   ;;  %s3853_s30 = sphi %s3951_s30, %s35_s30   ;;  %s3849_s29 = sphi %s3949_s29, %s4453_s29   ;;  %s3845_s28 = sphi %s3947_s28, %s4452_s28   ;;  %s3841_s27 = sphi %s3945_s27, %s4448_s27   ;;  %s3837_s26 = sphi %s3943_s26, %s4451_s26   ;;  %s3833_s25 = sphi %s3941_s25, %s4450_s25  }
  0x16   : > { %4423 = sst [smem:[#allocation27_spill]] %s3845_s28  ;;  %p2774_p0 = scmp.ge.s32.totalorder %s3853_s30, 1 }
  0x17   : > { %p68_p1 = scmp.eq.s32.totalorder %s3972_s14, 0  ;;  %p363_p2 = scmp.lt.s32.totalorder %s3853_s30, 3 }
  0x18   : > { %s3855_s16 = smov [#allocation9]   ;;  %s3856_s19 = smov [#allocation10]  }
  0x19   : > { %p3977_p3 = pnand %p2774_p0, %p363_p2  ;;  %s375_s17 = sshll.u32 %s3855_s16, 4  ;;  %s376_s17 = int_to_ptr.vmem [resolvable:$true] %s375_s17 }
  0x1a   : > { %s391_s20 = sshll.u32 %s3856_s19, 4  ;;  %s3857_s21 = smov [#allocation13]   ;;  %s392_s20 = int_to_ptr.vmem [resolvable:$true] %s391_s20 }
  0x1b   : > { %p3225_p4 = pneg %p3977_p3  ;;  %s423_s22 = sshll.u32 %s3857_s21, 4  ;;  %s424_s22 = int_to_ptr.vmem [resolvable:$true] %s423_s22 }
  0x1c   : > { %s3552_s24 = scalar_lea.vmem %s376_s17, 4096  ;;  %p3560_p11 = scmp.lt.s32.totalorder %s376_s17, %s376_s17 }
  0x1d   : > { %p3986_p6 = pnand %p3225_p4, %p68_p1  ;;  %p3553_p8 = scmp.ne.s32.totalorder %s376_s17, %s3552_s24 }
  0x1e   : > { %p3561_p12 = scmp.lt.s32.totalorder %s3552_s24, %s3552_s24 }
  0x1f   : > { %p3992_p7 = pneg %p3986_p6 }
  0x20   : > { %p3562_p13 = por %p3561_p12, %p3560_p11 }
  0x21   : > { %p3555_p9 = pnand %p3553_p8, %p3992_p7 }
  0x23   : > { %p3556_p10 = pneg %p3555_p9 }
  0x25   : > { %p3563_p0 = pnand %p3562_p13, %p3556_p10 }
  0x27   : > { %3566 = shalt.err (!%p3563_p0)
}
  0x28   : > { %s4409_s16 = smov 256   ;;  %s4410_s19 = smov 16  }
  0x29   : > { %s4427_s2 = sld [smem:[#allocation31_spill]]  ;;  %s3578_s12 = scalar_lea.vmem %s392_s20, 4096 }
  0x2a   : > { %p3579_p2 = scmp.ne.s32.totalorder %s392_s20, %s3578_s12  ;;  %p3586_p9 = scmp.lt.s32.totalorder %s392_s20, %s392_s20 }
  0x2b   : > { %p3587_p10 = scmp.lt.s32.totalorder %s3578_s12, %s3578_s12 }
  0x2c   : > { %p3581_p4 = pnand %p3579_p2, %p3992_p7 }
  0x2d   : > { %p3588_p11 = por %p3587_p10, %p3586_p9 }
  0x2e   : > { %p3582_p8 = pneg %p3581_p4 }
  0x2f   : > { %3228 = dma.hbm_to_vmem [thread:$0]  (!%p3986_p6), %s4427_s2, 4096, %s376_s17, [#allocation8], %s4409_s16, %s4409_s16, %s4410_s19  }
  0x30   : > { %p3589_p12 = pnand %p3588_p11, %p3582_p8 }
  0x32   : > { %3592 = shalt.err (!%p3589_p12)
}
  0x33   : > { %s4428_s4 = sld [smem:[#allocation32_spill]]  ;;  %s3604_s13 = scalar_lea.vmem %s424_s22, 4096 }
  0x34   : > { %p3605_p13 = scmp.ne.s32.totalorder %s424_s22, %s3604_s13  ;;  %p3612_p4 = scmp.lt.s32.totalorder %s424_s22, %s424_s22 }
  0x35   : > { %p3613_p9 = scmp.lt.s32.totalorder %s3604_s13, %s3604_s13 }
  0x36   : > { %p3607_p0 = pnand %p3605_p13, %p3992_p7 }
  0x37   : > { %p3614_p8 = por %p3613_p9, %p3612_p4 }
  0x38   : > { %p3608_p2 = pneg %p3607_p0 }
  0x39   : > { %3231 = dma.hbm_to_vmem [thread:$0]  (!%p3986_p6), %s4428_s4, 4096, %s392_s20, [#allocation11], %s4409_s16, %s4409_s16, %s4410_s19  }
  0x3a   : > { %p3615_p10 = pnand %p3614_p8, %p3608_p2 }
  0x3c   : > { %3618 = shalt.err (!%p3615_p10)
}
  0x3d   : > { %s3860_s12 = smov 64   ;;  %s3861_s17 = smov 4  }
  0x3e   : > { %s4429_s8 = sld [smem:[#allocation34_spill]]  ;;  %s3862_s21 = smov [#allocation12]  }
  0x3f   : > { %s407_s24 = sshll.u32 %s3862_s21, 4  ;;  %s3863_s16 = smov [#allocation15]   ;;  %s408_s24 = int_to_ptr.vmem [resolvable:$true] %s407_s24 }
  0x40   : > { %s436_s13 = sshll.u32 %s3863_s16, 4  ;;  %s3630_s19 = scalar_lea.vmem %s408_s24, 4096  ;;  %s437_s13 = int_to_ptr.vmem [resolvable:$true] %s436_s13 }
  0x41   : > { %p3631_p11 = scmp.ne.s32.totalorder %s408_s24, %s3630_s19  ;;  %p3638_p0 = scmp.lt.s32.totalorder %s408_s24, %s408_s24 }
  0x42   : > { %p3639_p2 = scmp.lt.s32.totalorder %s3630_s19, %s3630_s19 }
  0x43   : > { %p3633_p12 = pnand %p3631_p11, %p3992_p7 }
  0x44   : > { %3237 = dma.hbm_to_vmem [thread:$0]  (!%p3986_p6), %s4429_s8, 4096, %s424_s22, [#allocation14], %s3860_s12, %s3860_s12, %s3861_s17  }
  0x45   : > { %p3634_p13 = pneg %p3633_p12  ;;  %p3640_p4 = por %p3639_p2, %p3638_p0 }
  0x47   : > { %p3641_p9 = pnand %p3640_p4, %p3634_p13 }
  0x49   : > { %3644 = shalt.err (!%p3641_p9)
}
  0x4a   : > { %s4430_s2 = smov 16   ;;  %s4431_s28 = smov 256  }
  0x4b   : > { %s4432_s6 = sld [smem:[#allocation33_spill]]  ;;  %s3656_s16 = scalar_lea.vmem %s437_s13, 1024 }
  0x4c   : > { %p3657_p8 = scmp.ne.s32.totalorder %s437_s13, %s3656_s16  ;;  %p3664_p12 = scmp.lt.s32.totalorder %s437_s13, %s437_s13 }
  0x4d   : > { %p3665_p0 = scmp.lt.s32.totalorder %s3656_s16, %s3656_s16 }
  0x4e   : > { %p3659_p10 = pnand %p3657_p8, %p3992_p7 }
  0x4f   : > { %p3666_p13 = por %p3665_p0, %p3664_p12 }
  0x50   : > { %p3660_p11 = pneg %p3659_p10 }
  0x51   : > { %3234 = dma.hbm_to_vmem [thread:$0]  (!%p3986_p6), %s4432_s6, 4096, %s408_s24, [#allocation11], %s4431_s28, %s4431_s28, %s4430_s2  }
  0x52   : > { %p3667_p2 = pnand %p3666_p13, %p3660_p11 }
  0x54   : > { %3670 = shalt.err (!%p3667_p2)
}
  0x55   : > { %s4433_s9 = sld [smem:[#allocation35_spill]]  ;;  %s3864_s2 = smov [#allocation16]  }
  0x56   : > { %s452_s24 = sshll.u32 %s3864_s2, 4  ;;  %s453_s24 = int_to_ptr.vmem [resolvable:$true] %s452_s24 }
  0x57   : > { %s3682_s28 = scalar_lea.vmem %s453_s24, 1024  ;;  %p3690_p10 = scmp.lt.s32.totalorder %s453_s24, %s453_s24 }
  0x58   : > { %p3683_p4 = scmp.ne.s32.totalorder %s453_s24, %s3682_s28  ;;  %p3691_p11 = scmp.lt.s32.totalorder %s3682_s28, %s3682_s28 }
  0x5a   : > { %p3685_p9 = pnand %p3683_p4, %p3992_p7  ;;  %p3692_p12 = por %p3691_p11, %p3690_p10 }
  0x5b   : > { %3240 = dma.hbm_to_vmem [thread:$0]  (!%p3986_p6), %s4433_s9, 1024, %s437_s13, [#allocation14], %s3860_s12, %s3860_s12, %s3861_s17  }
  0x5c   : > { %p3686_p8 = pneg %p3685_p9 }
  0x5e   : > { %p3693_p0 = pnand %p3692_p12, %p3686_p8 }
  0x60   : > { %3696 = shalt.err (!%p3693_p0)
}
  0x61   : > { %s4434_s11 = sld [smem:[#allocation36_spill]]  ;;  %s2773_s18 = sadd.s32 4294967294, %s3853_s30  }
  0x62   : > { %s47_s23 = sadd.s32 1, %s3849_s29  ;;  %s54_s20 = sadd.s32 1, %s3841_s27 }
  0x63   : > { %p49_p7 = scmp.ge.s32.totalorder %s47_s23, 2  ;;  %p61_p13 = scmp.ne.s32.totalorder %s3841_s27, %s3837_s26 }
  0x64   : > { %p62_p2 = scmp.eq.s32.totalorder %s3853_s30, 0  ;;  %p67_p9 = scmp.ne.s32.totalorder %s3837_s26, %s3833_s25 }
  0x65   : > { %s4455_s23 = smov (%p49_p7, %s47_s23), 0  ;;  %p356_p12 = scmp.eq.s32.totalorder %s2773_s18, 1 }
  0x66   : > { %4435 = sst [smem:[#allocation28_spill]] %s4455_s23  ;;  %p4064_p4 = por %p62_p2, %p61_p13 }
  0x67   : > { %3243 = dma.hbm_to_vmem [thread:$0]  (!%p3986_p6), %s4434_s11, 1024, %s453_s24, [#allocation17], %s3860_s12, %s3860_s12, %s3861_s17  }
  0x68   : > { %s51_s12 = ssub.s32 %s3849_s29, %s4455_s23  ;;  %p350_p6 = scmp.eq.s32.totalorder %s3972_s14, 1 }
  0x69   : > { %p52_p8 = scmp.eq.s32.totalorder %s51_s12, 0  ;;  %p4075_p10 = por %p68_p1, %p67_p9 }
  0x6a   : > { %p4079_p11 = por %p350_p6, %p61_p13  ;;  %p4086_p0 = por %p356_p12, %p67_p9 }
  0x6b   : > { %s4084_s21 = scalar_select %p52_p8, %s3841_s27, %s54_s20  }
  0x6c   : > { %p3261_p7 = scmp.lt.s32.totalorder %s3853_s30, 2  ;;  %s469_s24 = sand.u32 1, %s3841_s27  }
  0x6d   : > { %4439 = sst [smem:[#allocation29_spill]] %s4084_s21  ;;  %s2783_s28 = sshll.u32 %s3849_s29, 7 }
  0x6e   : > { %s2782_s22 = sshll.u32 %s469_s24, 3  ;;  %s4441_s0 = sld [smem:[#allocation30_spill]] }
  0x6f   : > { %s473_s6 = scalar_lea.vmem [#allocation4], %s2782_s22  ;;  %p4098_p13 = pnand %p3261_p7, %p4064_p4 }
  0x70   : > { %s480_s8 = sshll.u32 %s473_s6, 4  ;;  %s487_s18 = sand.u32 1, %s3853_s30   ;;  %s481_s8 = int_to_ptr.vmem [resolvable:$true] %s480_s8 }
  0x71   : > { %s470_s20 = scalar_lea.sflag [#allocation5], %s469_s24  ;;  %p3699_p2 = pneg %p4098_p13 }
  0x72   : > { %s3710_s11 = scalar_lea.vmem %s481_s8, 128 }
  0x73   : > { %p3711_p9 = scmp.ne.s32.totalorder %s481_s8, %s3710_s11 }
  0x74   : > { %s478_s4 = scalar_lea.hbm %s4441_s0, %s2783_s28  ;;  %s3865_s28 = smov [#allocation4]  }
  0x75   : > { %p3713_p6 = pnand %p3711_p9, %p3699_p2  ;;  %s3715_s6 = sshll.u32 %s3865_s28, 4  ;;  %s3716_s6 = int_to_ptr.vmem [resolvable:$false] %s3715_s6 }
  0x76   : > { %s3717_s16 = scalar_lea.vmem %s3716_s6, 256  ;;  %p3718_p4 = scmp.lt.s32.totalorder %s481_s8, %s3716_s6 }
  0x77   : > { %p3714_p8 = pneg %p3713_p6  ;;  %p3719_p12 = scmp.lt.s32.totalorder %s3717_s16, %s3710_s11 }
  0x79   : > { %p3720_p7 = por %p3719_p12, %p3718_p4 }
  0x7b   : > { %p3721_p5 = pnand %p3720_p7, %p3714_p8 }
  0x7d   : > { %3724 = shalt.err (!%p3721_p5)
}
  0x7e   : > { %3247 = dma.hbm_to_vmem [thread:$0]  (!%p4098_p13), %s478_s4, 128, %s481_s8, %s470_s20  }
  0x7f   : > { %s2784_s22 = sshll.u32 %s3849_s29, 4  ;;  %s490_s23 = scalar_lea.vmem [#allocation7], %s469_s24 }
  0x80   : > { %s495_s0 = scalar_lea.hbm %s4395_s1, %s2784_s22  ;;  %s497_s21 = sshll.u32 %s490_s23, 4  ;;  %s498_s21 = int_to_ptr.vmem [resolvable:$true] %s497_s21 }
  0x81   : > { %s488_s28 = scalar_lea.sflag [#allocation8], %s487_s18  ;;  %s3738_s27 = scalar_lea.vmem %s498_s21, 16 }
  0x82   : > { %p3739_p9 = scmp.ne.s32.totalorder %s498_s21, %s3738_s27  ;;  %s3866_s11 = smov [#allocation7]  }
  0x83   : > { %s3743_s6 = sshll.u32 %s3866_s11, 4  ;;  %s3744_s6 = int_to_ptr.vmem [resolvable:$false] %s3743_s6 }
  0x84   : > { %p3741_p6 = pnand %p3739_p9, %p3699_p2  ;;  %s3745_s16 = scalar_lea.vmem %s3744_s6, 32 }
  0x85   : > { %p3746_p8 = scmp.lt.s32.totalorder %s498_s21, %s3744_s6  ;;  %p3747_p4 = scmp.lt.s32.totalorder %s3745_s16, %s3738_s27 }
  0x86   : > { %p3742_p5 = pneg %p3741_p6 }
  0x87   : > { %p3748_p12 = por %p3747_p4, %p3746_p8 }
  0x89   : > { %p3749_p7 = pnand %p3748_p12, %p3742_p5 }
  0x8b   : > { %3752 = shalt.err (!%p3749_p7)
}
  0x8c   : > { %3250 = dma.hbm_to_vmem [thread:$0]  (!%p4098_p13), %s495_s0, 16, %s498_s21, %s488_s28  }
  0x8d   : > { %506 = sbr.rel (%p3977_p3) target bundleno = 3528 (0xdc8), region = 72  ;;  %s4122_s4 = sand.u32 (!%p3977_p3), 1, %s3837_s26  }
  0x8e   : > { %s2786_s8 = sshll.u32 (!%p3977_p3), %s4122_s4, 3  ;;  %s509_s23 = scalar_lea.sflag (!%p3977_p3), [#allocation5], %s4122_s4 }
  0x8f   : > { %s4128_s27 = scalar_lea.vmem (!%p3977_p3), [#allocation4], %s2786_s8 }
  0x92   : > { %3804 = dma.done.wait (%p4075_p10), %s509_s23, 128  }
  0x93   : > { %3806 = vsyncadd (%p4075_p10), %s509_s23, 4294967168  ;;  %s517_s0 = sand.u32 1, %s3972_s14   ;;  %s520_s15 = scalar_lea.vmem [#allocation7], %s4122_s4 }
  0x94   : > { %s518_s9 = scalar_lea.sflag [#allocation8], %s517_s0 }
  0x95   : > { %3808 = dma.done.wait (%p4075_p10), %s518_s9, 16  }
  0x96   : > { %3810 = vsyncadd (%p4075_p10), %s518_s9, 4294967280 }
  0x97   : > { %3812 = dma.done.wait (%p68_p1), [#allocation8], 4096  }
  0x98   : > { %3814 = vsyncadd (%p68_p1), [#allocation8], 4294963200 }
  0x99   : > { %3816 = dma.done.wait (%p68_p1), [#allocation11], 8192  }
  0x9a   : > { %3818 = vsyncadd (%p68_p1), [#allocation11], 4294959104 }
  0x9b   : > { %3820 = dma.done.wait (%p68_p1), [#allocation14], 5120  }
  0x9c   : > { %3822 = vsyncadd (%p68_p1), [#allocation14], 4294962176 }
  0x9d   : > { %3824 = dma.done.wait (%p68_p1), [#allocation17], 1024  }
  0x9e   : > { %3826 = vsyncadd (%p68_p1), [#allocation17], 4294966272  ;;  %v3867_v0 = vmov 0   ;;  %v3330_v1 = vld [vmem:[#allocation10 + $0xe4] ss:$16 sps:$4 sm:$0xff]   ;;  %vm3869_vm0 = vmmov 0  }
  0x9f   : > { %844 = vmatprep.mubr.bf16.mxu0 %v3867_v0  ;;  %885 = vmatprep.mubr.bf16.mxu1 %v3867_v0  ;;  %v3332_v2 = vld [vmem:[#allocation10 + $0xe0] ss:$16 sps:$4 sm:$0xff]   ;;  %v3333_v3 = vld [vmem:[#allocation10 + $0xc4] ss:$16 sps:$4 sm:$0xff]   ;;  %v3402_v22 = vld [vmem:[#allocation10 + $0xec] ss:$16 sps:$4 sm:$0xff]  }
  0xa0   : > { %812 = vmatprep.subr.bf16.mxu0 %v3330_v1  ;;  %v3335_v4 = vld [vmem:[#allocation10 + $0xc0] ss:$16 sps:$4 sm:$0xff]   ;;  %v3336_v5 = vld [vmem:[#allocation10 + $0xa4] ss:$16 sps:$4 sm:$0xff]   ;;  %v3404_v23 = vld [vmem:[#allocation10 + $0xe8] ss:$16 sps:$4 sm:$0xff]   ;;  %853 = vmatprep.subr.bf16.mxu1 %v3402_v22 }
  0xa1   : > { %813 = vmatpush1.bf16.msra.mxu0 %v3332_v2  ;;  %v3338_v6 = vld [vmem:[#allocation10 + $0xa0] ss:$16 sps:$4 sm:$0xff]   ;;  %v3339_v7 = vld [vmem:[#allocation10 + $0x84] ss:$16 sps:$4 sm:$0xff]   ;;  %v3405_v24 = vld [vmem:[#allocation10 + $0xcc] ss:$16 sps:$4 sm:$0xff]   ;;  %854 = vmatpush1.bf16.msra.mxu1 %v3404_v23 }
  0xa2   : > { %814 = vmatprep.subr.bf16.mxu0 %v3333_v3  ;;  %v3341_v8 = vld [vmem:[#allocation10 + $0x80] ss:$16 sps:$4 sm:$0xff]   ;;  %v3342_v9 = vld [vmem:[#allocation10 + $0x64] ss:$16 sps:$4 sm:$0xff]   ;;  %v3407_v27 = vld [vmem:[#allocation10 + $0xc8] ss:$16 sps:$4 sm:$0xff]   ;;  %855 = vmatprep.subr.bf16.mxu1 %v3405_v24 }
  0xa3   : > { %v3344_v10 = vld [vmem:[#allocation10 + $0x60] ss:$16 sps:$4 sm:$0xff]   ;;  %v3345_v11 = vld [vmem:[#allocation10 + $0x44] ss:$16 sps:$4 sm:$0xff]   ;;  %v3408_v28 = vld [vmem:[#allocation10 + $0xac] ss:$16 sps:$4 sm:$0xff]  }
  0xa4   : > { %v3347_v12 = vld [vmem:[#allocation10 + $0x40] ss:$16 sps:$4 sm:$0xff]   ;;  %v3348_v13 = vld [vmem:[#allocation10 + $0x24] ss:$16 sps:$4 sm:$0xff]   ;;  %v3410_v31 = vld [vmem:[#allocation10 + $0xa8] ss:$16 sps:$4 sm:$0xff]  }
  0xa5   : > { %815 = vmatpush1.bf16.msra.mxu0 %v3335_v4  ;;  %v3350_v14 = vld [vmem:[#allocation10 + $0x20] ss:$16 sps:$4 sm:$0xff]   ;;  %v3351_v15 = vld [vmem:[#allocation10 + $0x4] ss:$16 sps:$4 sm:$0xff]   ;;  %856 = vmatpush1.bf16.msra.mxu1 %v3407_v27  ;;  %v3411_v32 = vld [vmem:[#allocation10 + $0x8c] ss:$16 sps:$4 sm:$0xff]  }
  0xa6   : > { %816 = vmatprep.subr.bf16.mxu0 %v3336_v5  ;;  %v3353_v16 = vld [vmem:[#allocation10] ss:$16 sps:$4 sm:$0xff]   ;;  %v3356_v18 = vld [vmem:[#allocation12 + $0xe4] ss:$16 sps:$4 sm:$0xff]   ;;  %857 = vmatprep.subr.bf16.mxu1 %v3408_v28  ;;  %v3413_v35 = vld [vmem:[#allocation10 + $0x88] ss:$16 sps:$4 sm:$0xff]  }
  0xa7   : > { %v596_v17 = vld [vmem:[%s4128_s27] sm:$0xff]  ;;  %vm1595_vm1 = vcmask 1043456   ;;  %vm1579_vm2 = vcmask 64512   ;;  %s4443_s12 = sld [smem:[#allocation27_spill]]  ;;  %s590_s23 = scalar_lea.vmem [#allocation18], %s2786_s8 }
  0xa8   : > { %v4159_v19 = vpack.c.bf16 %v596_v17, %v596_v17  ;;  %v3354_v20 = vld [vmem:[#allocation12 + $0xe0] ss:$16 sps:$4 sm:$0xff]   ;;  %v3359_v21 = vld [vmem:[#allocation12 + $0xc4] ss:$16 sps:$4 sm:$0xff]   ;;  %v3414_v36 = vld [vmem:[#allocation10 + $0x6c] ss:$16 sps:$4 sm:$0xff]  }
  0xa9   : > { %817 = vmatpush1.bf16.msra.mxu0 %v3338_v6  ;;  %v3357_v25 = vld [vmem:[#allocation12 + $0xc0] ss:$16 sps:$4 sm:$0xff]   ;;  %v3362_v26 = vld [vmem:[#allocation12 + $0xa4] ss:$16 sps:$4 sm:$0xff]   ;;  %858 = vmatpush1.bf16.msra.mxu1 %v3410_v31  ;;  %v3416_v40 = vld [vmem:[#allocation10 + $0x68] ss:$16 sps:$4 sm:$0xff]  }
  0xaa   : > { %818 = vmatprep.subr.bf16.mxu0 %v3339_v7  ;;  %v3360_v29 = vld [vmem:[#allocation12 + $0xa0] ss:$16 sps:$4 sm:$0xff]   ;;  %v3365_v30 = vld [vmem:[#allocation12 + $0x84] ss:$16 sps:$4 sm:$0xff]   ;;  %859 = vmatprep.subr.bf16.mxu1 %v3411_v32  ;;  %v3417_v41 = vld [vmem:[#allocation10 + $0x4c] ss:$16 sps:$4 sm:$0xff]  }
  0xab   : > { %v3363_v33 = vld [vmem:[#allocation12 + $0x80] ss:$16 sps:$4 sm:$0xff]   ;;  %v3368_v34 = vld [vmem:[#allocation12 + $0x64] ss:$16 sps:$4 sm:$0xff]   ;;  %v3419_v43 = vld [vmem:[#allocation10 + $0x48] ss:$16 sps:$4 sm:$0xff]  }
  0xac   : > { %v3366_v37 = vld [vmem:[#allocation12 + $0x60] ss:$16 sps:$4 sm:$0xff]   ;;  %v3371_v38 = vld [vmem:[#allocation12 + $0x44] ss:$16 sps:$4 sm:$0xff]   ;;  %v3420_v44 = vld [vmem:[#allocation10 + $0x2c] ss:$16 sps:$4 sm:$0xff]  }
  0xad   : > { %819 = vmatpush1.bf16.msra.mxu0 %v3341_v8  ;;  %v3369_v39 = vld [vmem:[#allocation12 + $0x40] ss:$16 sps:$4 sm:$0xff]   ;;  %860 = vmatpush1.bf16.msra.mxu1 %v3413_v35  ;;  %v3374_v42 = vld [vmem:[#allocation12 + $0x24] ss:$16 sps:$4 sm:$0xff]   ;;  %v3422_v47 = vld [vmem:[#allocation10 + $0x28] ss:$16 sps:$4 sm:$0xff]  }
  0xae   : > { %820 = vmatprep.subr.bf16.mxu0 %v3342_v9  ;;  %861 = vmatprep.subr.bf16.mxu1 %v3414_v36  ;;  %v3372_v45 = vld [vmem:[#allocation12 + $0x20] ss:$16 sps:$4 sm:$0xff]   ;;  %v3377_v46 = vld [vmem:[#allocation12 + $0x4] ss:$16 sps:$4 sm:$0xff]   ;;  %v3423_v48 = vld [vmem:[#allocation10 + $0xc] ss:$16 sps:$4 sm:$0xff]  }
  0xaf   : > { %v3375_v49 = vld [vmem:[#allocation12] ss:$16 sps:$4 sm:$0xff]   ;;  %v3380_v50 = vld [vmem:[#allocation9 + $0xe4] ss:$16 sps:$4 sm:$0xff]   ;;  %v3425_v51 = vld [vmem:[#allocation10 + $0x8] ss:$16 sps:$4 sm:$0xff]  }
  0xb0   : > { %v3428_v52 = vld [vmem:[#allocation12 + $0xec] ss:$16 sps:$4 sm:$0xff]   ;;  %v3378_v53 = vld [vmem:[#allocation9 + $0xe0] ss:$16 sps:$4 sm:$0xff]   ;;  %v3383_v54 = vld [vmem:[#allocation9 + $0xc4] ss:$16 sps:$4 sm:$0xff]  }
  0xb1   : > { %821 = vmatpush1.bf16.msra.mxu0 %v3344_v10  ;;  %862 = vmatpush1.bf16.msra.mxu1 %v3416_v40  ;;  %v3426_v55 = vld [vmem:[#allocation12 + $0xe8] ss:$16 sps:$4 sm:$0xff]   ;;  %v3431_v56 = vld [vmem:[#allocation12 + $0xcc] ss:$16 sps:$4 sm:$0xff]   ;;  %v3381_v57 = vld [vmem:[#allocation9 + $0xc0] ss:$16 sps:$4 sm:$0xff]  }
  0xb2   : > { %822 = vmatprep.subr.bf16.mxu0 %v3345_v11  ;;  %863 = vmatprep.subr.bf16.mxu1 %v3417_v41  ;;  %v3386_v58 = vld [vmem:[#allocation9 + $0xa4] ss:$16 sps:$4 sm:$0xff]   ;;  %v3429_v59 = vld [vmem:[#allocation12 + $0xc8] ss:$16 sps:$4 sm:$0xff]   ;;  %v3434_v60 = vld [vmem:[#allocation12 + $0xac] ss:$16 sps:$4 sm:$0xff]  }
  0xb3   : > { %v3384_v61 = vld [vmem:[#allocation9 + $0xa0] ss:$16 sps:$4 sm:$0xff]   ;;  %v3389_v62 = vld [vmem:[#allocation9 + $0x84] ss:$16 sps:$4 sm:$0xff]   ;;  %v3432_v63 = vld [vmem:[#allocation12 + $0xa8] ss:$16 sps:$4 sm:$0xff]  }
  0xb4   : > { %v3437_v1 = vld [vmem:[#allocation12 + $0x8c] ss:$16 sps:$4 sm:$0xff]   ;;  %v3387_v2 = vld [vmem:[#allocation9 + $0x80] ss:$16 sps:$4 sm:$0xff]   ;;  %v3392_v3 = vld [vmem:[#allocation9 + $0x64] ss:$16 sps:$4 sm:$0xff]  }
  0xb5   : > { %823 = vmatpush1.bf16.msra.mxu0 %v3347_v12  ;;  %864 = vmatpush1.bf16.msra.mxu1 %v3419_v43  ;;  %v3435_v4 = vld [vmem:[#allocation12 + $0x88] ss:$16 sps:$4 sm:$0xff]   ;;  %v3440_v5 = vld [vmem:[#allocation12 + $0x6c] ss:$16 sps:$4 sm:$0xff]   ;;  %v3390_v6 = vld [vmem:[#allocation9 + $0x60] ss:$16 sps:$4 sm:$0xff]  }
  0xb6   : > { %824 = vmatprep.subr.bf16.mxu0 %v3348_v13  ;;  %865 = vmatprep.subr.bf16.mxu1 %v3420_v44  ;;  %v3395_v7 = vld [vmem:[#allocation9 + $0x44] ss:$16 sps:$4 sm:$0xff]   ;;  %v3438_v8 = vld [vmem:[#allocation12 + $0x68] ss:$16 sps:$4 sm:$0xff]   ;;  %v3393_v9 = vld [vmem:[#allocation9 + $0x40] ss:$16 sps:$4 sm:$0xff]  }
  0xb7   : > { %v3398_v10 = vld [vmem:[#allocation9 + $0x24] ss:$16 sps:$4 sm:$0xff]   ;;  %v3396_v11 = vld [vmem:[#allocation9 + $0x20] ss:$16 sps:$4 sm:$0xff]   ;;  %v3444_v17 = vld [vmem:[#allocation12 + $0x28] ss:$16 sps:$4 sm:$0xff]  }
  0xb8   : > { %v3401_v12 = vld [vmem:[#allocation9 + $0x4] ss:$16 sps:$4 sm:$0xff]   ;;  %v3399_v13 = vld [vmem:[#allocation9] ss:$16 sps:$4 sm:$0xff]   ;;  %v3452_v22 = vld [vmem:[#allocation9 + $0xec] ss:$16 sps:$4 sm:$0xff]  }
  0xb9   : > { %825 = vmatpush1.bf16.msra.mxu0 %v3350_v14  ;;  %866 = vmatpush1.bf16.msra.mxu1 %v3422_v47  ;;  %v3443_v14 = vld [vmem:[#allocation12 + $0x4c] ss:$16 sps:$4 sm:$0xff]   ;;  %v3450_v23 = vld [vmem:[#allocation9 + $0xe8] ss:$16 sps:$4 sm:$0xff]   ;;  %s4444_s6 = sld [smem:[#allocation37_spill]]  ;;  %s2950_s16 = sshll.u32 %s4443_s12, 7 }
  0xba   : > { %826 = vmatprep.subr.bf16.mxu0 %v3351_v15  ;;  %867 = vmatprep.subr.bf16.mxu1 %v3423_v48  ;;  %v3441_v15 = vld [vmem:[#allocation12 + $0x48] ss:$16 sps:$4 sm:$0xff]   ;;  %v3455_v24 = vld [vmem:[#allocation9 + $0xcc] ss:$16 sps:$4 sm:$0xff]   ;;  %s2600_s17 = scalar_lea.sflag [#allocation6], %s4122_s4  ;;  %s3870_s8 = smov [#allocation18]  }
  0xbb   : > { %v3456_v27 = vld [vmem:[#allocation9 + $0xa8] ss:$16 sps:$4 sm:$0xff]   ;;  %v3461_v28 = vld [vmem:[#allocation9 + $0x8c] ss:$16 sps:$4 sm:$0xff]   ;;  %s3757_s24 = sshll.u32 %s3870_s8, 4  ;;  %s3758_s24 = int_to_ptr.vmem [resolvable:$false] %s3757_s24 }
  0xbc   : > { %v3462_v31 = vld [vmem:[#allocation9 + $0x68] ss:$16 sps:$4 sm:$0xff]   ;;  %v3467_v32 = vld [vmem:[#allocation9 + $0x4c] ss:$16 sps:$4 sm:$0xff]   ;;  %s3759_s18 = scalar_lea.vmem %s3758_s24, 256 }
  0xbd   : > { %827 = vmatpush1.bf16.msra.mxu0 %v3353_v16  ;;  %868 = vmatpush1.bf16.msra.mxu1 %v3425_v51  ;;  %v3446_v16 = vld [vmem:[#allocation12 + $0x2c] ss:$16 sps:$4 sm:$0xff]   ;;  %v3471_v36 = vld [vmem:[#allocation9 + $0x8] ss:$16 sps:$4 sm:$0xff]  }
  0xbe   : > { %1108 = vmatprep.subr.bf16.mxu0 %v3356_v18  ;;  %1149 = vmatprep.subr.bf16.mxu1 %v3428_v52  ;;  %v3449_v18 = vld [vmem:[#allocation12 + $0xc] ss:$16 sps:$4 sm:$0xff]  }
  0xbf   : > { %v3473_v35 = vld [vmem:[#allocation9 + $0xc] ss:$16 sps:$4 sm:$0xff]  }
  0xc0   : > { %845 = vmatmul.mubr.bf16.vlgmr.msra.gmra.mxu0 %v4159_v19  ;;  %886 = vmatmul.mubr.bf16.vlgmr.msra.gmra.mxu1 %v4159_v19  ;;  %v4183_v40 = vld [vmem:[%s4399_s5] sm:$0xf] }
  0xc1   : > { %1109 = vmatpush1.bf16.msra.mxu0 %v3354_v20  ;;  %1140 = vmatprep.mubr.bf16.mxu0 %v3867_v0  ;;  %v3447_v20 = vld [vmem:[#allocation12 + $0x8] ss:$16 sps:$4 sm:$0xff]   ;;  %v4192_v51 = vld [vmem:[%s4401_s7] sm:$0xf] }
  0xc2   : > { %1110 = vmatprep.subr.bf16.mxu0 %v3359_v21  ;;  %1150 = vmatpush1.bf16.msra.mxu1 %v3426_v55  ;;  %v3868_v21 = vmov 0.0  }
  0xc3   : > { %1181 = vmatprep.mubr.bf16.mxu1 %v3867_v0  ;;  %1151 = vmatprep.subr.bf16.mxu1 %v3431_v56 }
  0xc5   : > { %1111 = vmatpush1.bf16.msra.mxu0 %v3357_v25  ;;  %v3453_v25 = vld [vmem:[#allocation9 + $0xc8] ss:$16 sps:$4 sm:$0xff]  }
  0xc6   : > { %1112 = vmatprep.subr.bf16.mxu0 %v3362_v26  ;;  %1152 = vmatpush1.bf16.msra.mxu1 %v3429_v59  ;;  %v3458_v26 = vld [vmem:[#allocation9 + $0xac] ss:$16 sps:$4 sm:$0xff]  }
  0xc7   : > { %1153 = vmatprep.subr.bf16.mxu1 %v3434_v60 }
  0xc9   : > { %1113 = vmatpush1.bf16.msra.mxu0 %v3360_v29  ;;  %v3459_v29 = vld [vmem:[#allocation9 + $0x88] ss:$16 sps:$4 sm:$0xff]  }
  0xca   : > { %1114 = vmatprep.subr.bf16.mxu0 %v3365_v30  ;;  %1154 = vmatpush1.bf16.msra.mxu1 %v3432_v63  ;;  %v3464_v30 = vld [vmem:[#allocation9 + $0x6c] ss:$16 sps:$4 sm:$0xff]  }
  0xcb   : > { %1155 = vmatprep.subr.bf16.mxu1 %v3437_v1  ;;  %v4201_v63 = vld [vmem:[%s4397_s3] sm:$0xf] }
  0xcd   : > { %1115 = vmatpush1.bf16.msra.mxu0 %v3363_v33  ;;  %v3465_v33 = vld [vmem:[#allocation9 + $0x48] ss:$16 sps:$4 sm:$0xff]  }
  0xce   : > { %1116 = vmatprep.subr.bf16.mxu0 %v3368_v34  ;;  %1156 = vmatpush1.bf16.msra.mxu1 %v3435_v4  ;;  %v3470_v34 = vld [vmem:[#allocation9 + $0x2c] ss:$16 sps:$4 sm:$0xff]  }
  0xcf   : > { %1157 = vmatprep.subr.bf16.mxu1 %v3440_v5 }
  0xd1   : > { %1117 = vmatpush1.bf16.msra.mxu0 %v3366_v37  ;;  %v632_v37 = vlaneseq }
  0xd2   : > { %1118 = vmatprep.subr.bf16.mxu0 %v3371_v38  ;;  %1158 = vmatpush1.bf16.msra.mxu1 %v3438_v8 }
  0xd3   : > { %1159 = vmatprep.subr.bf16.mxu1 %v3443_v14  ;;  %v4177_v38 = vshrl.u32 %v632_v37, 7 }
  0xd5   : > { %1119 = vmatpush1.bf16.msra.mxu0 %v3369_v39  ;;  %v634_v39 = vsub.s32 0, %v4177_v38  ;;  %v638_v41 = vsub.s32 1, %v4177_v38 }
  0xd6   : > { %1120 = vmatprep.subr.bf16.mxu0 %v3374_v42  ;;  %1160 = vmatpush1.bf16.msra.mxu1 %v3441_v15 }
  0xd7   : > { %1161 = vmatprep.subr.bf16.mxu1 %v3446_v16  ;;  %v639_v42 = vrot.slane %v4183_v40, %v638_v41  ;;  %v931_v52 = vrot.slane %v4192_v51, %v634_v39  ;;  %v1267_v1 = vrot.slane %v4201_v63, %v634_v39 }
  0xd9   : > { %1121 = vmatpush1.bf16.msra.mxu0 %v3372_v45 }
  0xda   : > { %1122 = vmatprep.subr.bf16.mxu0 %v3377_v46  ;;  %1162 = vmatpush1.bf16.msra.mxu1 %v3444_v17 }
  0xdb   : > { %1163 = vmatprep.subr.bf16.mxu1 %v3449_v18 }
  0xdd   : > { %1123 = vmatpush1.bf16.msra.mxu0 %v3375_v49 }
  0xde   : > { %1444 = vmatprep.subr.bf16.mxu0 %v3380_v50  ;;  %1164 = vmatpush1.bf16.msra.mxu1 %v3447_v20 }
  0xdf   : > { %1485 = vmatprep.subr.bf16.mxu1 %v3452_v22 }
  0xe0   : > { %1141 = vmatmul.mubr.bf16.vlgmr.msra.gmra.mxu0 %v4159_v19 }
  0xe1   : > { %1445 = vmatpush1.bf16.msra.mxu0 %v3378_v53  ;;  %1476 = vmatprep.mubr.bf16.mxu0 %v3867_v0  ;;  %v935_v53 = vrot.slane %v4192_v51, %v638_v41 }
  0xe2   : > { %1446 = vmatprep.subr.bf16.mxu0 %v3383_v54  ;;  %1182 = vmatmul.mubr.bf16.vlgmr.msra.gmra.mxu1 %v4159_v19 }
  0xe3   : > { %1486 = vmatpush1.bf16.msra.mxu1 %v3450_v23  ;;  %1517 = vmatprep.mubr.bf16.mxu1 %v3867_v0  ;;  %v3468_v0 = vld [vmem:[#allocation9 + $0x28] ss:$16 sps:$4 sm:$0xff]  }
  0xe4   : > { %1487 = vmatprep.subr.bf16.mxu1 %v3455_v24 }
  0xe5   : > { %1447 = vmatpush1.bf16.msra.mxu0 %v3381_v57 }
  0xe6   : > { %1448 = vmatprep.subr.bf16.mxu0 %v3386_v58 }
  0xe7   : > { %1488 = vmatpush1.bf16.msra.mxu1 %v3453_v25 }
  0xe8   : > { %1489 = vmatprep.subr.bf16.mxu1 %v3458_v26 }
  0xe9   : > { %1449 = vmatpush1.bf16.msra.mxu0 %v3384_v61 }
  0xea   : > { %1450 = vmatprep.subr.bf16.mxu0 %v3389_v62 }
  0xeb   : > { %1490 = vmatpush1.bf16.msra.mxu1 %v3456_v27 }
  0xec   : > { %1491 = vmatprep.subr.bf16.mxu1 %v3461_v28 }
  0xed   : > { %1451 = vmatpush1.bf16.msra.mxu0 %v3387_v2  ;;  %v1271_v2 = vrot.slane %v4201_v63, %v638_v41 }
  0xee   : > { %1452 = vmatprep.subr.bf16.mxu0 %v3392_v3 }
  0xef   : > { %1492 = vmatpush1.bf16.msra.mxu1 %v3459_v29 }
  0xf0   : > { %1493 = vmatprep.subr.bf16.mxu1 %v3464_v30 }
  0xf1   : > { %1453 = vmatpush1.bf16.msra.mxu0 %v3390_v6 }
  0xf2   : > { %1454 = vmatprep.subr.bf16.mxu0 %v3395_v7 }
  0xf3   : > { %1494 = vmatpush1.bf16.msra.mxu1 %v3462_v31 }
  0xf4   : > { %1495 = vmatprep.subr.bf16.mxu1 %v3467_v32 }
  0xf5   : > { %1455 = vmatpush1.bf16.msra.mxu0 %v3393_v9 }
  0xf6   : > { %1456 = vmatprep.subr.bf16.mxu0 %v3398_v10 }
  0xf7   : > { %1496 = vmatpush1.bf16.msra.mxu1 %v3465_v33 }
  0xf8   : > { %1497 = vmatprep.subr.bf16.mxu1 %v3470_v34 }
  0xf9   : > { %1457 = vmatpush1.bf16.msra.mxu0 %v3396_v11 }
  0xfa   : > { %1458 = vmatprep.subr.bf16.mxu0 %v3401_v12  ;;  %v4211_v12 = vld [vmem:[%s520_s15] ss:$0 sm:$0xff]  ;;  %s4445_s15 = sld [smem:[#allocation38_spill]] }
  0xfb   : > { %1498 = vmatpush1.bf16.msra.mxu1 %v3468_v0 }
  0xfc   : > { %1499 = vmatprep.subr.bf16.mxu1 %v3473_v35 }
  0xfd   : > { %1459 = vmatpush1.bf16.msra.mxu0 %v3399_v13 }
  0xfe   : > { %3027 = vmatprep.subr.bf16.mxu0 %v3868_v21 }
  0xff   : > { %1500 = vmatpush1.bf16.msra.mxu1 %v3471_v36 }
 0x100   : > { %1477 = vmatmul.mubr.bf16.vlgmr.msra.gmra.mxu0 %v4159_v19  ;;  %3045 = vmatprep.subr.bf16.mxu1 %v3868_v21  ;;  %s4346_s14 = scalar_lea.hbm %s4445_s15, %s2950_s16 }
 0x101   : > { %3029 = vmatprep.mubr.msk.bf16.mxu0 %vm3869_vm0, %v3868_v21 }
 0x102   : > { %1518 = vmatmul.mubr.bf16.vlgmr.msra.gmra.mxu1 %v4159_v19  ;;  %v635_v19 = vrot.slane %v4183_v40, %v634_v39 }
 0x103   : > { %3047 = vmatprep.mubr.msk.bf16.mxu1 %vm3869_vm0, %v3868_v21 }
 0x180   : > { %v846_v43 = vpop.f32.mrf.mxu0 }
 0x181   : > { %v847_v44 = vadd.f32 %v846_v43, %v635_v19 }
 0x182   : > { %v848_v45 = vpop.f32.mrf.mxu0 }
 0x183   : > { %v849_v46 = vadd.f32 %v848_v45, %v639_v42 }
 0x184   : > { %v850_v47 = vpop.f32.mrf.mxu0 }
 0x185   : > { %v2953_v48 = vpack.c.bf16 %v849_v46, %v847_v44  ;;  %v642_v47 = vsub.s32 2, %v4177_v38 }
 0x186   : > { %v851_v49 = vpop.f32.mrf.mxu0 }
 0x187   : > { %1206 = vst [vmem:[#allocation2] sm:$0xff] %v2953_v48  ;;  %v887_v48 = vpop.f32.mrf.mxu1  ;;  %v646_v49 = vsub.s32 3, %v4177_v38 }
 0x189   : > { %v943_v38 = vrot.slane %v4192_v51, %v646_v49 }
 0x18e   : > { %v1531_v50 = vld [vmem:[#allocation2] sm:$0xf]  ;;  %v1656_v30 = vld [vmem:[#allocation2 + $0x4] sm:$0xf] }
 0x18f   : > { %3028 = vmatpush3.bf16.xpose.msra.mxu0 %v1531_v50  ;;  %v3482_v50 = vld [vmem:[#allocation13 + $0x78] sm:$0xff]  }
 0x190   : > { %3033 = vmatprep.subr.bf16.mxu0 %v3868_v21 }
 0x1a0   : > { %v1142_v54 = vpop.f32.mrf.mxu0 }
 0x1a1   : > { %v1143_v55 = vadd.f32 %v1142_v54, %v931_v52  ;;  %v643_v52 = vrot.slane %v4183_v40, %v642_v47  ;;  %v889_v54 = vpop.f32.mrf.mxu1 }
 0x1a2   : > { %v1144_v56 = vpop.f32.mrf.mxu0 }
 0x1a3   : > { %v1145_v57 = vadd.f32 %v1144_v56, %v935_v53  ;;  %v647_v53 = vrot.slane %v4183_v40, %v646_v49  ;;  %v888_v56 = vadd.f32 %v887_v48, %v643_v52 }
 0x1a4   : > { %v1146_v58 = vpop.f32.mrf.mxu0 }
 0x1a5   : > { %v2955_v59 = vpack.c.bf16 %v1145_v57, %v1143_v55  ;;  %v3483_v55 = vld [vmem:[#allocation13 + $0x70] sm:$0xff]   ;;  %v890_v57 = vadd.f32 %v889_v54, %v647_v53  ;;  %v891_v58 = vpop.f32.mrf.mxu1 }
 0x1a6   : > { %v1147_v60 = vpop.f32.mrf.mxu0 }
 0x1a7   : > { %1224 = vst [vmem:[#allocation3] sm:$0xff] %v2955_v59  ;;  %v939_v59 = vrot.slane %v4192_v51, %v642_v47  ;;  %v2954_v60 = vpack.c.bf16 %v890_v57, %v888_v56  ;;  %v1279_v51 = vrot.slane %v4201_v63, %v646_v49 }
 0x1a9   : > { %1207 = vst [vmem:[#allocation2 + $0x8] sm:$0xff] %v2954_v60 }
 0x1ae   : > { %v1657_v61 = vld [vmem:[#allocation3 + $0x4] sm:$0xf]  ;;  %v1532_v6 = vld [vmem:[#allocation3] sm:$0xf] }
 0x1af   : > { %v1714_v62 = vsel %vm1595_vm1, %v1657_v61, 0  ;;  %v1597_v10 = vsel %vm1595_vm1, %v1532_v6, 0  ;;  %v892_v61 = vpop.f32.mrf.mxu1 }
 0x1b0   : > { %3046 = vmatpush3.bf16.msra.mxu1 %v1714_v62  ;;  %v3484_v62 = vld [vmem:[#allocation13 + $0x68] sm:$0xff]  }
 0x1b1   : > { %3071 = vmatprep.subr.bf16.mxu1 %v3868_v21  ;;  %v1183_v40 = vpop.f32.mrf.mxu1 }
 0x1c0   : > { %v1478_v3 = vpop.f32.mrf.mxu0 }
 0x1c1   : > { %v1479_v4 = vadd.f32 %v1478_v3, %v1267_v1  ;;  %v1184_v1 = vadd.f32 %v1183_v40, %v939_v59  ;;  %v3485_v3 = vld [vmem:[#allocation13 + $0x60] sm:$0xff]   ;;  %v3491_v40 = vld [vmem:[#allocation13 + $0xb0] sm:$0xff]  }
 0x1c2   : > { %v1480_v5 = vpop.f32.mrf.mxu0 }
 0x1c3   : > { %v1526_v7 = vpack.c.bf16 %v1479_v4, %v1479_v4  ;;  %v1481_v8 = vadd.f32 %v1480_v5, %v1271_v2  ;;  %v1185_v2 = vpop.f32.mrf.mxu1 }
 0x1c4   : > { %v1482_v9 = vpop.f32.mrf.mxu0  ;;  %v1186_v4 = vadd.f32 %v1185_v2, %v943_v38  ;;  %v3490_v38 = vld [vmem:[#allocation13 + $0xb8] sm:$0xff]   ;;  %v3493_v2 = vld [vmem:[#allocation13 + $0xa0] sm:$0xff]  }
 0x1c5   : > { %3030 = vmatmul.mubr.bf16.vlgmr.msra.gmra.mxu0 %v1526_v7  ;;  %v1527_v31 = vpack.c.bf16 %v1481_v8, %v1481_v8  ;;  %v1187_v5 = vpop.f32.mrf.mxu1  ;;  %v1275_v7 = vrot.slane %v4201_v63, %v642_v47  ;;  %v3486_v9 = vld [vmem:[#allocation13 + $0x58] sm:$0xff]  }
 0x1c6   : > { %3034 = vmatpush3.bf16.msra.mxu0 %v1597_v10  ;;  %v1483_v11 = vpop.f32.mrf.mxu0  ;;  %3035 = vmatprep.mubr.msk.bf16.mxu0 %vm3869_vm0, %v3868_v21  ;;  %v2956_v6 = vpack.c.bf16 %v1186_v4, %v1184_v1  ;;  %v3492_v1 = vld [vmem:[#allocation13 + $0xa8] sm:$0xff]   ;;  %v3495_v4 = vld [vmem:[#allocation13 + $0x90] sm:$0xff]  }
 0x1c7   : > { %3039 = vmatprep.subr.bf16.mxu0 %v3868_v21  ;;  %v1188_v8 = vpop.f32.mrf.mxu1  ;;  %v3496_v5 = vld [vmem:[#allocation13 + $0x88] sm:$0xff]  }
 0x1c8   : > { %1225 = vst [vmem:[#allocation3 + $0x8] sm:$0xff] %v2956_v6 }
 0x1c9   : > { %v1519_v10 = vpop.f32.mrf.mxu1 }
 0x1ca   : > { %v4239_v11 = vadd.f32 %v1519_v10, %v1275_v7 }
 0x1cf   : > { %v2158_v10 = vld [vmem:[#allocation3 + $0xc] sm:$0xf] }
 0x285   : > { %v1573_v13 = vpop.f32.mrf.mxu0 }
 0x286   : > { %v1574_v14 = vadd.f32 %v4211_v12, %v1573_v13  ;;  %v1521_v13 = vpop.f32.mrf.mxu1 }
 0x287   : > { %v3031_v15 = vpop.f32.mrf.mxu0 }
 0x288   : > { %v1580_v16 = vsel %vm1579_vm2, %v1574_v14, -inf  ;;  %v4241_v15 = vadd.f32 %v1521_v13, %v1279_v51  ;;  %v2157_v51 = vld [vmem:[#allocation2 + $0xc] sm:$0xf]  ;;  %v2215_v13 = vsel %vm1595_vm1, %v2158_v10, 0 }
 0x289   : > { %1581 = vmax.xlane.f32.xlu0 %v1580_v16  ;;  %v1576_v17 = vpop.f32.mrf.mxu0  ;;  %v1523_v16 = vpop.f32.mrf.mxu1  ;;  %v3518_v10 = vld [vmem:[#allocation16 + $0x18] sm:$0xff]  }
 0x28b   : > { %v3032_v18 = vpop.f32.mrf.mxu0  ;;  %v1524_v17 = vpop.f32.mrf.mxu1 }
 0x28c   : > { %v3488_v18 = vld [vmem:[#allocation13 + $0x48] sm:$0xff]  }
 0x312   : > { %v1582_v20 = vpop.xlane.xlu0 %1581 }
 0x313   : > { %v1583_v22 = vsub.f32 %v1574_v14, %v1582_v20  ;;  %v3487_v14 = vld [vmem:[#allocation13 + $0x50] sm:$0xff]   ;;  %v3489_v20 = vld [vmem:[#allocation13 + $0x40] sm:$0xff]  }
 0x315   : > { %v1584_v23 = vmul.f32 1.442695, %v1583_v22 }
 0x317   : > { %3522 = vpow2.f32 %v1584_v23 }
 0x324   : > { %v3523_v24 = vpop.eup %3522 }
 0x325   : > { %v1586_v25 = vsel %vm1579_vm2, %v3523_v24, 0.0 }
 0x326   : > { %1587 = vadd.xlane.f32.xlu0 %v1586_v25 }
 0x3af   : > { %v1588_v26 = vpop.xlane.xlu0 %1587 }
 0x3b0   : > { %3524 = vrcp.f32 %v1588_v26  ;;  %v3475_v26 = vld [vmem:[#allocation13 + $0x30] sm:$0xff]  }
 0x3bd   : > { %v3525_v27 = vpop.eup %3524 }
 0x3be   : > { %v1590_v28 = vmul.f32 %v3525_v27, %v3523_v24  ;;  %v3474_v24 = vld [vmem:[#allocation13 + $0x38] sm:$0xff]   ;;  %v3476_v27 = vld [vmem:[#allocation13 + $0x28] sm:$0xff]  }
 0x3c0   : > { %v1591_v29 = vpack.c.bf16 %v1590_v28, %v1590_v28  ;;  %v3477_v28 = vld [vmem:[#allocation13 + $0x20] sm:$0xff]  }
 0x3c2   : > { %3036 = vmatmul.mubr.msk.bf16.vlgmr.msra.gmra.mxu0 %vm1579_vm2, %v1591_v29  ;;  %v3478_v29 = vld [vmem:[#allocation13 + $0x18] sm:$0xff]  }
 0x3c3   : > { %3040 = vmatpush3.bf16.xpose.msra.mxu0 %v1656_v30  ;;  %3041 = vmatprep.mubr.msk.bf16.mxu0 %vm3869_vm0, %v3868_v21  ;;  %v3479_v30 = vld [vmem:[#allocation13 + $0x10] sm:$0xff]  }
 0x3c4   : > { %3051 = vmatprep.subr.bf16.mxu0 %v3868_v21 }
 0x3ca   : > { %3042 = vmatmul.mubr.bf16.vlgmr.msra.gmra.mxu0 %v1527_v31  ;;  %v3480_v31 = vld [vmem:[#allocation13 + $0x8] sm:$0xff]  }
 0x3cb   : > { %3067 = vmatprep.mubr.msk.bf16.mxu0 %vm3869_vm0, %v3868_v21  ;;  %3052 = vmatpush3.bf16.msra.mxu0 %v3482_v50 }
 0x3cc   : > { %3053 = vmatprep.subr.bf16.mxu0 %v3868_v21 }
 0x3cf   : > { %3054 = vmatpush3.bf16.msra.mxu0 %v3483_v55 }
 0x3d0   : > { %3055 = vmatprep.subr.bf16.mxu0 %v3868_v21 }
 0x3d3   : > { %3056 = vmatpush3.bf16.msra.mxu0 %v3484_v62 }
 0x3d4   : > { %3057 = vmatprep.subr.bf16.mxu0 %v3868_v21 }
 0x3d7   : > { %3058 = vmatpush3.bf16.msra.mxu0 %v3485_v3  ;;  %v3494_v3 = vld [vmem:[#allocation13 + $0x98] sm:$0xff]  }
 0x3d8   : > { %3059 = vmatprep.subr.bf16.mxu0 %v3868_v21 }
 0x3db   : > { %3060 = vmatpush3.bf16.msra.mxu0 %v3486_v9 }
 0x3dc   : > { %3061 = vmatprep.subr.bf16.mxu0 %v3868_v21 }
 0x3df   : > { %3062 = vmatpush3.bf16.msra.mxu0 %v3487_v14  ;;  %v3497_v14 = vld [vmem:[#allocation13 + $0x80] sm:$0xff]  }
 0x3e0   : > { %3063 = vmatprep.subr.bf16.mxu0 %v3868_v21 }
 0x3e3   : > { %3064 = vmatpush3.bf16.msra.mxu0 %v3488_v18 }
 0x3e4   : > { %3065 = vmatprep.subr.bf16.mxu0 %v3868_v21 }
 0x3e7   : > { %3066 = vmatpush3.bf16.msra.mxu0 %v3489_v20 }
 0x3e8   : > { %3091 = vmatprep.subr.bf16.mxu0 %v3868_v21 }
 0x482   : > { %v4222_v32 = vpop.f32.mrf.mxu0 }
 0x484   : > { %v3037_v33 = vpop.f32.mrf.mxu0 }
 0x485   : > { %v3481_v33 = vld [vmem:[#allocation13] sm:$0xff]  }
 0x486   : > { %v1636_v34 = vpop.f32.mrf.mxu0 }
 0x487   : > { %v1951_v34 = vld [vmem:[#allocation3 + $0x8] sm:$0xf] }
 0x488   : > { %v3038_v0 = vpop.f32.mrf.mxu0 }
 0x489   : > { %v1639_v0 = vpack.c.bf16 %v4222_v32, %v4222_v32 }
 0x48a   : > { %v1692_v35 = vpop.f32.mrf.mxu0 }
 0x48b   : > { %v1693_v36 = vadd.f32 %v4211_v12, %v1692_v35  ;;  %v2008_v35 = vsel %vm1595_vm1, %v1951_v34, 0 }
 0x48c   : > { %v3043_v37 = vpop.f32.mrf.mxu0 }
 0x48d   : > { %v1698_v39 = vsel %vm1579_vm2, %v1693_v36, -inf }
 0x48e   : > { %1699 = vmax.xlane.f32.xlu1 %v1698_v39  ;;  %v1695_v41 = vpop.f32.mrf.mxu0 }
 0x48f   : > { %v1950_v41 = vld [vmem:[#allocation2 + $0x8] sm:$0xf] }
 0x490   : > { %v3044_v19 = vpop.f32.mrf.mxu0 }
 0x517   : > { %v1700_v42 = vpop.xlane.xlu1 %1699 }
 0x518   : > { %v1701_v43 = vsub.f32 %v1693_v36, %v1700_v42  ;;  %v1528_v42 = vpack.c.bf16 %v4239_v11, %v4239_v11  ;;  %v1529_v11 = vpack.c.bf16 %v4241_v15, %v4241_v15 }
 0x51a   : > { %v1702_v44 = vmul.f32 1.442695, %v1701_v43 }
 0x51c   : > { %3526 = vpow2.f32 %v1702_v44 }
 0x529   : > { %v3527_v45 = vpop.eup %3526 }
 0x52a   : > { %v1704_v46 = vsel %vm1579_vm2, %v3527_v45, 0.0 }
 0x52b   : > { %1705 = vadd.xlane.f32.xlu1 %v1704_v46 }
 0x5b4   : > { %v1706_v63 = vpop.xlane.xlu1 %1705 }
 0x5b5   : > { %3528 = vrcp.f32 %v1706_v63 }
 0x5c2   : > { %v3529_v22 = vpop.eup %3528 }
 0x5c3   : > { %v1708_v23 = vmul.f32 %v3529_v22, %v3527_v45 }
 0x5c5   : > { %v1709_v25 = vpack.c.bf16 %v1708_v23, %v1708_v23 }
 0x5c7   : > { %3048 = vmatmul.mubr.msk.bf16.vlgmr.msra.gmra.mxu1 %vm1579_vm2, %v1709_v25 }
 0x5c8   : > { %3072 = vmatpush3.bf16.msra.mxu1 %v3474_v24  ;;  %3087 = vmatprep.mubr.msk.bf16.mxu1 %vm3869_vm0, %v3868_v21 }
 0x5c9   : > { %3073 = vmatprep.subr.bf16.mxu1 %v3868_v21 }
 0x5cc   : > { %3074 = vmatpush3.bf16.msra.mxu1 %v3475_v26 }
 0x5cd   : > { %3075 = vmatprep.subr.bf16.mxu1 %v3868_v21 }
 0x5d0   : > { %3076 = vmatpush3.bf16.msra.mxu1 %v3476_v27 }
 0x5d1   : > { %3077 = vmatprep.subr.bf16.mxu1 %v3868_v21 }
 0x5d4   : > { %3078 = vmatpush3.bf16.msra.mxu1 %v3477_v28 }
 0x5d5   : > { %3079 = vmatprep.subr.bf16.mxu1 %v3868_v21 }
 0x5d8   : > { %3080 = vmatpush3.bf16.msra.mxu1 %v3478_v29 }
 0x5d9   : > { %3081 = vmatprep.subr.bf16.mxu1 %v3868_v21 }
 0x5dc   : > { %3082 = vmatpush3.bf16.msra.mxu1 %v3479_v30 }
 0x5dd   : > { %3083 = vmatprep.subr.bf16.mxu1 %v3868_v21 }
 0x5e0   : > { %3084 = vmatpush3.bf16.msra.mxu1 %v3480_v31 }
 0x5e1   : > { %3085 = vmatprep.subr.bf16.mxu1 %v3868_v21 }
 0x5e4   : > { %3086 = vmatpush3.bf16.msra.mxu1 %v3481_v33 }
 0x5e5   : > { %3097 = vmatprep.subr.bf16.mxu1 %v3868_v21 }
 0x5e7   : > { %3088 = vmatmul.mubr.bf16.vlgmr.msra.gmra.mxu1 %v1639_v0 }
 0x5e8   : > { %3098 = vmatpush3.bf16.msra.mxu1 %v2008_v35  ;;  %3099 = vmatprep.mubr.msk.bf16.mxu1 %vm3869_vm0, %v3868_v21 }
 0x5e9   : > { %3123 = vmatprep.subr.bf16.mxu1 %v3868_v21 }
 0x687   : > { %v1750_v36 = vpop.f32.mrf.mxu1 }
 0x688   : > { %v1756_v37 = vpack.c.bf16 %v1750_v36, %v1750_v36 }
 0x689   : > { %v3049_v39 = vpop.f32.mrf.mxu1 }
 0x68a   : > { %3068 = vmatmul.mubr.bf16.vlgmr.msra.gmra.mxu0 %v1756_v37 }
 0x68b   : > { %3092 = vmatpush3.bf16.xpose.msra.mxu0 %v1950_v41  ;;  %v1753_v19 = vpop.f32.mrf.mxu1  ;;  %3093 = vmatprep.mubr.msk.bf16.mxu0 %vm3869_vm0, %v3868_v21 }
 0x68c   : > { %3103 = vmatprep.subr.bf16.mxu0 %v3868_v21  ;;  %v3498_v19 = vld [vmem:[#allocation13 + $0xf8] sm:$0xff]  }
 0x68d   : > { %v3050_v32 = vpop.f32.mrf.mxu1 }
 0x692   : > { %3094 = vmatmul.mubr.bf16.vlgmr.msra.gmra.mxu0 %v1528_v42  ;;  %v3499_v42 = vld [vmem:[#allocation13 + $0xf0] sm:$0xff]  }
 0x693   : > { %3119 = vmatprep.mubr.msk.bf16.mxu0 %vm3869_vm0, %v3868_v21  ;;  %3104 = vmatpush3.bf16.msra.mxu0 %v3490_v38  ;;  %v3514_v38 = vld [vmem:[#allocation16 + $0x38] sm:$0xff]  }
 0x694   : > { %3105 = vmatprep.subr.bf16.mxu0 %v3868_v21 }
 0x697   : > { %3106 = vmatpush3.bf16.msra.mxu0 %v3491_v40  ;;  %v3515_v40 = vld [vmem:[#allocation16 + $0x30] sm:$0xff]  }
 0x698   : > { %3107 = vmatprep.subr.bf16.mxu0 %v3868_v21 }
 0x69b   : > { %3108 = vmatpush3.bf16.msra.mxu0 %v3492_v1 }
 0x69c   : > { %3109 = vmatprep.subr.bf16.mxu0 %v3868_v21 }
 0x69f   : > { %3110 = vmatpush3.bf16.msra.mxu0 %v3493_v2 }
 0x6a0   : > { %3111 = vmatprep.subr.bf16.mxu0 %v3868_v21 }
 0x6a3   : > { %3112 = vmatpush3.bf16.msra.mxu0 %v3494_v3 }
 0x6a4   : > { %3113 = vmatprep.subr.bf16.mxu0 %v3868_v21 }
 0x6a7   : > { %v4271_v43 = vpop.f32.mrf.mxu1  ;;  %3114 = vmatpush3.bf16.msra.mxu0 %v3495_v4  ;;  %v3540_v4 = vld [vmem:[%s4128_s27] sm:$0xff]  ;;  %s2614_s27 = sshll.u32 %s590_s23, 4  ;;  %s4348_s27 = int_to_ptr.vmem [resolvable:$true] %s2614_s27 }
 0x6a8   : > { %3115 = vmatprep.subr.bf16.mxu0 %v3868_v21  ;;  %s3753_s21 = scalar_lea.vmem %s4348_s27, 128  ;;  %p3760_p13 = scmp.lt.s32.totalorder %s4348_s27, %s3758_s24 }
 0x6a9   : > { %v3089_v44 = vpop.f32.mrf.mxu1  ;;  %p3754_p1 = scmp.ne.s32.totalorder %s4348_s27, %s3753_s21  ;;  %p3761_p2 = scmp.lt.s32.totalorder %s3759_s18, %s3753_s21 }
 0x6aa   : > { %v3501_v44 = vld [vmem:[#allocation13 + $0xe0] sm:$0xff]  }
 0x6ab   : > { %v1947_v45 = vpop.f32.mrf.mxu1  ;;  %3116 = vmatpush3.bf16.msra.mxu0 %v3496_v5  ;;  %p3755_p3 = pnand %p3754_p1, %p4079_p11  ;;  %p3762_p9 = por %p3761_p2, %p3760_p13 }
 0x6ac   : > { %3117 = vmatprep.subr.bf16.mxu0 %v3868_v21  ;;  %v3502_v45 = vld [vmem:[#allocation13 + $0xd8] sm:$0xff]  }
 0x6ad   : > { %v3090_v46 = vpop.f32.mrf.mxu1  ;;  %p3756_p10 = pneg %p3755_p3 }
 0x6ae   : > { %v3503_v46 = vld [vmem:[#allocation13 + $0xd0] sm:$0xff]  }
 0x6af   : > { %3118 = vmatpush3.bf16.msra.mxu0 %v3497_v14  ;;  %v3521_v14 = vld [vmem:[#allocation16] sm:$0xff]   ;;  %p3763_p6 = pnand %p3762_p9, %p3756_p10 }
 0x6b0   : > { %3155 = vmatprep.subr.bf16.mxu0 %v3868_v21 }
 0x74a   : > { %v4273_v47 = vpop.f32.mrf.mxu0 }
 0x74b   : > { %v1945_v33 = vadd.f32 %v4271_v43, %v4273_v47  ;;  %v3500_v43 = vld [vmem:[#allocation13 + $0xe8] sm:$0xff]  }
 0x74c   : > { %v3069_v48 = vpop.f32.mrf.mxu0  ;;  %v3504_v47 = vld [vmem:[#allocation13 + $0xc8] sm:$0xff]  }
 0x74d   : > { %v3505_v48 = vld [vmem:[#allocation13 + $0xc0] sm:$0xff]  }
 0x74e   : > { %v1859_v49 = vpop.f32.mrf.mxu0 }
 0x74f   : > { %v3506_v49 = vld [vmem:[#allocation15 + $0x38] sm:$0xff]  }
 0x750   : > { %v3070_v50 = vpop.f32.mrf.mxu0 }
 0x751   : > { %v3507_v50 = vld [vmem:[#allocation15 + $0x30] sm:$0xff]  }
 0x752   : > { %v1986_v52 = vpop.f32.mrf.mxu0 }
 0x753   : > { %v1987_v53 = vadd.f32 %v4211_v12, %v1986_v52  ;;  %v3508_v52 = vld [vmem:[#allocation15 + $0x28] sm:$0xff]  }
 0x754   : > { %v3095_v54 = vpop.f32.mrf.mxu0 }
 0x755   : > { %v1992_v55 = vsel %vm1579_vm2, %v1987_v53, -inf  ;;  %v3510_v54 = vld [vmem:[#allocation15 + $0x18] sm:$0xff]  }
 0x756   : > { %1993 = vmax.xlane.f32.xlu0 %v1992_v55  ;;  %v1989_v56 = vpop.f32.mrf.mxu0  ;;  %v3511_v55 = vld [vmem:[#allocation15 + $0x10] sm:$0xff]  }
 0x758   : > { %v3096_v57 = vpop.f32.mrf.mxu0 }
 0x7df   : > { %v1994_v58 = vpop.xlane.xlu0 %1993 }
 0x7e0   : > { %v1995_v59 = vsub.f32 %v1987_v53, %v1994_v58  ;;  %v3509_v53 = vld [vmem:[#allocation15 + $0x20] sm:$0xff]  }
 0x7e2   : > { %v1996_v60 = vmul.f32 1.442695, %v1995_v59 }
 0x7e4   : > { %3530 = vpow2.f32 %v1996_v60 }
 0x7f1   : > { %v3531_v61 = vpop.eup %3530 }
 0x7f2   : > { %v1998_v62 = vsel %vm1579_vm2, %v3531_v61, 0.0 }
 0x7f3   : > { %1999 = vadd.xlane.f32.xlu1 %v1998_v62  ;;  %v3513_v62 = vld [vmem:[#allocation15] sm:$0xff]  }
 0x87c   : > { %v2000_v6 = vpop.xlane.xlu1 %1999 }
 0x87d   : > { %3532 = vrcp.f32 %v2000_v6 }
 0x88a   : > { %v3533_v7 = vpop.eup %3532 }
 0x88b   : > { %v2002_v8 = vmul.f32 %v3533_v7, %v3531_v61  ;;  %v3512_v61 = vld [vmem:[#allocation15 + $0x8] sm:$0xff]  }
 0x88d   : > { %v2003_v9 = vpack.c.bf16 %v2002_v8, %v2002_v8 }
 0x88f   : > { %3100 = vmatmul.mubr.msk.bf16.vlgmr.msra.gmra.mxu1 %vm1579_vm2, %v2003_v9  ;;  %v3516_v9 = vld [vmem:[#allocation16 + $0x28] sm:$0xff]  }
 0x890   : > { %3124 = vmatpush3.bf16.xpose.msra.mxu1 %v2157_v51  ;;  %3125 = vmatprep.mubr.msk.bf16.mxu1 %vm3869_vm0, %v3868_v21  ;;  %v3517_v51 = vld [vmem:[#allocation16 + $0x20] sm:$0xff]  }
 0x891   : > { %3129 = vmatprep.subr.bf16.mxu1 %v3868_v21 }
 0x897   : > { %3126 = vmatmul.mubr.bf16.vlgmr.msra.gmra.mxu1 %v1529_v11  ;;  %v3519_v11 = vld [vmem:[#allocation16 + $0x10] sm:$0xff]  }
 0x898   : > { %3130 = vmatpush3.bf16.msra.mxu1 %v2215_v13  ;;  %3131 = vmatprep.mubr.msk.bf16.mxu1 %vm3869_vm0, %v3868_v21  ;;  %v3520_v13 = vld [vmem:[#allocation16 + $0x8] sm:$0xff]  }
 0x899   : > { %3135 = vmatprep.subr.bf16.mxu1 %v3868_v21 }
 0x94f   : > { %v2044_v16 = vpop.f32.mrf.mxu1 }
 0x950   : > { %v2050_v17 = vpack.c.bf16 %v2044_v16, %v2044_v16  ;;  %v2932_v16 = vld [vmem:[%s4404_s10] ss:$0 sm:$0xff] }
 0x951   : > { %v3101_v18 = vpop.f32.mrf.mxu1 }
 0x952   : > { %3120 = vmatmul.mubr.bf16.vlgmr.msra.gmra.mxu0 %v2050_v17 }
 0x953   : > { %v2047_v20 = vpop.f32.mrf.mxu1  ;;  %3171 = vmatprep.mubr.msk.bf16.mxu0 %vm3869_vm0, %v3868_v21  ;;  %3156 = vmatpush3.bf16.msra.mxu0 %v3506_v49 }
 0x954   : > { %3157 = vmatprep.subr.bf16.mxu0 %v3868_v21 }
 0x955   : > { %v3102_v15 = vpop.f32.mrf.mxu1 }
 0x957   : > { %v2193_v63 = vpop.f32.mrf.mxu1  ;;  %3158 = vmatpush3.bf16.msra.mxu0 %v3507_v50 }
 0x958   : > { %v2194_v22 = vadd.f32 %v4211_v12, %v2193_v63  ;;  %3159 = vmatprep.subr.bf16.mxu0 %v3868_v21 }
 0x959   : > { %v3127_v23 = vpop.f32.mrf.mxu1 }
 0x95a   : > { %v2199_v24 = vsel %vm1579_vm2, %v2194_v22, -inf }
 0x95b   : > { %2200 = vmax.xlane.f32.xlu0 %v2199_v24  ;;  %v2196_v25 = vpop.f32.mrf.mxu1  ;;  %3160 = vmatpush3.bf16.msra.mxu0 %v3508_v52 }
 0x95c   : > { %3161 = vmatprep.subr.bf16.mxu0 %v3868_v21 }
 0x95d   : > { %v3128_v26 = vpop.f32.mrf.mxu1 }
 0x95f   : > { %3162 = vmatpush3.bf16.msra.mxu0 %v3509_v53 }
 0x960   : > { %3163 = vmatprep.subr.bf16.mxu0 %v3868_v21 }
 0x963   : > { %3164 = vmatpush3.bf16.msra.mxu0 %v3510_v54 }
 0x964   : > { %3165 = vmatprep.subr.bf16.mxu0 %v3868_v21 }
 0x967   : > { %3166 = vmatpush3.bf16.msra.mxu0 %v3511_v55 }
 0x968   : > { %3167 = vmatprep.subr.bf16.mxu0 %v3868_v21 }
 0x96b   : > { %3168 = vmatpush3.bf16.msra.mxu0 %v3512_v61 }
 0x96c   : > { %3169 = vmatprep.subr.bf16.mxu0 %v3868_v21 }
 0x96f   : > { %3170 = vmatpush3.bf16.msra.mxu0 %v3513_v62 }
 0x9e4   : > { %v2201_v27 = vpop.xlane.xlu0 %2200 }
 0x9e5   : > { %v2202_v28 = vsub.f32 %v2194_v22, %v2201_v27  ;;  %v2931_v27 = vld [vmem:[%s4444_s6] ss:$0 sm:$0xff] }
 0x9e7   : > { %v2203_v29 = vmul.f32 1.442695, %v2202_v28 }
 0x9e9   : > { %3534 = vpow2.f32 %v2203_v29 }
 0x9f6   : > { %v3535_v30 = vpop.eup %3534 }
 0x9f7   : > { %v2205_v31 = vsel %vm1579_vm2, %v3535_v30, 0.0 }
 0x9f8   : > { %2206 = vadd.xlane.f32.xlu1 %v2205_v31 }
 0xa12   : > { %v2150_v34 = vpop.f32.mrf.mxu0 }
 0xa13   : > { %v4303_v0 = vadd.f32 %v2150_v34, %v1945_v33 }
 0xa14   : > { %v3121_v12 = vpop.f32.mrf.mxu0 }
 0xa16   : > { %v2153_v35 = vpop.f32.mrf.mxu0 }
 0xa18   : > { %v3122_v36 = vpop.f32.mrf.mxu0 }
 0xa81   : > { %v2207_v37 = vpop.xlane.xlu1 %2206 }
 0xa82   : > { %3536 = vrcp.f32 %v2207_v37 }
 0xa8f   : > { %v3537_v39 = vpop.eup %3536 }
 0xa90   : > { %v2209_v41 = vmul.f32 %v3537_v39, %v3535_v30 }
 0xa92   : > { %v2210_v32 = vpack.c.bf16 %v2209_v41, %v2209_v41 }
 0xa94   : > { %3132 = vmatmul.mubr.msk.bf16.vlgmr.msra.gmra.mxu1 %vm1579_vm2, %v2210_v32 }
 0xa95   : > { %3136 = vmatpush3.bf16.msra.mxu1 %v3498_v19  ;;  %3151 = vmatprep.mubr.msk.bf16.mxu1 %vm3869_vm0, %v3868_v21 }
 0xa96   : > { %3137 = vmatprep.subr.bf16.mxu1 %v3868_v21 }
 0xa99   : > { %3138 = vmatpush3.bf16.msra.mxu1 %v3499_v42 }
 0xa9a   : > { %3139 = vmatprep.subr.bf16.mxu1 %v3868_v21 }
 0xa9d   : > { %3140 = vmatpush3.bf16.msra.mxu1 %v3500_v43 }
 0xa9e   : > { %3141 = vmatprep.subr.bf16.mxu1 %v3868_v21 }
 0xaa1   : > { %3142 = vmatpush3.bf16.msra.mxu1 %v3501_v44 }
 0xaa2   : > { %3143 = vmatprep.subr.bf16.mxu1 %v3868_v21 }
 0xaa5   : > { %3144 = vmatpush3.bf16.msra.mxu1 %v3502_v45 }
 0xaa6   : > { %3145 = vmatprep.subr.bf16.mxu1 %v3868_v21 }
 0xaa9   : > { %3146 = vmatpush3.bf16.msra.mxu1 %v3503_v46 }
 0xaaa   : > { %3147 = vmatprep.subr.bf16.mxu1 %v3868_v21 }
 0xaad   : > { %3148 = vmatpush3.bf16.msra.mxu1 %v3504_v47 }
 0xaae   : > { %3149 = vmatprep.subr.bf16.mxu1 %v3868_v21 }
 0xab1   : > { %3150 = vmatpush3.bf16.msra.mxu1 %v3505_v48 }
 0xab2   : > { %3175 = vmatprep.subr.bf16.mxu1 %v3868_v21 }
 0xb54   : > { %v2251_v56 = vpop.f32.mrf.mxu1 }
 0xb55   : > { %v2257_v57 = vpack.c.bf16 %v2251_v56, %v2251_v56 }
 0xb56   : > { %v3133_v58 = vpop.f32.mrf.mxu1 }
 0xb57   : > { %3152 = vmatmul.mubr.bf16.vlgmr.msra.gmra.mxu1 %v2257_v57 }
 0xb58   : > { %v2254_v59 = vpop.f32.mrf.mxu1  ;;  %3191 = vmatprep.mubr.msk.bf16.mxu1 %vm3869_vm0, %v3868_v21  ;;  %3176 = vmatpush3.bf16.msra.mxu1 %v3514_v38 }
 0xb59   : > { %3177 = vmatprep.subr.bf16.mxu1 %v3868_v21 }
 0xb5a   : > { %v3134_v60 = vpop.f32.mrf.mxu1 }
 0xb5c   : > { %3178 = vmatpush3.bf16.msra.mxu1 %v3515_v40 }
 0xb5d   : > { %3179 = vmatprep.subr.bf16.mxu1 %v3868_v21 }
 0xb60   : > { %3180 = vmatpush3.bf16.msra.mxu1 %v3516_v9 }
 0xb61   : > { %3181 = vmatprep.subr.bf16.mxu1 %v3868_v21 }
 0xb64   : > { %3182 = vmatpush3.bf16.msra.mxu1 %v3517_v51 }
 0xb65   : > { %3183 = vmatprep.subr.bf16.mxu1 %v3868_v21 }
 0xb68   : > { %3184 = vmatpush3.bf16.msra.mxu1 %v3518_v10 }
 0xb69   : > { %3185 = vmatprep.subr.bf16.mxu1 %v3868_v21 }
 0xb6c   : > { %3186 = vmatpush3.bf16.msra.mxu1 %v3519_v11 }
 0xb6d   : > { %3187 = vmatprep.subr.bf16.mxu1 %v3868_v21 }
 0xb70   : > { %3188 = vmatpush3.bf16.msra.mxu1 %v3520_v13 }
 0xb71   : > { %3189 = vmatprep.subr.bf16.mxu1 %v3868_v21 }
 0xb74   : > { %3190 = vmatpush3.bf16.msra.mxu1 %v3521_v14 }
 0xc17   : > { %v2357_v1 = vpop.f32.mrf.mxu1 }
 0xc18   : > { %v2363_v2 = vadd.f32 %v2357_v1, %v4303_v0 }
 0xc19   : > { %v3153_v3 = vpop.f32.mrf.mxu1 }
 0xc1a   : > { %v2364_v5 = vadd.f32 %v3540_v4, %v2363_v2 }
 0xc1b   : > { %v2360_v6 = vpop.f32.mrf.mxu1 }
 0xc1c   : > { %v2365_v7 = vpack.c.bf16 %v2364_v5, %v2364_v5  ;;  %v2373_v28 = vadd.f32 %v2931_v27, %v2364_v5 }
 0xc1d   : > { %v3154_v8 = vpop.f32.mrf.mxu1 }
 0xc1e   : > { %3172 = vmatmul.mubr.bf16.vlgmr.msra.gmra.mxu0 %v2365_v7 }
 0xcde   : > { %v2480_v17 = vpop.f32.mrf.mxu0 }
 0xcdf   : > { %v2481_v18 = vadd.f32 %v2932_v16, %v2480_v17 }
 0xce0   : > { %v3173_v20 = vpop.f32.mrf.mxu0 }
 0xce1   : > { %v2487_v15 = vmul.f32 0.70710677, %v2481_v18  ;;  %v2486_v24 = vmul.f32 0.5, %v2481_v18 }
 0xce2   : > { %v2483_v63 = vpop.f32.mrf.mxu0 }
 0xce3   : > { %3538 = verf.f32 %v2487_v15 }
 0xce4   : > { %v3174_v22 = vpop.f32.mrf.mxu0 }
 0xcf0   : > { %v3539_v23 = vpop.eup %3538 }
 0xcf1   : > { %v2489_v25 = vadd.f32 1.0, %v3539_v23 }
 0xcf3   : > { %v2490_v21 = vmul.f32 %v2489_v25, %v2486_v24 }
 0xcf5   : > { %v2492_v26 = vpack.c.bf16 %v2490_v21, %v2490_v21 }
 0xcf7   : > { %3192 = vmatmul.mubr.bf16.vlgmr.msra.gmra.mxu1 %v2492_v26 }
 0xdb7   : > { %v2591_v29 = vpop.f32.mrf.mxu1 }
 0xdb8   : > { %v2597_v30 = vadd.f32 %v2591_v29, %v2373_v28 }
 0xdb9   : > { %v3193_v31 = vpop.f32.mrf.mxu1 }
 0xdba   : > { %2598 = vst [vmem:[%s590_s23] sm:$0xff] %v2597_v30 }
 0xdbb   : > { %v2594_v33 = vpop.f32.mrf.mxu1 }
 0xdbc   : > { %3766 = shalt.err (!%p3763_p6)
}
 0xdbd   : > { %s3767_s20 = scalar_lea.hbm %s4346_s14, 128  ;;  %s3771_s13 = scalar_lea.hbm %s4445_s15, 256 }
 0xdbe   : > { %p3768_p5 = scmp.ne.s32.totalorder %s4346_s14, %s3767_s20  ;;  %p3772_p12 = scmp.lt.s32.totalorder %s4346_s14, %s4445_s15 }
 0xdbf   : > { %p3773_p7 = scmp.lt.s32.totalorder %s3771_s13, %s3767_s20 }
 0xdc0   : > { %p3769_p8 = pnand %p3768_p5, %p4079_p11 }
 0xdc1   : > { %p3774_p1 = por %p3773_p7, %p3772_p12 }
 0xdc2   : > { %p3770_p4 = pneg %p3769_p8 }
 0xdc4   : > { %p3775_p3 = pnand %p3774_p1, %p3770_p4 }
 0xdc6   : > { %3778 = shalt.err (!%p3775_p3)
}
 0xdc7   : > { %3223 = dma.vmem_to_hbm [thread:$0]  (%p4079_p11), %s4348_s27, 128, %s4346_s14, %s2600_s17   ;;  %v3194_v34 = vpop.f32.mrf.mxu1 }
 0xdc8 PF: > { %s2626_s11 = sand.u32 1, %s3833_s25   ;;  %p4446_p10 = scmp.ge.s32.totalorder %s3853_s30, 2 }
 0xdc9   : > { %s2627_s6 = scalar_lea.sflag [#allocation6], %s2626_s11 }
 0xdca   : > { %p3252_p13 = pnand %p4446_p10, %p4086_p0 }
 0xdcc   : > { %p3253_p2 = pneg %p3252_p13 }
 0xdce   : > { %3828 = dma.done.wait (%p3253_p2), %s2627_s6, 128  }
 0xdcf   : > { %3830 = vsyncadd (%p3253_p2), %s2627_s6, 4294967168  ;;  %s35_s30 = sadd.s32 1, %s3853_s30   ;;  %s4447_s19 = sld [smem:[#allocation26_spill]] }
 0xdd0   : > { %p32_p9 = scmp.ge.s32.totalorder %s35_s30, 4   ;;  %s4448_s27 = sld [smem:[#allocation29_spill]] }
 0xdd1   : > { %s4449_s16 = sld [smem:[#allocation28_spill]]  ;;  %s4450_s25 = smov %s3837_s26 }
 0xdd2   : > { %s4452_s28 = smov %s3849_s29 }
 0xdd3   :  { %34 = sbr.rel (!%p32_p9) target bundleno = 21 (0x15), region = 162 }
 0xdd5   : > { %s4451_s26 = smov %s4447_s19 }
 0xdd7   : > { %s4453_s29 = smov %s4449_s16 }
 0xdd8   :  { %2632 = vsyncpa [#allocation5], 1 }
 0xdd9   :  { %2634 = vsyncpa [#allocation5 + $0x1], 1 }
 0xdda   :  { %2635 = vsyncpa [#allocation8], 1 }
 0xddb   :  { %2637 = vsyncpa [#allocation8 + $0x1], 1 }
 0xddc   :  { %2638 = vsyncpa [#allocation11], 1 }
 0xddd   :  { %2639 = vsyncpa [#allocation14], 1 }
 0xdde   :  { %2640 = vsyncpa [#allocation17], 1 }
 0xddf   :  { %2641 = vsyncpa [#allocation6], 1 }
 0xde0   :  { %2643 = vsyncpa [#allocation6 + $0x1], 1 }

</bundles_post_ra>
